<compile_context>
chip_gen: v5e
topology: v5e:2x2
jax: 0.10.0
libtpu: 0.0.40
codegen_flags: <defaults>
</compile_context>

<pallas_src>
import functools
import math

import jax
import jax.numpy as jnp
from jax.experimental import pallas as pl
from jax.experimental.pallas import tpu as pltpu

LEAKY_SLOPE = 0.2
BIASED_ACT_GAIN = math.sqrt(2.0)


# ------------------------------ Pallas kernels ------------------------------

def _basis_fuse_kernel(x_ref, wlin_ref, basis_ref, feat_ref, wfa_ref, wfb_ref, o_ref):
    # Stage-0 transition + concat-fuse for one batch element.
    # x: (1, D), wlin: (D, C), basis: (16, C), feat: (16, C), wfa/wfb: (C, C) -> o: (16, C)
    # out = (basis * (x @ wlin)) @ wfa + feat @ wfb  (== 1x1 fuse conv on concat([h, feat]))
    z = jnp.dot(x_ref[...], wlin_ref[...], preferred_element_type=jnp.float32)   # (1, C)
    h = basis_ref[...] * z                                                       # (16, C)
    out = (jnp.dot(h, wfa_ref[...], preferred_element_type=jnp.float32)
           + jnp.dot(feat_ref[...], wfb_ref[...], preferred_element_type=jnp.float32))
    o_ref[...] = out.astype(o_ref.dtype)


def _fuse_concat_kernel(a_ref, wa_ref, b_ref, wb_ref, o_ref):
    # out = a @ wa + b @ wb : 1x1 fuse conv on a channel concat that is never materialized.
    o_ref[...] = (jnp.dot(a_ref[...], wa_ref[...], preferred_element_type=jnp.float32)
                  + jnp.dot(b_ref[...], wb_ref[...], preferred_element_type=jnp.float32)
                  ).astype(o_ref.dtype)


def _residual_block_kernel(x_ref, w1_ref, b1_ref, w2_ref, b2_ref, w3_ref, o_ref,
                           *, H, W, K, groups):
    # Whole residual block for one batch element, entirely in VMEM.
    #   x:  (H*W, Cin)
    #   w1: (Cin, E)            b1: (1, E)
    #   w2: (G, K*K*Eg, Eg)     b2: (1, E)     (per-group, tap-major weight)
    #   w3: (E, Cin)
    #   o:  (H*W, Cin) = x + conv1x1(lrelu(gconvKxK(lrelu(conv1x1(x)+b1)) + b2))
    HW = H * W
    pad = (K - 1) // 2
    E = w1_ref.shape[1]
    Eg = E // groups

    x = x_ref[...]
    # 1x1 expand + bias + leaky_relu (fused epilogue, f32 accumulator).
    y = jnp.dot(x, w1_ref[...], preferred_element_type=jnp.float32) + b1_ref[...]
    y = jnp.where(y >= 0.0, y, LEAKY_SLOPE * y)                                  # (HW, E)

    # Grouped KxK conv: each tap is a static row shift of the flat row-major tile; column
    # wrap-around is removed with an iota mask; one deep (K*K*Eg) contraction per group.
    off = pad * W + pad
    col = jax.lax.broadcasted_iota(jnp.int32, (HW, 1), 0) % W                    # (HW, 1)
    group_outs = []
    for g in range(groups):
        yg = y[:, g * Eg:(g + 1) * Eg]                                           # (HW, Eg)
        zpad = jnp.zeros((off, Eg), jnp.float32)
        ypad = jnp.concatenate([zpad, yg, zpad], axis=0)                         # (HW+2*off, Eg)
        taps = []
        for kh in range(K):
            for kw in range(K):
                dh, dw = kh - pad, kw - pad
                s = off + dh * W + dw
                t = ypad[s:s + HW, :]                                            # (HW, Eg)
                if dw != 0:
                    valid = (col + dw >= 0) & (col + dw < W)
                    t = jnp.where(valid, t, 0.0)
                taps.append(t)
        col_g = jnp.concatenate(taps, axis=-1)                                   # (HW, K*K*Eg)
        group_outs.append(jnp.dot(col_g, w2_ref[g], preferred_element_type=jnp.float32))
    y2 = jnp.concatenate(group_outs, axis=-1) + b2_ref[...]                      # (HW, E)
    y2 = jnp.where(y2 >= 0.0, y2, LEAKY_SLOPE * y2)

    # 1x1 project + residual add (fused epilogue).
    o_ref[...] = (x + jnp.dot(y2, w3_ref[...], preferred_element_type=jnp.float32)
                  ).astype(o_ref.dtype)


def _matmul_kernel(x_ref, w_ref, o_ref):
    o_ref[...] = jnp.dot(x_ref[...], w_ref[...],
                         preferred_element_type=jnp.float32).astype(o_ref.dtype)


# ------------------------------ spec helpers / wrappers ------------------------------

def _parallel_params():
    return pltpu.CompilerParams(dimension_semantics=("parallel",))


def _batch_spec(rows, cols):
    # Per-batch block: squeezed batch dim, full (rows, cols) tile.
    return pl.BlockSpec((pl.Squeezed(), rows, cols), lambda b: (b, 0, 0))


def _full_spec(shape):
    nd = len(shape)
    return pl.BlockSpec(shape, lambda b, _nd=nd: (0,) * _nd)


def stage0_transition_fuse(x, w_lin, basis_chw, feat_flat, w_fuse):
    # x: (B, D); w_lin: (D, C); basis_chw: (C, 4, 4); feat_flat: (B, 16, C);
    # w_fuse: (C, 2C, 1, 1) PyTorch OIHW.  Returns flat NHWC (B, 16, C).
    B, D = x.shape
    C = w_lin.shape[1]
    basis_flat = jnp.transpose(basis_chw, (1, 2, 0)).reshape(16, C)
    wf = w_fuse[:, :, 0, 0]                      # (C, 2C)
    wfa = jnp.transpose(wf[:, :C])               # (C, C): generated half of the concat
    wfb = jnp.transpose(wf[:, C:])               # (C, C): feature half of the concat
    return pl.pallas_call(
        _basis_fuse_kernel,
        grid=(B,),
        in_specs=[
            pl.BlockSpec((pl.Squeezed(), 1, D), lambda b: (b, 0, 0)),
            _full_spec((D, C)),
            _full_spec((16, C)),
            _batch_spec(16, C),
            _full_spec((C, C)),
            _full_spec((C, C)),
        ],
        out_specs=_batch_spec(16, C),
        out_shape=jax.ShapeDtypeStruct((B, 16, C), jnp.float32),
        compiler_params=_parallel_params(),
    )(x.reshape(B, 1, D), w_lin, basis_flat, feat_flat, wfa, wfb)


def upsample_121_flat(h_flat, H, W):
    # TODO(synk): the 2x [1,2,1] zero-stuffed upsample (strided phase interleave) stays in
    # plain JAX -- the interleave needs reshapes across the sublane/lane dims with no clean
    # Mosaic lowering; the 1x1 up-projection, the channel concat and the fuse conv around
    # it are all folded into the following Pallas kernel instead.
    B, HW, C = h_flat.shape
    x = h_flat.reshape(B, H, W, C)
    prev_h = jnp.concatenate([jnp.zeros((B, 1, W, C), x.dtype), x[:, :-1]], axis=1)
    xh = jnp.stack([0.5 * (prev_h + x), x], axis=2).reshape(B, 2 * H, W, C)
    prev_w = jnp.concatenate([jnp.zeros((B, 2 * H, 1, C), xh.dtype), xh[:, :, :-1]], axis=2)
    up = jnp.stack([0.5 * (prev_w + xh), xh], axis=3).reshape(B, 2 * H, 2 * W, C)
    return up.reshape(B, 4 * HW, C)


def upsample_transition_fuse(h_flat, H, W, w_up, feat_flat, w_fuse):
    # UpsampleLayer (optional 1x1) + 2x resample + concat + 1x1 fuse conv.
    # The 1x1 up-projection commutes with the per-channel linear resampler, so it is folded
    # into the fuse weight; only one fused dual-matmul Pallas kernel runs.
    B, HW, Cin = h_flat.shape
    C = w_fuse.shape[0]
    wf = w_fuse[:, :, 0, 0]                      # (C, 2C)
    wfa = jnp.transpose(wf[:, :C])               # (C, C)
    wfb = jnp.transpose(wf[:, C:])               # (C, C)
    if w_up is not None:
        wfa = jnp.transpose(w_up[:, :, 0, 0]) @ wfa   # (Cin, C): fold up-projection
    up = upsample_121_flat(h_flat, H, W)         # (B, 4*HW, Cin)
    return pl.pallas_call(
        _fuse_concat_kernel,
        grid=(B,),
        in_specs=[
            _batch_spec(4 * HW, Cin),
            _full_spec((Cin, C)),
            _batch_spec(4 * HW, C),
            _full_spec((C, C)),
        ],
        out_specs=_batch_spec(4 * HW, C),
        out_shape=jax.ShapeDtypeStruct((B, 4 * HW, C), jnp.float32),
        compiler_params=_parallel_params(),
    )(up, wfa, feat_flat, wfb)


def residual_block_fwd(p, h_flat, H, W):
    B, HW, Cin = h_flat.shape
    groups = p["cardinality"]
    E, _, K, _ = p["w2"].shape
    Eg = E // groups
    w1 = jnp.transpose(p["w1"][:, :, 0, 0])                        # (Cin, E)
    w3 = jnp.transpose(p["w3"][:, :, 0, 0])                        # (E, Cin)
    w2 = p["w2"].reshape(groups, Eg, Eg, K, K)                     # (G, Eg_out, Eg_in, K, K)
    w2 = jnp.transpose(w2, (0, 3, 4, 2, 1)).reshape(groups, K * K * Eg, Eg)
    b1 = p["b1"].reshape(1, E)
    b2 = p["b2"].reshape(1, E)
    kernel = functools.partial(_residual_block_kernel, H=H, W=W, K=K, groups=groups)
    return pl.pallas_call(
        kernel,
        grid=(B,),
        in_specs=[
            _batch_spec(HW, Cin),
            _full_spec((Cin, E)),
            _full_spec((1, E)),
            _full_spec((groups, K * K * Eg, Eg)),
            _full_spec((1, E)),
            _full_spec((E, Cin)),
        ],
        out_specs=_batch_spec(HW, Cin),
        out_shape=jax.ShapeDtypeStruct((B, HW, Cin), jnp.float32),
        compiler_params=_parallel_params(),
    )(h_flat, w1, b1, w2, b2, w3)


def conv1x1(h_flat, w_oihw):
    B, HW, Cin = h_flat.shape
    Cout = w_oihw.shape[0]
    w = jnp.transpose(w_oihw[:, :, 0, 0])                          # (Cin, Cout)
    return pl.pallas_call(
        _matmul_kernel,
        grid=(B,),
        in_specs=[_batch_spec(HW, Cin), _full_spec((Cin, Cout))],
        out_specs=_batch_spec(HW, Cout),
        out_shape=jax.ShapeDtypeStruct((B, HW, Cout), jnp.float32),
        compiler_params=_parallel_params(),
    )(h_flat, w)


# ------------------------------ parameter init ------------------------------

def msr_conv_weight(key, cout, cin_per_group, k, gain):
    fan_in = cin_per_group * k * k
    std = gain / math.sqrt(fan_in)
    return std * jax.random.normal(key, (cout, cin_per_group, k, k), jnp.float32)


def msr_linear_weight(key, out_f, in_f, gain=1.0):
    std = gain / math.sqrt(in_f)
    return std * jax.random.normal(key, (out_f, in_f), jnp.float32)


def init_residual_block(key, in_c, cardinality, expansion, ksize, vsp):
    e = in_c * expansion
    gain = BIASED_ACT_GAIN * vsp ** (-1.0 / (2 * 3 - 2))
    k1, k2, k3 = jax.random.split(key, 3)
    return dict(
        w1=msr_conv_weight(k1, e, in_c, 1, gain),
        w2=msr_conv_weight(k2, e, e // cardinality, ksize, gain),
        w3=msr_conv_weight(k3, in_c, e, 1, 0.0),     # ActivationGain=0 -> zeros
        b1=jnp.zeros((e,), jnp.float32),
        b2=jnp.zeros((e,), jnp.float32),
        cardinality=cardinality,
    )


def init_generator(key, noise_dim, widths, cards, blocks, expansion, ksize):
    vsp = float(sum(blocks))
    stages = []
    keys = jax.random.split(key, len(widths) + 1)
    for si, out_c in enumerate(widths):
        k_tr, k_fuse, k_blk = jax.random.split(keys[si], 3)
        sp = {"w_up": None}
        if si == 0:
            kb, kl = jax.random.split(k_tr)
            sp["basis"] = jax.random.normal(kb, (out_c, 4, 4), jnp.float32)
            sp["w_lin"] = jnp.transpose(msr_linear_weight(kl, out_c, noise_dim, 1.0))  # (D, C)
        else:
            in_c = widths[si - 1]
            if in_c != out_c:
                sp["w_up"] = msr_conv_weight(k_tr, out_c, in_c, 1, 1.0)
        sp["w_fuse"] = msr_conv_weight(k_fuse, out_c, 2 * out_c, 1, 1.0)   # FuseType='concat'
        bkeys = jax.random.split(k_blk, max(blocks[si], 1))
        sp["blocks"] = [init_residual_block(bkeys[j], out_c, cards[si], expansion, ksize, vsp)
                        for j in range(blocks[si])]
        stages.append(sp)
    return {"stages": stages, "w_agg": msr_conv_weight(keys[-1], 3, widths[-1], 1, 1.0)}


# ------------------------------ forward pass ------------------------------

def generator_forward(params, x_noise, features_nchw):
    feats, dims = [], []
    for f in features_nchw:
        B, C, H, W = f.shape
        feats.append(jnp.transpose(f.astype(jnp.float32), (0, 2, 3, 1)).reshape(B, H * W, C))
        dims.append((H, W))
    assert dims[0] == (4, 4), "stage-0 feature must match the 4x4 generative basis"

    h = None
    for si, sp in enumerate(params["stages"]):
        H, W = dims[si]
        if si == 0:
            h = stage0_transition_fuse(x_noise.astype(jnp.float32), sp["w_lin"],
                                       sp["basis"], feats[0], sp["w_fuse"])
        else:
            Hp, Wp = dims[si - 1]
            h = upsample_transition_fuse(h, Hp, Wp, sp["w_up"], feats[si], sp["w_fuse"])
        for bp in sp["blocks"]:
            h = residual_block_fwd(bp, h, H, W)

    out = conv1x1(h, params["w_agg"])                 # AggregationLayer -> (B, HW, 3)
    B = out.shape[0]
    H, W = dims[-1]
    return jnp.transpose(out.reshape(B, H, W, 3), (0, 3, 1, 2))    # back to NCHW


# ------------------------------ main ------------------------------

if __name__ == "__main__":
    B = 2
    noise_dim = 32
    widths = [16, 8]
    cards = [2, 2]
    blocks = [1, 1]
    expansion = 2
    ksize = 3

    root = jax.random.PRNGKey(0)
    kp, kx, kf0, kf1 = jax.random.split(root, 4)
    params = init_generator(kp, noise_dim, widths, cards, blocks, expansion, ksize)

    x = jax.random.normal(kx, (B, noise_dim), jnp.float32)
    features = [
        jax.random.normal(kf0, (B, widths[0], 4, 4), jnp.float32),   # NCHW, stage-0 resolution
        jax.random.normal(kf1, (B, widths[1], 8, 8), jnp.float32),   # NCHW, stage-1 resolution
    ]

    fwd = jax.jit(lambda xn, feats: generator_forward(params, xn, feats))
    out = jax.block_until_ready(fwd(x, features))
    assert out.shape == (B, 3, 8, 8), out.shape
    assert out.dtype == jnp.float32
    print("KERNEL_OK")
</pallas_src>

<mosaic_0001>
module attributes {stable_mosaic.version = 11 : i64} {
  func.func @_residual_block_kernel(%arg0: i32, %arg1: memref<1x16x16xf32, #tpu.memory_space<vmem>>, %arg2: memref<16x32xf32, #tpu.memory_space<vmem>>, %arg3: memref<1x32xf32, #tpu.memory_space<vmem>>, %arg4: memref<2x144x16xf32, #tpu.memory_space<vmem>>, %arg5: memref<1x32xf32, #tpu.memory_space<vmem>>, %arg6: memref<32x16xf32, #tpu.memory_space<vmem>>, %arg7: memref<1x16x16xf32, #tpu.memory_space<vmem>>) attributes {dimension_semantics = [#tpu.dimension_semantics<parallel>], iteration_bounds = array<i64: 2>, scalar_prefetch = 0 : i64, scratch_operands = 0 : i64, tpu.core_type = #tpu.core_type<tc>, window_params = [{transform_indices = @transform_0, window_bounds = array<i64: 1, 16, 16>}, {pipeline_mode = #tpu.pipeline_mode<synchronous>, transform_indices = @transform_1, window_bounds = array<i64: 16, 32>}, {pipeline_mode = #tpu.pipeline_mode<synchronous>, transform_indices = @transform_2, window_bounds = array<i64: 1, 32>}, {pipeline_mode = #tpu.pipeline_mode<synchronous>, transform_indices = @transform_3, window_bounds = array<i64: 2, 144, 16>}, {pipeline_mode = #tpu.pipeline_mode<synchronous>, transform_indices = @transform_4, window_bounds = array<i64: 1, 32>}, {pipeline_mode = #tpu.pipeline_mode<synchronous>, transform_indices = @transform_5, window_bounds = array<i64: 32, 16>}, {transform_indices = @transform_6, window_bounds = array<i64: 1, 16, 16>}]} {
    %c0 = arith.constant 0 : index
    %c0_0 = arith.constant 0 : index
    %c0_1 = arith.constant 0 : index
    %0 = vector.load %arg1[%c0, %c0_0, %c0_1] : memref<1x16x16xf32, #tpu.memory_space<vmem>>, vector<1x16x16xf32>
    %1 = vector.shape_cast %0 : vector<1x16x16xf32> to vector<16x16xf32>
    %c0_2 = arith.constant 0 : index
    %c0_3 = arith.constant 0 : index
    %2 = vector.load %arg2[%c0_2, %c0_3] : memref<16x32xf32, #tpu.memory_space<vmem>>, vector<16x32xf32>
    %cst = arith.constant dense<0.000000e+00> : vector<16x32xf32>
    %3 = tpu.matmul %1, %2, %cst {dimension_numbers = #tpu.dot_dimension_numbers<[1], [0], [0], [1], [0, 0, 1, 1], [], []>} : vector<16x16xf32>, vector<16x32xf32>, vector<16x32xf32> -> vector<16x32xf32>
    %c0_4 = arith.constant 0 : index
    %c0_5 = arith.constant 0 : index
    %4 = vector.load %arg3[%c0_4, %c0_5] : memref<1x32xf32, #tpu.memory_space<vmem>>, vector<1x32xf32>
    %5 = vector.broadcast %4 : vector<1x32xf32> to vector<16x32xf32>
    %6 = arith.addf %3, %5 : vector<16x32xf32>
    %cst_6 = arith.constant 0.000000e+00 : f32
    %7 = vector.broadcast %cst_6 : f32 to vector<16x32xf32>
    %8 = arith.cmpf oge, %6, %7 : vector<16x32xf32>
    %cst_7 = arith.constant 2.000000e-01 : f32
    %9 = vector.broadcast %cst_7 : f32 to vector<16x32xf32>
    %10 = arith.mulf %9, %6 : vector<16x32xf32>
    %11 = arith.select %8, %6, %10 : vector<16x32xi1>, vector<16x32xf32>
    %12 = tpu.iota {dimensions = array<i32: 0>} : vector<16x1xi32>
    %c4_i32 = arith.constant 4 : i32
    %c0_i32 = arith.constant 0 : i32
    %13 = arith.cmpi eq, %c4_i32, %c0_i32 : i32
    %c1_i32 = arith.constant 1 : i32
    %14 = arith.select %13, %c1_i32, %c4_i32 : i32
    %15 = vector.broadcast %14 : i32 to vector<16x1xi32>
    %16 = arith.remsi %12, %15 : vector<16x1xi32>
    %c0_i32_8 = arith.constant 0 : i32
    %17 = vector.broadcast %c0_i32_8 : i32 to vector<16x1xi32>
    %18 = arith.cmpi ne, %16, %17 : vector<16x1xi32>
    %c0_i32_9 = arith.constant 0 : i32
    %19 = vector.broadcast %c0_i32_9 : i32 to vector<16x1xi32>
    %20 = arith.cmpi slt, %16, %19 : vector<16x1xi32>
    %c0_i32_10 = arith.constant 0 : i32
    %21 = arith.cmpi slt, %14, %c0_i32_10 : i32
    %22 = vector.broadcast %21 : i1 to vector<16x1xi1>
    %23 = vector.broadcast %22 : vector<16x1xi1> to vector<16x1xi1>
    %24 = arith.xori %20, %23 : vector<16x1xi1>
    %25 = arith.andi %24, %18 : vector<16x1xi1>
    %26 = vector.broadcast %14 : i32 to vector<16x1xi32>
    %27 = arith.addi %16, %26 : vector<16x1xi32>
    %28 = arith.select %25, %27, %16 : vector<16x1xi1>, vector<16x1xi32>
    %29 = vector.extract_strided_slice %11 {offsets = [0, 0], sizes = [16, 16], strides = [1, 1]} : vector<16x32xf32> to vector<16x16xf32>
    %cst_11 = arith.constant 0.000000e+00 : f32
    %30 = vector.broadcast %cst_11 : f32 to vector<5x16xf32>
    %31 = tpu.concatenate %30, %29, %30 in 0 : vector<5x16xf32>, vector<16x16xf32>, vector<5x16xf32> -> vector<26x16xf32>
    %32 = vector.extract_strided_slice %31 {offsets = [0, 0], sizes = [16, 16], strides = [1, 1]} : vector<26x16xf32> to vector<16x16xf32>
    %c-1_i32 = arith.constant -1 : i32
    %33 = vector.broadcast %c-1_i32 : i32 to vector<16x1xi32>
    %34 = arith.addi %28, %33 : vector<16x1xi32>
    %c0_i32_12 = arith.constant 0 : i32
    %35 = vector.broadcast %c0_i32_12 : i32 to vector<16x1xi32>
    %36 = arith.cmpi sge, %34, %35 : vector<16x1xi32>
    %c-1_i32_13 = arith.constant -1 : i32
    %37 = vector.broadcast %c-1_i32_13 : i32 to vector<16x1xi32>
    %38 = arith.addi %28, %37 : vector<16x1xi32>
    %c4_i32_14 = arith.constant 4 : i32
    %39 = vector.broadcast %c4_i32_14 : i32 to vector<16x1xi32>
    %40 = arith.cmpi slt, %38, %39 : vector<16x1xi32>
    %41 = arith.andi %36, %40 : vector<16x1xi1>
    %cst_15 = arith.constant 0.000000e+00 : f32
    %42 = vector.shape_cast %41 : vector<16x1xi1> to vector<16x1xi1>
    %43 = vector.broadcast %42 : vector<16x1xi1> to vector<16x16xi1>
    %44 = vector.broadcast %cst_15 : f32 to vector<16x16xf32>
    %45 = arith.select %43, %32, %44 : vector<16x16xi1>, vector<16x16xf32>
    %46 = vector.extract_strided_slice %31 {offsets = [1, 0], sizes = [16, 16], strides = [1, 1]} : vector<26x16xf32> to vector<16x16xf32>
    %47 = vector.extract_strided_slice %31 {offsets = [2, 0], sizes = [16, 16], strides = [1, 1]} : vector<26x16xf32> to vector<16x16xf32>
    %c1_i32_16 = arith.constant 1 : i32
    %48 = vector.broadcast %c1_i32_16 : i32 to vector<16x1xi32>
    %49 = arith.addi %28, %48 : vector<16x1xi32>
    %c0_i32_17 = arith.constant 0 : i32
    %50 = vector.broadcast %c0_i32_17 : i32 to vector<16x1xi32>
    %51 = arith.cmpi sge, %49, %50 : vector<16x1xi32>
    %c1_i32_18 = arith.constant 1 : i32
    %52 = vector.broadcast %c1_i32_18 : i32 to vector<16x1xi32>
    %53 = arith.addi %28, %52 : vector<16x1xi32>
    %c4_i32_19 = arith.constant 4 : i32
    %54 = vector.broadcast %c4_i32_19 : i32 to vector<16x1xi32>
    %55 = arith.cmpi slt, %53, %54 : vector<16x1xi32>
    %56 = arith.andi %51, %55 : vector<16x1xi1>
    %cst_20 = arith.constant 0.000000e+00 : f32
    %57 = vector.shape_cast %56 : vector<16x1xi1> to vector<16x1xi1>
    %58 = vector.broadcast %57 : vector<16x1xi1> to vector<16x16xi1>
    %59 = vector.broadcast %cst_20 : f32 to vector<16x16xf32>
    %60 = arith.select %58, %47, %59 : vector<16x16xi1>, vector<16x16xf32>
    %61 = vector.extract_strided_slice %31 {offsets = [4, 0], sizes = [16, 16], strides = [1, 1]} : vector<26x16xf32> to vector<16x16xf32>
    %c-1_i32_21 = arith.constant -1 : i32
    %62 = vector.broadcast %c-1_i32_21 : i32 to vector<16x1xi32>
    %63 = arith.addi %28, %62 : vector<16x1xi32>
    %c0_i32_22 = arith.constant 0 : i32
    %64 = vector.broadcast %c0_i32_22 : i32 to vector<16x1xi32>
    %65 = arith.cmpi sge, %63, %64 : vector<16x1xi32>
    %c-1_i32_23 = arith.constant -1 : i32
    %66 = vector.broadcast %c-1_i32_23 : i32 to vector<16x1xi32>
    %67 = arith.addi %28, %66 : vector<16x1xi32>
    %c4_i32_24 = arith.constant 4 : i32
    %68 = vector.broadcast %c4_i32_24 : i32 to vector<16x1xi32>
    %69 = arith.cmpi slt, %67, %68 : vector<16x1xi32>
    %70 = arith.andi %65, %69 : vector<16x1xi1>
    %cst_25 = arith.constant 0.000000e+00 : f32
    %71 = vector.shape_cast %70 : vector<16x1xi1> to vector<16x1xi1>
    %72 = vector.broadcast %71 : vector<16x1xi1> to vector<16x16xi1>
    %73 = vector.broadcast %cst_25 : f32 to vector<16x16xf32>
    %74 = arith.select %72, %61, %73 : vector<16x16xi1>, vector<16x16xf32>
    %75 = vector.extract_strided_slice %31 {offsets = [5, 0], sizes = [16, 16], strides = [1, 1]} : vector<26x16xf32> to vector<16x16xf32>
    %76 = vector.extract_strided_slice %31 {offsets = [6, 0], sizes = [16, 16], strides = [1, 1]} : vector<26x16xf32> to vector<16x16xf32>
    %c1_i32_26 = arith.constant 1 : i32
    %77 = vector.broadcast %c1_i32_26 : i32 to vector<16x1xi32>
    %78 = arith.addi %28, %77 : vector<16x1xi32>
    %c0_i32_27 = arith.constant 0 : i32
    %79 = vector.broadcast %c0_i32_27 : i32 to vector<16x1xi32>
    %80 = arith.cmpi sge, %78, %79 : vector<16x1xi32>
    %c1_i32_28 = arith.constant 1 : i32
    %81 = vector.broadcast %c1_i32_28 : i32 to vector<16x1xi32>
    %82 = arith.addi %28, %81 : vector<16x1xi32>
    %c4_i32_29 = arith.constant 4 : i32
    %83 = vector.broadcast %c4_i32_29 : i32 to vector<16x1xi32>
    %84 = arith.cmpi slt, %82, %83 : vector<16x1xi32>
    %85 = arith.andi %80, %84 : vector<16x1xi1>
    %cst_30 = arith.constant 0.000000e+00 : f32
    %86 = vector.shape_cast %85 : vector<16x1xi1> to vector<16x1xi1>
    %87 = vector.broadcast %86 : vector<16x1xi1> to vector<16x16xi1>
    %88 = vector.broadcast %cst_30 : f32 to vector<16x16xf32>
    %89 = arith.select %87, %76, %88 : vector<16x16xi1>, vector<16x16xf32>
    %90 = vector.extract_strided_slice %31 {offsets = [8, 0], sizes = [16, 16], strides = [1, 1]} : vector<26x16xf32> to vector<16x16xf32>
    %c-1_i32_31 = arith.constant -1 : i32
    %91 = vector.broadcast %c-1_i32_31 : i32 to vector<16x1xi32>
    %92 = arith.addi %28, %91 : vector<16x1xi32>
    %c0_i32_32 = arith.constant 0 : i32
    %93 = vector.broadcast %c0_i32_32 : i32 to vector<16x1xi32>
    %94 = arith.cmpi sge, %92, %93 : vector<16x1xi32>
    %c-1_i32_33 = arith.constant -1 : i32
    %95 = vector.broadcast %c-1_i32_33 : i32 to vector<16x1xi32>
    %96 = arith.addi %28, %95 : vector<16x1xi32>
    %c4_i32_34 = arith.constant 4 : i32
    %97 = vector.broadcast %c4_i32_34 : i32 to vector<16x1xi32>
    %98 = arith.cmpi slt, %96, %97 : vector<16x1xi32>
    %99 = arith.andi %94, %98 : vector<16x1xi1>
    %cst_35 = arith.constant 0.000000e+00 : f32
    %100 = vector.shape_cast %99 : vector<16x1xi1> to vector<16x1xi1>
    %101 = vector.broadcast %100 : vector<16x1xi1> to vector<16x16xi1>
    %102 = vector.broadcast %cst_35 : f32 to vector<16x16xf32>
    %103 = arith.select %101, %90, %102 : vector<16x16xi1>, vector<16x16xf32>
    %104 = vector.extract_strided_slice %31 {offsets = [9, 0], sizes = [16, 16], strides = [1, 1]} : vector<26x16xf32> to vector<16x16xf32>
    %105 = vector.extract_strided_slice %31 {offsets = [10, 0], sizes = [16, 16], strides = [1, 1]} : vector<26x16xf32> to vector<16x16xf32>
    %c1_i32_36 = arith.constant 1 : i32
    %106 = vector.broadcast %c1_i32_36 : i32 to vector<16x1xi32>
    %107 = arith.addi %28, %106 : vector<16x1xi32>
    %c0_i32_37 = arith.constant 0 : i32
    %108 = vector.broadcast %c0_i32_37 : i32 to vector<16x1xi32>
    %109 = arith.cmpi sge, %107, %108 : vector<16x1xi32>
    %c1_i32_38 = arith.constant 1 : i32
    %110 = vector.broadcast %c1_i32_38 : i32 to vector<16x1xi32>
    %111 = arith.addi %28, %110 : vector<16x1xi32>
    %c4_i32_39 = arith.constant 4 : i32
    %112 = vector.broadcast %c4_i32_39 : i32 to vector<16x1xi32>
    %113 = arith.cmpi slt, %111, %112 : vector<16x1xi32>
    %114 = arith.andi %109, %113 : vector<16x1xi1>
    %cst_40 = arith.constant 0.000000e+00 : f32
    %115 = vector.shape_cast %114 : vector<16x1xi1> to vector<16x1xi1>
    %116 = vector.broadcast %115 : vector<16x1xi1> to vector<16x16xi1>
    %117 = vector.broadcast %cst_40 : f32 to vector<16x16xf32>
    %118 = arith.select %116, %105, %117 : vector<16x16xi1>, vector<16x16xf32>
    %119 = tpu.concatenate %45, %46, %60, %74, %75, %89, %103, %104, %118 in 1 : vector<16x16xf32>, vector<16x16xf32>, vector<16x16xf32>, vector<16x16xf32>, vector<16x16xf32>, vector<16x16xf32>, vector<16x16xf32>, vector<16x16xf32>, vector<16x16xf32> -> vector<16x144xf32>
    %c0_41 = arith.constant 0 : index
    %c0_42 = arith.constant 0 : index
    %c0_43 = arith.constant 0 : index
    %120 = vector.load %arg4[%c0_41, %c0_42, %c0_43] : memref<2x144x16xf32, #tpu.memory_space<vmem>>, vector<1x144x16xf32>
    %121 = vector.shape_cast %120 : vector<1x144x16xf32> to vector<144x16xf32>
    %cst_44 = arith.constant dense<0.000000e+00> : vector<16x16xf32>
    %122 = tpu.matmul %119, %121, %cst_44 {dimension_numbers = #tpu.dot_dimension_numbers<[1], [0], [0], [1], [0, 0, 1, 1], [], []>} : vector<16x144xf32>, vector<144x16xf32>, vector<16x16xf32> -> vector<16x16xf32>
    %123 = vector.extract_strided_slice %11 {offsets = [0, 16], sizes = [16, 16], strides = [1, 1]} : vector<16x32xf32> to vector<16x16xf32>
    %cst_45 = arith.constant 0.000000e+00 : f32
    %124 = vector.broadcast %cst_45 : f32 to vector<5x16xf32>
    %125 = tpu.concatenate %124, %123, %124 in 0 : vector<5x16xf32>, vector<16x16xf32>, vector<5x16xf32> -> vector<26x16xf32>
    %126 = vector.extract_strided_slice %125 {offsets = [0, 0], sizes = [16, 16], strides = [1, 1]} : vector<26x16xf32> to vector<16x16xf32>
    %c-1_i32_46 = arith.constant -1 : i32
    %127 = vector.broadcast %c-1_i32_46 : i32 to vector<16x1xi32>
    %128 = arith.addi %28, %127 : vector<16x1xi32>
    %c0_i32_47 = arith.constant 0 : i32
    %129 = vector.broadcast %c0_i32_47 : i32 to vector<16x1xi32>
    %130 = arith.cmpi sge, %128, %129 : vector<16x1xi32>
    %c-1_i32_48 = arith.constant -1 : i32
    %131 = vector.broadcast %c-1_i32_48 : i32 to vector<16x1xi32>
    %132 = arith.addi %28, %131 : vector<16x1xi32>
    %c4_i32_49 = arith.constant 4 : i32
    %133 = vector.broadcast %c4_i32_49 : i32 to vector<16x1xi32>
    %134 = arith.cmpi slt, %132, %133 : vector<16x1xi32>
    %135 = arith.andi %130, %134 : vector<16x1xi1>
    %cst_50 = arith.constant 0.000000e+00 : f32
    %136 = vector.shape_cast %135 : vector<16x1xi1> to vector<16x1xi1>
    %137 = vector.broadcast %136 : vector<16x1xi1> to vector<16x16xi1>
    %138 = vector.broadcast %cst_50 : f32 to vector<16x16xf32>
    %139 = arith.select %137, %126, %138 : vector<16x16xi1>, vector<16x16xf32>
    %140 = vector.extract_strided_slice %125 {offsets = [1, 0], sizes = [16, 16], strides = [1, 1]} : vector<26x16xf32> to vector<16x16xf32>
    %141 = vector.extract_strided_slice %125 {offsets = [2, 0], sizes = [16, 16], strides = [1, 1]} : vector<26x16xf32> to vector<16x16xf32>
    %c1_i32_51 = arith.constant 1 : i32
    %142 = vector.broadcast %c1_i32_51 : i32 to vector<16x1xi32>
    %143 = arith.addi %28, %142 : vector<16x1xi32>
    %c0_i32_52 = arith.constant 0 : i32
    %144 = vector.broadcast %c0_i32_52 : i32 to vector<16x1xi32>
    %145 = arith.cmpi sge, %143, %144 : vector<16x1xi32>
    %c1_i32_53 = arith.constant 1 : i32
    %146 = vector.broadcast %c1_i32_53 : i32 to vector<16x1xi32>
    %147 = arith.addi %28, %146 : vector<16x1xi32>
    %c4_i32_54 = arith.constant 4 : i32
    %148 = vector.broadcast %c4_i32_54 : i32 to vector<16x1xi32>
    %149 = arith.cmpi slt, %147, %148 : vector<16x1xi32>
    %150 = arith.andi %145, %149 : vector<16x1xi1>
    %cst_55 = arith.constant 0.000000e+00 : f32
    %151 = vector.shape_cast %150 : vector<16x1xi1> to vector<16x1xi1>
    %152 = vector.broadcast %151 : vector<16x1xi1> to vector<16x16xi1>
    %153 = vector.broadcast %cst_55 : f32 to vector<16x16xf32>
    %154 = arith.select %152, %141, %153 : vector<16x16xi1>, vector<16x16xf32>
    %155 = vector.extract_strided_slice %125 {offsets = [4, 0], sizes = [16, 16], strides = [1, 1]} : vector<26x16xf32> to vector<16x16xf32>
    %c-1_i32_56 = arith.constant -1 : i32
    %156 = vector.broadcast %c-1_i32_56 : i32 to vector<16x1xi32>
    %157 = arith.addi %28, %156 : vector<16x1xi32>
    %c0_i32_57 = arith.constant 0 : i32
    %158 = vector.broadcast %c0_i32_57 : i32 to vector<16x1xi32>
    %159 = arith.cmpi sge, %157, %158 : vector<16x1xi32>
    %c-1_i32_58 = arith.constant -1 : i32
    %160 = vector.broadcast %c-1_i32_58 : i32 to vector<16x1xi32>
    %161 = arith.addi %28, %160 : vector<16x1xi32>
    %c4_i32_59 = arith.constant 4 : i32
    %162 = vector.broadcast %c4_i32_59 : i32 to vector<16x1xi32>
    %163 = arith.cmpi slt, %161, %162 : vector<16x1xi32>
    %164 = arith.andi %159, %163 : vector<16x1xi1>
    %cst_60 = arith.constant 0.000000e+00 : f32
    %165 = vector.shape_cast %164 : vector<16x1xi1> to vector<16x1xi1>
    %166 = vector.broadcast %165 : vector<16x1xi1> to vector<16x16xi1>
    %167 = vector.broadcast %cst_60 : f32 to vector<16x16xf32>
    %168 = arith.select %166, %155, %167 : vector<16x16xi1>, vector<16x16xf32>
    %169 = vector.extract_strided_slice %125 {offsets = [5, 0], sizes = [16, 16], strides = [1, 1]} : vector<26x16xf32> to vector<16x16xf32>
    %170 = vector.extract_strided_slice %125 {offsets = [6, 0], sizes = [16, 16], strides = [1, 1]} : vector<26x16xf32> to vector<16x16xf32>
    %c1_i32_61 = arith.constant 1 : i32
    %171 = vector.broadcast %c1_i32_61 : i32 to vector<16x1xi32>
    %172 = arith.addi %28, %171 : vector<16x1xi32>
    %c0_i32_62 = arith.constant 0 : i32
    %173 = vector.broadcast %c0_i32_62 : i32 to vector<16x1xi32>
    %174 = arith.cmpi sge, %172, %173 : vector<16x1xi32>
    %c1_i32_63 = arith.constant 1 : i32
    %175 = vector.broadcast %c1_i32_63 : i32 to vector<16x1xi32>
    %176 = arith.addi %28, %175 : vector<16x1xi32>
    %c4_i32_64 = arith.constant 4 : i32
    %177 = vector.broadcast %c4_i32_64 : i32 to vector<16x1xi32>
    %178 = arith.cmpi slt, %176, %177 : vector<16x1xi32>
    %179 = arith.andi %174, %178 : vector<16x1xi1>
    %cst_65 = arith.constant 0.000000e+00 : f32
    %180 = vector.shape_cast %179 : vector<16x1xi1> to vector<16x1xi1>
    %181 = vector.broadcast %180 : vector<16x1xi1> to vector<16x16xi1>
    %182 = vector.broadcast %cst_65 : f32 to vector<16x16xf32>
    %183 = arith.select %181, %170, %182 : vector<16x16xi1>, vector<16x16xf32>
    %184 = vector.extract_strided_slice %125 {offsets = [8, 0], sizes = [16, 16], strides = [1, 1]} : vector<26x16xf32> to vector<16x16xf32>
    %c-1_i32_66 = arith.constant -1 : i32
    %185 = vector.broadcast %c-1_i32_66 : i32 to vector<16x1xi32>
    %186 = arith.addi %28, %185 : vector<16x1xi32>
    %c0_i32_67 = arith.constant 0 : i32
    %187 = vector.broadcast %c0_i32_67 : i32 to vector<16x1xi32>
    %188 = arith.cmpi sge, %186, %187 : vector<16x1xi32>
    %c-1_i32_68 = arith.constant -1 : i32
    %189 = vector.broadcast %c-1_i32_68 : i32 to vector<16x1xi32>
    %190 = arith.addi %28, %189 : vector<16x1xi32>
    %c4_i32_69 = arith.constant 4 : i32
    %191 = vector.broadcast %c4_i32_69 : i32 to vector<16x1xi32>
    %192 = arith.cmpi slt, %190, %191 : vector<16x1xi32>
    %193 = arith.andi %188, %192 : vector<16x1xi1>
    %cst_70 = arith.constant 0.000000e+00 : f32
    %194 = vector.shape_cast %193 : vector<16x1xi1> to vector<16x1xi1>
    %195 = vector.broadcast %194 : vector<16x1xi1> to vector<16x16xi1>
    %196 = vector.broadcast %cst_70 : f32 to vector<16x16xf32>
    %197 = arith.select %195, %184, %196 : vector<16x16xi1>, vector<16x16xf32>
    %198 = vector.extract_strided_slice %125 {offsets = [9, 0], sizes = [16, 16], strides = [1, 1]} : vector<26x16xf32> to vector<16x16xf32>
    %199 = vector.extract_strided_slice %125 {offsets = [10, 0], sizes = [16, 16], strides = [1, 1]} : vector<26x16xf32> to vector<16x16xf32>
    %c1_i32_71 = arith.constant 1 : i32
    %200 = vector.broadcast %c1_i32_71 : i32 to vector<16x1xi32>
    %201 = arith.addi %28, %200 : vector<16x1xi32>
    %c0_i32_72 = arith.constant 0 : i32
    %202 = vector.broadcast %c0_i32_72 : i32 to vector<16x1xi32>
    %203 = arith.cmpi sge, %201, %202 : vector<16x1xi32>
    %c1_i32_73 = arith.constant 1 : i32
    %204 = vector.broadcast %c1_i32_73 : i32 to vector<16x1xi32>
    %205 = arith.addi %28, %204 : vector<16x1xi32>
    %c4_i32_74 = arith.constant 4 : i32
    %206 = vector.broadcast %c4_i32_74 : i32 to vector<16x1xi32>
    %207 = arith.cmpi slt, %205, %206 : vector<16x1xi32>
    %208 = arith.andi %203, %207 : vector<16x1xi1>
    %cst_75 = arith.constant 0.000000e+00 : f32
    %209 = vector.shape_cast %208 : vector<16x1xi1> to vector<16x1xi1>
    %210 = vector.broadcast %209 : vector<16x1xi1> to vector<16x16xi1>
    %211 = vector.broadcast %cst_75 : f32 to vector<16x16xf32>
    %212 = arith.select %210, %199, %211 : vector<16x16xi1>, vector<16x16xf32>
    %213 = tpu.concatenate %139, %140, %154, %168, %169, %183, %197, %198, %212 in 1 : vector<16x16xf32>, vector<16x16xf32>, vector<16x16xf32>, vector<16x16xf32>, vector<16x16xf32>, vector<16x16xf32>, vector<16x16xf32>, vector<16x16xf32>, vector<16x16xf32> -> vector<16x144xf32>
    %c1 = arith.constant 1 : index
    %c0_76 = arith.constant 0 : index
    %c0_77 = arith.constant 0 : index
    %214 = vector.load %arg4[%c1, %c0_76, %c0_77] : memref<2x144x16xf32, #tpu.memory_space<vmem>>, vector<1x144x16xf32>
    %215 = vector.shape_cast %214 : vector<1x144x16xf32> to vector<144x16xf32>
    %cst_78 = arith.constant dense<0.000000e+00> : vector<16x16xf32>
    %216 = tpu.matmul %213, %215, %cst_78 {dimension_numbers = #tpu.dot_dimension_numbers<[1], [0], [0], [1], [0, 0, 1, 1], [], []>} : vector<16x144xf32>, vector<144x16xf32>, vector<16x16xf32> -> vector<16x16xf32>
    %217 = tpu.concatenate %122, %216 in 1 : vector<16x16xf32>, vector<16x16xf32> -> vector<16x32xf32>
    %c0_79 = arith.constant 0 : index
    %c0_80 = arith.constant 0 : index
    %218 = vector.load %arg5[%c0_79, %c0_80] : memref<1x32xf32, #tpu.memory_space<vmem>>, vector<1x32xf32>
    %219 = vector.broadcast %218 : vector<1x32xf32> to vector<16x32xf32>
    %220 = arith.addf %217, %219 : vector<16x32xf32>
    %cst_81 = arith.constant 0.000000e+00 : f32
    %221 = vector.broadcast %cst_81 : f32 to vector<16x32xf32>
    %222 = arith.cmpf oge, %220, %221 : vector<16x32xf32>
    %cst_82 = arith.constant 2.000000e-01 : f32
    %223 = vector.broadcast %cst_82 : f32 to vector<16x32xf32>
    %224 = arith.mulf %223, %220 : vector<16x32xf32>
    %225 = arith.select %222, %220, %224 : vector<16x32xi1>, vector<16x32xf32>
    %c0_83 = arith.constant 0 : index
    %c0_84 = arith.constant 0 : index
    %226 = vector.load %arg6[%c0_83, %c0_84] : memref<32x16xf32, #tpu.memory_space<vmem>>, vector<32x16xf32>
    %cst_85 = arith.constant dense<0.000000e+00> : vector<16x16xf32>
    %227 = tpu.matmul %225, %226, %cst_85 {dimension_numbers = #tpu.dot_dimension_numbers<[1], [0], [0], [1], [0, 0, 1, 1], [], []>} : vector<16x32xf32>, vector<32x16xf32>, vector<16x16xf32> -> vector<16x16xf32>
    %228 = arith.addf %1, %227 : vector<16x16xf32>
    %c0_86 = arith.constant 0 : index
    %c0_87 = arith.constant 0 : index
    %c0_88 = arith.constant 0 : index
    %229 = vector.load %arg7[%c0_86, %c0_87, %c0_88] : memref<1x16x16xf32, #tpu.memory_space<vmem>>, vector<1x16x16xf32>
    %230 = vector.shape_cast %229 : vector<1x16x16xf32> to vector<16x16xf32>
    %231 = vector.shape_cast %228 : vector<16x16xf32> to vector<1x16x16xf32>
    tpu.vector_store %arg7[%c0_86, %c0_87, %c0_88], %231 {strides = array<i32>} : memref<1x16x16xf32, #tpu.memory_space<vmem>>, vector<1x16x16xf32>,
    return
  }
  func.func @transform_0(%arg0: i32) -> (i32, i32, i32) {
    %c0_i32 = arith.constant 0 : i32
    %c0_i32_0 = arith.constant 0 : i32
    %c0_i32_1 = arith.constant 0 : i32
    return %arg0, %c0_i32, %c0_i32_0 : i32, i32, i32
  }
  func.func @transform_1(%arg0: i32) -> (i32, i32) {
    %c0_i32 = arith.constant 0 : i32
    %c0_i32_0 = arith.constant 0 : i32
    %c0_i32_1 = arith.constant 0 : i32
    return %c0_i32, %c0_i32_0 : i32, i32
  }
  func.func @transform_2(%arg0: i32) -> (i32, i32) {
    %c0_i32 = arith.constant 0 : i32
    %c0_i32_0 = arith.constant 0 : i32
    %c0_i32_1 = arith.constant 0 : i32
    return %c0_i32, %c0_i32_0 : i32, i32
  }
  func.func @transform_3(%arg0: i32) -> (i32, i32, i32) {
    %c0_i32 = arith.constant 0 : i32
    %c0_i32_0 = arith.constant 0 : i32
    %c0_i32_1 = arith.constant 0 : i32
    %c0_i32_2 = arith.constant 0 : i32
    return %c0_i32, %c0_i32_0, %c0_i32_1 : i32, i32, i32
  }
  func.func @transform_4(%arg0: i32) -> (i32, i32) {
    %c0_i32 = arith.constant 0 : i32
    %c0_i32_0 = arith.constant 0 : i32
    %c0_i32_1 = arith.constant 0 : i32
    return %c0_i32, %c0_i32_0 : i32, i32
  }
  func.func @transform_5(%arg0: i32) -> (i32, i32) {
    %c0_i32 = arith.constant 0 : i32
    %c0_i32_0 = arith.constant 0 : i32
    %c0_i32_1 = arith.constant 0 : i32
    return %c0_i32, %c0_i32_0 : i32, i32
  }
  func.func @transform_6(%arg0: i32) -> (i32, i32, i32) {
    %c0_i32 = arith.constant 0 : i32
    %c0_i32_0 = arith.constant 0 : i32
    %c0_i32_1 = arith.constant 0 : i32
    return %arg0, %c0_i32, %c0_i32_0 : i32, i32, i32
  }
}

module attributes {stable_mosaic.version = 11 : i64} {
  func.func @_basis_fuse_kernel(%arg0: i32, %arg1: memref<1x1x32xf32, #tpu.memory_space<vmem>>, %arg2: memref<32x16xf32, #tpu.memory_space<vmem>>, %arg3: memref<16x16xf32, #tpu.memory_space<vmem>>, %arg4: memref<1x16x16xf32, #tpu.memory_space<vmem>>, %arg5: memref<16x16xf32, #tpu.memory_space<vmem>>, %arg6: memref<16x16xf32, #tpu.memory_space<vmem>>, %arg7: memref<1x16x16xf32, #tpu.memory_space<vmem>>) attributes {dimension_semantics = [#tpu.dimension_semantics<parallel>], iteration_bounds = array<i64: 2>, scalar_prefetch = 0 : i64, scratch_operands = 0 : i64, tpu.core_type = #tpu.core_type<tc>, window_params = [{transform_indices = @transform_0, window_bounds = array<i64: 1, 1, 32>}, {pipeline_mode = #tpu.pipeline_mode<synchronous>, transform_indices = @transform_1, window_bounds = array<i64: 32, 16>}, {pipeline_mode = #tpu.pipeline_mode<synchronous>, transform_indices = @transform_2, window_bounds = array<i64: 16, 16>}, {transform_indices = @transform_3, window_bounds = array<i64: 1, 16, 16>}, {pipeline_mode = #tpu.pipeline_mode<synchronous>, transform_indices = @transform_4, window_bounds = array<i64: 16, 16>}, {pipeline_mode = #tpu.pipeline_mode<synchronous>, transform_indices = @transform_5, window_bounds = array<i64: 16, 16>}, {transform_indices = @transform_6, window_bounds = array<i64: 1, 16, 16>}]} {
    %c0 = arith.constant 0 : index
    %c0_0 = arith.constant 0 : index
    %c0_1 = arith.constant 0 : index
    %0 = vector.load %arg1[%c0, %c0_0, %c0_1] : memref<1x1x32xf32, #tpu.memory_space<vmem>>, vector<1x1x32xf32>
    %1 = vector.shape_cast %0 : vector<1x1x32xf32> to vector<1x32xf32>
    %c0_2 = arith.constant 0 : index
    %c0_3 = arith.constant 0 : index
    %2 = vector.load %arg2[%c0_2, %c0_3] : memref<32x16xf32, #tpu.memory_space<vmem>>, vector<32x16xf32>
    %cst = arith.constant dense<0.000000e+00> : vector<1x16xf32>
    %3 = tpu.matmul %1, %2, %cst {dimension_numbers = #tpu.dot_dimension_numbers<[1], [0], [0], [1], [0, 0, 1, 1], [], []>} : vector<1x32xf32>, vector<32x16xf32>, vector<1x16xf32> -> vector<1x16xf32>
    %c0_4 = arith.constant 0 : index
    %c0_5 = arith.constant 0 : index
    %4 = vector.load %arg3[%c0_4, %c0_5] : memref<16x16xf32, #tpu.memory_space<vmem>>, vector<16x16xf32>
    %5 = vector.broadcast %3 : vector<1x16xf32> to vector<16x16xf32>
    %6 = arith.mulf %4, %5 : vector<16x16xf32>
    %c0_6 = arith.constant 0 : index
    %c0_7 = arith.constant 0 : index
    %7 = vector.load %arg5[%c0_6, %c0_7] : memref<16x16xf32, #tpu.memory_space<vmem>>, vector<16x16xf32>
    %cst_8 = arith.constant dense<0.000000e+00> : vector<16x16xf32>
    %8 = tpu.matmul %6, %7, %cst_8 {dimension_numbers = #tpu.dot_dimension_numbers<[1], [0], [0], [1], [0, 0, 1, 1], [], []>} : vector<16x16xf32>, vector<16x16xf32>, vector<16x16xf32> -> vector<16x16xf32>
    %c0_9 = arith.constant 0 : index
    %c0_10 = arith.constant 0 : index
    %c0_11 = arith.constant 0 : index
    %9 = vector.load %arg4[%c0_9, %c0_10, %c0_11] : memref<1x16x16xf32, #tpu.memory_space<vmem>>, vector<1x16x16xf32>
    %10 = vector.shape_cast %9 : vector<1x16x16xf32> to vector<16x16xf32>
    %c0_12 = arith.constant 0 : index
    %c0_13 = arith.constant 0 : index
    %11 = vector.load %arg6[%c0_12, %c0_13] : memref<16x16xf32, #tpu.memory_space<vmem>>, vector<16x16xf32>
    %cst_14 = arith.constant dense<0.000000e+00> : vector<16x16xf32>
    %12 = tpu.matmul %10, %11, %cst_14 {dimension_numbers = #tpu.dot_dimension_numbers<[1], [0], [0], [1], [0, 0, 1, 1], [], []>} : vector<16x16xf32>, vector<16x16xf32>, vector<16x16xf32> -> vector<16x16xf32>
    %13 = arith.addf %8, %12 : vector<16x16xf32>
    %c0_15 = arith.constant 0 : index
    %c0_16 = arith.constant 0 : index
    %c0_17 = arith.constant 0 : index
    %14 = vector.load %arg7[%c0_15, %c0_16, %c0_17] : memref<1x16x16xf32, #tpu.memory_space<vmem>>, vector<1x16x16xf32>
    %15 = vector.shape_cast %14 : vector<1x16x16xf32> to vector<16x16xf32>
    %16 = vector.shape_cast %13 : vector<16x16xf32> to vector<1x16x16xf32>
    tpu.vector_store %arg7[%c0_15, %c0_16, %c0_17], %16 {strides = array<i32>} : memref<1x16x16xf32, #tpu.memory_space<vmem>>, vector<1x16x16xf32>,
    return
  }
  func.func @transform_0(%arg0: i32) -> (i32, i32, i32) {
    %c0_i32 = arith.constant 0 : i32
    %c0_i32_0 = arith.constant 0 : i32
    %c0_i32_1 = arith.constant 0 : i32
    return %arg0, %c0_i32, %c0_i32_0 : i32, i32, i32
  }
  func.func @transform_1(%arg0: i32) -> (i32, i32) {
    %c0_i32 = arith.constant 0 : i32
    %c0_i32_0 = arith.constant 0 : i32
    %c0_i32_1 = arith.constant 0 : i32
    return %c0_i32, %c0_i32_0 : i32, i32
  }
  func.func @transform_2(%arg0: i32) -> (i32, i32) {
    %c0_i32 = arith.constant 0 : i32
    %c0_i32_0 = arith.constant 0 : i32
    %c0_i32_1 = arith.constant 0 : i32
    return %c0_i32, %c0_i32_0 : i32, i32
  }
  func.func @transform_3(%arg0: i32) -> (i32, i32, i32) {
    %c0_i32 = arith.constant 0 : i32
    %c0_i32_0 = arith.constant 0 : i32
    %c0_i32_1 = arith.constant 0 : i32
    return %arg0, %c0_i32, %c0_i32_0 : i32, i32, i32
  }
  func.func @transform_4(%arg0: i32) -> (i32, i32) {
    %c0_i32 = arith.constant 0 : i32
    %c0_i32_0 = arith.constant 0 : i32
    %c0_i32_1 = arith.constant 0 : i32
    return %c0_i32, %c0_i32_0 : i32, i32
  }
  func.func @transform_5(%arg0: i32) -> (i32, i32) {
    %c0_i32 = arith.constant 0 : i32
    %c0_i32_0 = arith.constant 0 : i32
    %c0_i32_1 = arith.constant 0 : i32
    return %c0_i32, %c0_i32_0 : i32, i32
  }
  func.func @transform_6(%arg0: i32) -> (i32, i32, i32) {
    %c0_i32 = arith.constant 0 : i32
    %c0_i32_0 = arith.constant 0 : i32
    %c0_i32_1 = arith.constant 0 : i32
    return %arg0, %c0_i32, %c0_i32_0 : i32, i32, i32
  }
}

module attributes {stable_mosaic.version = 11 : i64} {
  func.func @_fuse_concat_kernel(%arg0: i32, %arg1: memref<1x64x16xf32, #tpu.memory_space<vmem>>, %arg2: memref<16x8xf32, #tpu.memory_space<vmem>>, %arg3: memref<1x64x8xf32, #tpu.memory_space<vmem>>, %arg4: memref<8x8xf32, #tpu.memory_space<vmem>>, %arg5: memref<1x64x8xf32, #tpu.memory_space<vmem>>) attributes {dimension_semantics = [#tpu.dimension_semantics<parallel>], iteration_bounds = array<i64: 2>, scalar_prefetch = 0 : i64, scratch_operands = 0 : i64, tpu.core_type = #tpu.core_type<tc>, window_params = [{transform_indices = @transform_0, window_bounds = array<i64: 1, 64, 16>}, {pipeline_mode = #tpu.pipeline_mode<synchronous>, transform_indices = @transform_1, window_bounds = array<i64: 16, 8>}, {transform_indices = @transform_2, window_bounds = array<i64: 1, 64, 8>}, {pipeline_mode = #tpu.pipeline_mode<synchronous>, transform_indices = @transform_3, window_bounds = array<i64: 8, 8>}, {transform_indices = @transform_4, window_bounds = array<i64: 1, 64, 8>}]} {
    %c0 = arith.constant 0 : index
    %c0_0 = arith.constant 0 : index
    %c0_1 = arith.constant 0 : index
    %0 = vector.load %arg1[%c0, %c0_0, %c0_1] : memref<1x64x16xf32, #tpu.memory_space<vmem>>, vector<1x64x16xf32>
    %1 = vector.shape_cast %0 : vector<1x64x16xf32> to vector<64x16xf32>
    %c0_2 = arith.constant 0 : index
    %c0_3 = arith.constant 0 : index
    %2 = vector.load %arg2[%c0_2, %c0_3] : memref<16x8xf32, #tpu.memory_space<vmem>>, vector<16x8xf32>
    %cst = arith.constant dense<0.000000e+00> : vector<64x8xf32>
    %3 = tpu.matmul %1, %2, %cst {dimension_numbers = #tpu.dot_dimension_numbers<[1], [0], [0], [1], [0, 0, 1, 1], [], []>} : vector<64x16xf32>, vector<16x8xf32>, vector<64x8xf32> -> vector<64x8xf32>
    %c0_4 = arith.constant 0 : index
    %c0_5 = arith.constant 0 : index
    %c0_6 = arith.constant 0 : index
    %4 = vector.load %arg3[%c0_4, %c0_5, %c0_6] : memref<1x64x8xf32, #tpu.memory_space<vmem>>, vector<1x64x8xf32>
    %5 = vector.shape_cast %4 : vector<1x64x8xf32> to vector<64x8xf32>
    %c0_7 = arith.constant 0 : index
    %c0_8 = arith.constant 0 : index
    %6 = vector.load %arg4[%c0_7, %c0_8] : memref<8x8xf32, #tpu.memory_space<vmem>>, vector<8x8xf32>
    %cst_9 = arith.constant dense<0.000000e+00> : vector<64x8xf32>
    %7 = tpu.matmul %5, %6, %cst_9 {dimension_numbers = #tpu.dot_dimension_numbers<[1], [0], [0], [1], [0, 0, 1, 1], [], []>} : vector<64x8xf32>, vector<8x8xf32>, vector<64x8xf32> -> vector<64x8xf32>
    %8 = arith.addf %3, %7 : vector<64x8xf32>
    %c0_10 = arith.constant 0 : index
    %c0_11 = arith.constant 0 : index
    %c0_12 = arith.constant 0 : index
    %9 = vector.load %arg5[%c0_10, %c0_11, %c0_12] : memref<1x64x8xf32, #tpu.memory_space<vmem>>, vector<1x64x8xf32>
    %10 = vector.shape_cast %9 : vector<1x64x8xf32> to vector<64x8xf32>
    %11 = vector.shape_cast %8 : vector<64x8xf32> to vector<1x64x8xf32>
    tpu.vector_store %arg5[%c0_10, %c0_11, %c0_12], %11 {strides = array<i32>} : memref<1x64x8xf32, #tpu.memory_space<vmem>>, vector<1x64x8xf32>,
    return
  }
  func.func @transform_0(%arg0: i32) -> (i32, i32, i32) {
    %c0_i32 = arith.constant 0 : i32
    %c0_i32_0 = arith.constant 0 : i32
    %c0_i32_1 = arith.constant 0 : i32
    return %arg0, %c0_i32, %c0_i32_0 : i32, i32, i32
  }
  func.func @transform_1(%arg0: i32) -> (i32, i32) {
    %c0_i32 = arith.constant 0 : i32
    %c0_i32_0 = arith.constant 0 : i32
    %c0_i32_1 = arith.constant 0 : i32
    return %c0_i32, %c0_i32_0 : i32, i32
  }
  func.func @transform_2(%arg0: i32) -> (i32, i32, i32) {
    %c0_i32 = arith.constant 0 : i32
    %c0_i32_0 = arith.constant 0 : i32
    %c0_i32_1 = arith.constant 0 : i32
    return %arg0, %c0_i32, %c0_i32_0 : i32, i32, i32
  }
  func.func @transform_3(%arg0: i32) -> (i32, i32) {
    %c0_i32 = arith.constant 0 : i32
    %c0_i32_0 = arith.constant 0 : i32
    %c0_i32_1 = arith.constant 0 : i32
    return %c0_i32, %c0_i32_0 : i32, i32
  }
  func.func @transform_4(%arg0: i32) -> (i32, i32, i32) {
    %c0_i32 = arith.constant 0 : i32
    %c0_i32_0 = arith.constant 0 : i32
    %c0_i32_1 = arith.constant 0 : i32
    return %arg0, %c0_i32, %c0_i32_0 : i32, i32, i32
  }
}

module attributes {stable_mosaic.version = 11 : i64} {
  func.func @_residual_block_kernel(%arg0: i32, %arg1: memref<1x64x8xf32, #tpu.memory_space<vmem>>, %arg2: memref<8x16xf32, #tpu.memory_space<vmem>>, %arg3: memref<1x16xf32, #tpu.memory_space<vmem>>, %arg4: memref<2x72x8xf32, #tpu.memory_space<vmem>>, %arg5: memref<1x16xf32, #tpu.memory_space<vmem>>, %arg6: memref<16x8xf32, #tpu.memory_space<vmem>>, %arg7: memref<1x64x8xf32, #tpu.memory_space<vmem>>) attributes {dimension_semantics = [#tpu.dimension_semantics<parallel>], iteration_bounds = array<i64: 2>, scalar_prefetch = 0 : i64, scratch_operands = 0 : i64, tpu.core_type = #tpu.core_type<tc>, window_params = [{transform_indices = @transform_0, window_bounds = array<i64: 1, 64, 8>}, {pipeline_mode = #tpu.pipeline_mode<synchronous>, transform_indices = @transform_1, window_bounds = array<i64: 8, 16>}, {pipeline_mode = #tpu.pipeline_mode<synchronous>, transform_indices = @transform_2, window_bounds = array<i64: 1, 16>}, {pipeline_mode = #tpu.pipeline_mode<synchronous>, transform_indices = @transform_3, window_bounds = array<i64: 2, 72, 8>}, {pipeline_mode = #tpu.pipeline_mode<synchronous>, transform_indices = @transform_4, window_bounds = array<i64: 1, 16>}, {pipeline_mode = #tpu.pipeline_mode<synchronous>, transform_indices = @transform_5, window_bounds = array<i64: 16, 8>}, {transform_indices = @transform_6, window_bounds = array<i64: 1, 64, 8>}]} {
    %c0 = arith.constant 0 : index
    %c0_0 = arith.constant 0 : index
    %c0_1 = arith.constant 0 : index
    %0 = vector.load %arg1[%c0, %c0_0, %c0_1] : memref<1x64x8xf32, #tpu.memory_space<vmem>>, vector<1x64x8xf32>
    %1 = vector.shape_cast %0 : vector<1x64x8xf32> to vector<64x8xf32>
    %c0_2 = arith.constant 0 : index
    %c0_3 = arith.constant 0 : index
    %2 = vector.load %arg2[%c0_2, %c0_3] : memref<8x16xf32, #tpu.memory_space<vmem>>, vector<8x16xf32>
    %cst = arith.constant dense<0.000000e+00> : vector<64x16xf32>
    %3 = tpu.matmul %1, %2, %cst {dimension_numbers = #tpu.dot_dimension_numbers<[1], [0], [0], [1], [0, 0, 1, 1], [], []>} : vector<64x8xf32>, vector<8x16xf32>, vector<64x16xf32> -> vector<64x16xf32>
    %c0_4 = arith.constant 0 : index
    %c0_5 = arith.constant 0 : index
    %4 = vector.load %arg3[%c0_4, %c0_5] : memref<1x16xf32, #tpu.memory_space<vmem>>, vector<1x16xf32>
    %5 = vector.broadcast %4 : vector<1x16xf32> to vector<64x16xf32>
    %6 = arith.addf %3, %5 : vector<64x16xf32>
    %cst_6 = arith.constant 0.000000e+00 : f32
    %7 = vector.broadcast %cst_6 : f32 to vector<64x16xf32>
    %8 = arith.cmpf oge, %6, %7 : vector<64x16xf32>
    %cst_7 = arith.constant 2.000000e-01 : f32
    %9 = vector.broadcast %cst_7 : f32 to vector<64x16xf32>
    %10 = arith.mulf %9, %6 : vector<64x16xf32>
    %11 = arith.select %8, %6, %10 : vector<64x16xi1>, vector<64x16xf32>
    %12 = tpu.iota {dimensions = array<i32: 0>} : vector<64x1xi32>
    %c8_i32 = arith.constant 8 : i32
    %c0_i32 = arith.constant 0 : i32
    %13 = arith.cmpi eq, %c8_i32, %c0_i32 : i32
    %c1_i32 = arith.constant 1 : i32
    %14 = arith.select %13, %c1_i32, %c8_i32 : i32
    %15 = vector.broadcast %14 : i32 to vector<64x1xi32>
    %16 = arith.remsi %12, %15 : vector<64x1xi32>
    %c0_i32_8 = arith.constant 0 : i32
    %17 = vector.broadcast %c0_i32_8 : i32 to vector<64x1xi32>
    %18 = arith.cmpi ne, %16, %17 : vector<64x1xi32>
    %c0_i32_9 = arith.constant 0 : i32
    %19 = vector.broadcast %c0_i32_9 : i32 to vector<64x1xi32>
    %20 = arith.cmpi slt, %16, %19 : vector<64x1xi32>
    %c0_i32_10 = arith.constant 0 : i32
    %21 = arith.cmpi slt, %14, %c0_i32_10 : i32
    %22 = vector.broadcast %21 : i1 to vector<64x1xi1>
    %23 = vector.broadcast %22 : vector<64x1xi1> to vector<64x1xi1>
    %24 = arith.xori %20, %23 : vector<64x1xi1>
    %25 = arith.andi %24, %18 : vector<64x1xi1>
    %26 = vector.broadcast %14 : i32 to vector<64x1xi32>
    %27 = arith.addi %16, %26 : vector<64x1xi32>
    %28 = arith.select %25, %27, %16 : vector<64x1xi1>, vector<64x1xi32>
    %29 = vector.extract_strided_slice %11 {offsets = [0, 0], sizes = [64, 8], strides = [1, 1]} : vector<64x16xf32> to vector<64x8xf32>
    %cst_11 = arith.constant 0.000000e+00 : f32
    %30 = vector.broadcast %cst_11 : f32 to vector<9x8xf32>
    %31 = tpu.concatenate %30, %29, %30 in 0 : vector<9x8xf32>, vector<64x8xf32>, vector<9x8xf32> -> vector<82x8xf32>
    %32 = vector.extract_strided_slice %31 {offsets = [0, 0], sizes = [64, 8], strides = [1, 1]} : vector<82x8xf32> to vector<64x8xf32>
    %c-1_i32 = arith.constant -1 : i32
    %33 = vector.broadcast %c-1_i32 : i32 to vector<64x1xi32>
    %34 = arith.addi %28, %33 : vector<64x1xi32>
    %c0_i32_12 = arith.constant 0 : i32
    %35 = vector.broadcast %c0_i32_12 : i32 to vector<64x1xi32>
    %36 = arith.cmpi sge, %34, %35 : vector<64x1xi32>
    %c-1_i32_13 = arith.constant -1 : i32
    %37 = vector.broadcast %c-1_i32_13 : i32 to vector<64x1xi32>
    %38 = arith.addi %28, %37 : vector<64x1xi32>
    %c8_i32_14 = arith.constant 8 : i32
    %39 = vector.broadcast %c8_i32_14 : i32 to vector<64x1xi32>
    %40 = arith.cmpi slt, %38, %39 : vector<64x1xi32>
    %41 = arith.andi %36, %40 : vector<64x1xi1>
    %cst_15 = arith.constant 0.000000e+00 : f32
    %42 = vector.shape_cast %41 : vector<64x1xi1> to vector<64x1xi1>
    %43 = vector.broadcast %42 : vector<64x1xi1> to vector<64x8xi1>
    %44 = vector.broadcast %cst_15 : f32 to vector<64x8xf32>
    %45 = arith.select %43, %32, %44 : vector<64x8xi1>, vector<64x8xf32>
    %46 = vector.extract_strided_slice %31 {offsets = [1, 0], sizes = [64, 8], strides = [1, 1]} : vector<82x8xf32> to vector<64x8xf32>
    %47 = vector.extract_strided_slice %31 {offsets = [2, 0], sizes = [64, 8], strides = [1, 1]} : vector<82x8xf32> to vector<64x8xf32>
    %c1_i32_16 = arith.constant 1 : i32
    %48 = vector.broadcast %c1_i32_16 : i32 to vector<64x1xi32>
    %49 = arith.addi %28, %48 : vector<64x1xi32>
    %c0_i32_17 = arith.constant 0 : i32
    %50 = vector.broadcast %c0_i32_17 : i32 to vector<64x1xi32>
    %51 = arith.cmpi sge, %49, %50 : vector<64x1xi32>
    %c1_i32_18 = arith.constant 1 : i32
    %52 = vector.broadcast %c1_i32_18 : i32 to vector<64x1xi32>
    %53 = arith.addi %28, %52 : vector<64x1xi32>
    %c8_i32_19 = arith.constant 8 : i32
    %54 = vector.broadcast %c8_i32_19 : i32 to vector<64x1xi32>
    %55 = arith.cmpi slt, %53, %54 : vector<64x1xi32>
    %56 = arith.andi %51, %55 : vector<64x1xi1>
    %cst_20 = arith.constant 0.000000e+00 : f32
    %57 = vector.shape_cast %56 : vector<64x1xi1> to vector<64x1xi1>
    %58 = vector.broadcast %57 : vector<64x1xi1> to vector<64x8xi1>
    %59 = vector.broadcast %cst_20 : f32 to vector<64x8xf32>
    %60 = arith.select %58, %47, %59 : vector<64x8xi1>, vector<64x8xf32>
    %61 = vector.extract_strided_slice %31 {offsets = [8, 0], sizes = [64, 8], strides = [1, 1]} : vector<82x8xf32> to vector<64x8xf32>
    %c-1_i32_21 = arith.constant -1 : i32
    %62 = vector.broadcast %c-1_i32_21 : i32 to vector<64x1xi32>
    %63 = arith.addi %28, %62 : vector<64x1xi32>
    %c0_i32_22 = arith.constant 0 : i32
    %64 = vector.broadcast %c0_i32_22 : i32 to vector<64x1xi32>
    %65 = arith.cmpi sge, %63, %64 : vector<64x1xi32>
    %c-1_i32_23 = arith.constant -1 : i32
    %66 = vector.broadcast %c-1_i32_23 : i32 to vector<64x1xi32>
    %67 = arith.addi %28, %66 : vector<64x1xi32>
    %c8_i32_24 = arith.constant 8 : i32
    %68 = vector.broadcast %c8_i32_24 : i32 to vector<64x1xi32>
    %69 = arith.cmpi slt, %67, %68 : vector<64x1xi32>
    %70 = arith.andi %65, %69 : vector<64x1xi1>
    %cst_25 = arith.constant 0.000000e+00 : f32
    %71 = vector.shape_cast %70 : vector<64x1xi1> to vector<64x1xi1>
    %72 = vector.broadcast %71 : vector<64x1xi1> to vector<64x8xi1>
    %73 = vector.broadcast %cst_25 : f32 to vector<64x8xf32>
    %74 = arith.select %72, %61, %73 : vector<64x8xi1>, vector<64x8xf32>
    %75 = vector.extract_strided_slice %31 {offsets = [9, 0], sizes = [64, 8], strides = [1, 1]} : vector<82x8xf32> to vector<64x8xf32>
    %76 = vector.extract_strided_slice %31 {offsets = [10, 0], sizes = [64, 8], strides = [1, 1]} : vector<82x8xf32> to vector<64x8xf32>
    %c1_i32_26 = arith.constant 1 : i32
    %77 = vector.broadcast %c1_i32_26 : i32 to vector<64x1xi32>
    %78 = arith.addi %28, %77 : vector<64x1xi32>
    %c0_i32_27 = arith.constant 0 : i32
    %79 = vector.broadcast %c0_i32_27 : i32 to vector<64x1xi32>
    %80 = arith.cmpi sge, %78, %79 : vector<64x1xi32>
    %c1_i32_28 = arith.constant 1 : i32
    %81 = vector.broadcast %c1_i32_28 : i32 to vector<64x1xi32>
    %82 = arith.addi %28, %81 : vector<64x1xi32>
    %c8_i32_29 = arith.constant 8 : i32
    %83 = vector.broadcast %c8_i32_29 : i32 to vector<64x1xi32>
    %84 = arith.cmpi slt, %82, %83 : vector<64x1xi32>
    %85 = arith.andi %80, %84 : vector<64x1xi1>
    %cst_30 = arith.constant 0.000000e+00 : f32
    %86 = vector.shape_cast %85 : vector<64x1xi1> to vector<64x1xi1>
    %87 = vector.broadcast %86 : vector<64x1xi1> to vector<64x8xi1>
    %88 = vector.broadcast %cst_30 : f32 to vector<64x8xf32>
    %89 = arith.select %87, %76, %88 : vector<64x8xi1>, vector<64x8xf32>
    %90 = vector.extract_strided_slice %31 {offsets = [16, 0], sizes = [64, 8], strides = [1, 1]} : vector<82x8xf32> to vector<64x8xf32>
    %c-1_i32_31 = arith.constant -1 : i32
    %91 = vector.broadcast %c-1_i32_31 : i32 to vector<64x1xi32>
    %92 = arith.addi %28, %91 : vector<64x1xi32>
    %c0_i32_32 = arith.constant 0 : i32
    %93 = vector.broadcast %c0_i32_32 : i32 to vector<64x1xi32>
    %94 = arith.cmpi sge, %92, %93 : vector<64x1xi32>
    %c-1_i32_33 = arith.constant -1 : i32
    %95 = vector.broadcast %c-1_i32_33 : i32 to vector<64x1xi32>
    %96 = arith.addi %28, %95 : vector<64x1xi32>
    %c8_i32_34 = arith.constant 8 : i32
    %97 = vector.broadcast %c8_i32_34 : i32 to vector<64x1xi32>
    %98 = arith.cmpi slt, %96, %97 : vector<64x1xi32>
    %99 = arith.andi %94, %98 : vector<64x1xi1>
    %cst_35 = arith.constant 0.000000e+00 : f32
    %100 = vector.shape_cast %99 : vector<64x1xi1> to vector<64x1xi1>
    %101 = vector.broadcast %100 : vector<64x1xi1> to vector<64x8xi1>
    %102 = vector.broadcast %cst_35 : f32 to vector<64x8xf32>
    %103 = arith.select %101, %90, %102 : vector<64x8xi1>, vector<64x8xf32>
    %104 = vector.extract_strided_slice %31 {offsets = [17, 0], sizes = [64, 8], strides = [1, 1]} : vector<82x8xf32> to vector<64x8xf32>
    %105 = vector.extract_strided_slice %31 {offsets = [18, 0], sizes = [64, 8], strides = [1, 1]} : vector<82x8xf32> to vector<64x8xf32>
    %c1_i32_36 = arith.constant 1 : i32
    %106 = vector.broadcast %c1_i32_36 : i32 to vector<64x1xi32>
    %107 = arith.addi %28, %106 : vector<64x1xi32>
    %c0_i32_37 = arith.constant 0 : i32
    %108 = vector.broadcast %c0_i32_37 : i32 to vector<64x1xi32>
    %109 = arith.cmpi sge, %107, %108 : vector<64x1xi32>
    %c1_i32_38 = arith.constant 1 : i32
    %110 = vector.broadcast %c1_i32_38 : i32 to vector<64x1xi32>
    %111 = arith.addi %28, %110 : vector<64x1xi32>
    %c8_i32_39 = arith.constant 8 : i32
    %112 = vector.broadcast %c8_i32_39 : i32 to vector<64x1xi32>
    %113 = arith.cmpi slt, %111, %112 : vector<64x1xi32>
    %114 = arith.andi %109, %113 : vector<64x1xi1>
    %cst_40 = arith.constant 0.000000e+00 : f32
    %115 = vector.shape_cast %114 : vector<64x1xi1> to vector<64x1xi1>
    %116 = vector.broadcast %115 : vector<64x1xi1> to vector<64x8xi1>
    %117 = vector.broadcast %cst_40 : f32 to vector<64x8xf32>
    %118 = arith.select %116, %105, %117 : vector<64x8xi1>, vector<64x8xf32>
    %119 = tpu.concatenate %45, %46, %60, %74, %75, %89, %103, %104, %118 in 1 : vector<64x8xf32>, vector<64x8xf32>, vector<64x8xf32>, vector<64x8xf32>, vector<64x8xf32>, vector<64x8xf32>, vector<64x8xf32>, vector<64x8xf32>, vector<64x8xf32> -> vector<64x72xf32>
    %c0_41 = arith.constant 0 : index
    %c0_42 = arith.constant 0 : index
    %c0_43 = arith.constant 0 : index
    %120 = vector.load %arg4[%c0_41, %c0_42, %c0_43] : memref<2x72x8xf32, #tpu.memory_space<vmem>>, vector<1x72x8xf32>
    %121 = vector.shape_cast %120 : vector<1x72x8xf32> to vector<72x8xf32>
    %cst_44 = arith.constant dense<0.000000e+00> : vector<64x8xf32>
    %122 = tpu.matmul %119, %121, %cst_44 {dimension_numbers = #tpu.dot_dimension_numbers<[1], [0], [0], [1], [0, 0, 1, 1], [], []>} : vector<64x72xf32>, vector<72x8xf32>, vector<64x8xf32> -> vector<64x8xf32>
    %123 = vector.extract_strided_slice %11 {offsets = [0, 8], sizes = [64, 8], strides = [1, 1]} : vector<64x16xf32> to vector<64x8xf32>
    %cst_45 = arith.constant 0.000000e+00 : f32
    %124 = vector.broadcast %cst_45 : f32 to vector<9x8xf32>
    %125 = tpu.concatenate %124, %123, %124 in 0 : vector<9x8xf32>, vector<64x8xf32>, vector<9x8xf32> -> vector<82x8xf32>
    %126 = vector.extract_strided_slice %125 {offsets = [0, 0], sizes = [64, 8], strides = [1, 1]} : vector<82x8xf32> to vector<64x8xf32>
    %c-1_i32_46 = arith.constant -1 : i32
    %127 = vector.broadcast %c-1_i32_46 : i32 to vector<64x1xi32>
    %128 = arith.addi %28, %127 : vector<64x1xi32>
    %c0_i32_47 = arith.constant 0 : i32
    %129 = vector.broadcast %c0_i32_47 : i32 to vector<64x1xi32>
    %130 = arith.cmpi sge, %128, %129 : vector<64x1xi32>
    %c-1_i32_48 = arith.constant -1 : i32
    %131 = vector.broadcast %c-1_i32_48 : i32 to vector<64x1xi32>
    %132 = arith.addi %28, %131 : vector<64x1xi32>
    %c8_i32_49 = arith.constant 8 : i32
    %133 = vector.broadcast %c8_i32_49 : i32 to vector<64x1xi32>
    %134 = arith.cmpi slt, %132, %133 : vector<64x1xi32>
    %135 = arith.andi %130, %134 : vector<64x1xi1>
    %cst_50 = arith.constant 0.000000e+00 : f32
    %136 = vector.shape_cast %135 : vector<64x1xi1> to vector<64x1xi1>
    %137 = vector.broadcast %136 : vector<64x1xi1> to vector<64x8xi1>
    %138 = vector.broadcast %cst_50 : f32 to vector<64x8xf32>
    %139 = arith.select %137, %126, %138 : vector<64x8xi1>, vector<64x8xf32>
    %140 = vector.extract_strided_slice %125 {offsets = [1, 0], sizes = [64, 8], strides = [1, 1]} : vector<82x8xf32> to vector<64x8xf32>
    %141 = vector.extract_strided_slice %125 {offsets = [2, 0], sizes = [64, 8], strides = [1, 1]} : vector<82x8xf32> to vector<64x8xf32>
    %c1_i32_51 = arith.constant 1 : i32
    %142 = vector.broadcast %c1_i32_51 : i32 to vector<64x1xi32>
    %143 = arith.addi %28, %142 : vector<64x1xi32>
    %c0_i32_52 = arith.constant 0 : i32
    %144 = vector.broadcast %c0_i32_52 : i32 to vector<64x1xi32>
    %145 = arith.cmpi sge, %143, %144 : vector<64x1xi32>
    %c1_i32_53 = arith.constant 1 : i32
    %146 = vector.broadcast %c1_i32_53 : i32 to vector<64x1xi32>
    %147 = arith.addi %28, %146 : vector<64x1xi32>
    %c8_i32_54 = arith.constant 8 : i32
    %148 = vector.broadcast %c8_i32_54 : i32 to vector<64x1xi32>
    %149 = arith.cmpi slt, %147, %148 : vector<64x1xi32>
    %150 = arith.andi %145, %149 : vector<64x1xi1>
    %cst_55 = arith.constant 0.000000e+00 : f32
    %151 = vector.shape_cast %150 : vector<64x1xi1> to vector<64x1xi1>
    %152 = vector.broadcast %151 : vector<64x1xi1> to vector<64x8xi1>
    %153 = vector.broadcast %cst_55 : f32 to vector<64x8xf32>
    %154 = arith.select %152, %141, %153 : vector<64x8xi1>, vector<64x8xf32>
    %155 = vector.extract_strided_slice %125 {offsets = [8, 0], sizes = [64, 8], strides = [1, 1]} : vector<82x8xf32> to vector<64x8xf32>
    %c-1_i32_56 = arith.constant -1 : i32
    %156 = vector.broadcast %c-1_i32_56 : i32 to vector<64x1xi32>
    %157 = arith.addi %28, %156 : vector<64x1xi32>
    %c0_i32_57 = arith.constant 0 : i32
    %158 = vector.broadcast %c0_i32_57 : i32 to vector<64x1xi32>
    %159 = arith.cmpi sge, %157, %158 : vector<64x1xi32>
    %c-1_i32_58 = arith.constant -1 : i32
    %160 = vector.broadcast %c-1_i32_58 : i32 to vector<64x1xi32>
    %161 = arith.addi %28, %160 : vector<64x1xi32>
    %c8_i32_59 = arith.constant 8 : i32
    %162 = vector.broadcast %c8_i32_59 : i32 to vector<64x1xi32>
    %163 = arith.cmpi slt, %161, %162 : vector<64x1xi32>
    %164 = arith.andi %159, %163 : vector<64x1xi1>
    %cst_60 = arith.constant 0.000000e+00 : f32
    %165 = vector.shape_cast %164 : vector<64x1xi1> to vector<64x1xi1>
    %166 = vector.broadcast %165 : vector<64x1xi1> to vector<64x8xi1>
    %167 = vector.broadcast %cst_60 : f32 to vector<64x8xf32>
    %168 = arith.select %166, %155, %167 : vector<64x8xi1>, vector<64x8xf32>
    %169 = vector.extract_strided_slice %125 {offsets = [9, 0], sizes = [64, 8], strides = [1, 1]} : vector<82x8xf32> to vector<64x8xf32>
    %170 = vector.extract_strided_slice %125 {offsets = [10, 0], sizes = [64, 8], strides = [1, 1]} : vector<82x8xf32> to vector<64x8xf32>
    %c1_i32_61 = arith.constant 1 : i32
    %171 = vector.broadcast %c1_i32_61 : i32 to vector<64x1xi32>
    %172 = arith.addi %28, %171 : vector<64x1xi32>
    %c0_i32_62 = arith.constant 0 : i32
    %173 = vector.broadcast %c0_i32_62 : i32 to vector<64x1xi32>
    %174 = arith.cmpi sge, %172, %173 : vector<64x1xi32>
    %c1_i32_63 = arith.constant 1 : i32
    %175 = vector.broadcast %c1_i32_63 : i32 to vector<64x1xi32>
    %176 = arith.addi %28, %175 : vector<64x1xi32>
    %c8_i32_64 = arith.constant 8 : i32
    %177 = vector.broadcast %c8_i32_64 : i32 to vector<64x1xi32>
    %178 = arith.cmpi slt, %176, %177 : vector<64x1xi32>
    %179 = arith.andi %174, %178 : vector<64x1xi1>
    %cst_65 = arith.constant 0.000000e+00 : f32
    %180 = vector.shape_cast %179 : vector<64x1xi1> to vector<64x1xi1>
    %181 = vector.broadcast %180 : vector<64x1xi1> to vector<64x8xi1>
    %182 = vector.broadcast %cst_65 : f32 to vector<64x8xf32>
    %183 = arith.select %181, %170, %182 : vector<64x8xi1>, vector<64x8xf32>
    %184 = vector.extract_strided_slice %125 {offsets = [16, 0], sizes = [64, 8], strides = [1, 1]} : vector<82x8xf32> to vector<64x8xf32>
    %c-1_i32_66 = arith.constant -1 : i32
    %185 = vector.broadcast %c-1_i32_66 : i32 to vector<64x1xi32>
    %186 = arith.addi %28, %185 : vector<64x1xi32>
    %c0_i32_67 = arith.constant 0 : i32
    %187 = vector.broadcast %c0_i32_67 : i32 to vector<64x1xi32>
    %188 = arith.cmpi sge, %186, %187 : vector<64x1xi32>
    %c-1_i32_68 = arith.constant -1 : i32
    %189 = vector.broadcast %c-1_i32_68 : i32 to vector<64x1xi32>
    %190 = arith.addi %28, %189 : vector<64x1xi32>
    %c8_i32_69 = arith.constant 8 : i32
    %191 = vector.broadcast %c8_i32_69 : i32 to vector<64x1xi32>
    %192 = arith.cmpi slt, %190, %191 : vector<64x1xi32>
    %193 = arith.andi %188, %192 : vector<64x1xi1>
    %cst_70 = arith.constant 0.000000e+00 : f32
    %194 = vector.shape_cast %193 : vector<64x1xi1> to vector<64x1xi1>
    %195 = vector.broadcast %194 : vector<64x1xi1> to vector<64x8xi1>
    %196 = vector.broadcast %cst_70 : f32 to vector<64x8xf32>
    %197 = arith.select %195, %184, %196 : vector<64x8xi1>, vector<64x8xf32>
    %198 = vector.extract_strided_slice %125 {offsets = [17, 0], sizes = [64, 8], strides = [1, 1]} : vector<82x8xf32> to vector<64x8xf32>
    %199 = vector.extract_strided_slice %125 {offsets = [18, 0], sizes = [64, 8], strides = [1, 1]} : vector<82x8xf32> to vector<64x8xf32>
    %c1_i32_71 = arith.constant 1 : i32
    %200 = vector.broadcast %c1_i32_71 : i32 to vector<64x1xi32>
    %201 = arith.addi %28, %200 : vector<64x1xi32>
    %c0_i32_72 = arith.constant 0 : i32
    %202 = vector.broadcast %c0_i32_72 : i32 to vector<64x1xi32>
    %203 = arith.cmpi sge, %201, %202 : vector<64x1xi32>
    %c1_i32_73 = arith.constant 1 : i32
    %204 = vector.broadcast %c1_i32_73 : i32 to vector<64x1xi32>
    %205 = arith.addi %28, %204 : vector<64x1xi32>
    %c8_i32_74 = arith.constant 8 : i32
    %206 = vector.broadcast %c8_i32_74 : i32 to vector<64x1xi32>
    %207 = arith.cmpi slt, %205, %206 : vector<64x1xi32>
    %208 = arith.andi %203, %207 : vector<64x1xi1>
    %cst_75 = arith.constant 0.000000e+00 : f32
    %209 = vector.shape_cast %208 : vector<64x1xi1> to vector<64x1xi1>
    %210 = vector.broadcast %209 : vector<64x1xi1> to vector<64x8xi1>
    %211 = vector.broadcast %cst_75 : f32 to vector<64x8xf32>
    %212 = arith.select %210, %199, %211 : vector<64x8xi1>, vector<64x8xf32>
    %213 = tpu.concatenate %139, %140, %154, %168, %169, %183, %197, %198, %212 in 1 : vector<64x8xf32>, vector<64x8xf32>, vector<64x8xf32>, vector<64x8xf32>, vector<64x8xf32>, vector<64x8xf32>, vector<64x8xf32>, vector<64x8xf32>, vector<64x8xf32> -> vector<64x72xf32>
    %c1 = arith.constant 1 : index
    %c0_76 = arith.constant 0 : index
    %c0_77 = arith.constant 0 : index
    %214 = vector.load %arg4[%c1, %c0_76, %c0_77] : memref<2x72x8xf32, #tpu.memory_space<vmem>>, vector<1x72x8xf32>
    %215 = vector.shape_cast %214 : vector<1x72x8xf32> to vector<72x8xf32>
    %cst_78 = arith.constant dense<0.000000e+00> : vector<64x8xf32>
    %216 = tpu.matmul %213, %215, %cst_78 {dimension_numbers = #tpu.dot_dimension_numbers<[1], [0], [0], [1], [0, 0, 1, 1], [], []>} : vector<64x72xf32>, vector<72x8xf32>, vector<64x8xf32> -> vector<64x8xf32>
    %217 = tpu.concatenate %122, %216 in 1 : vector<64x8xf32>, vector<64x8xf32> -> vector<64x16xf32>
    %c0_79 = arith.constant 0 : index
    %c0_80 = arith.constant 0 : index
    %218 = vector.load %arg5[%c0_79, %c0_80] : memref<1x16xf32, #tpu.memory_space<vmem>>, vector<1x16xf32>
    %219 = vector.broadcast %218 : vector<1x16xf32> to vector<64x16xf32>
    %220 = arith.addf %217, %219 : vector<64x16xf32>
    %cst_81 = arith.constant 0.000000e+00 : f32
    %221 = vector.broadcast %cst_81 : f32 to vector<64x16xf32>
    %222 = arith.cmpf oge, %220, %221 : vector<64x16xf32>
    %cst_82 = arith.constant 2.000000e-01 : f32
    %223 = vector.broadcast %cst_82 : f32 to vector<64x16xf32>
    %224 = arith.mulf %223, %220 : vector<64x16xf32>
    %225 = arith.select %222, %220, %224 : vector<64x16xi1>, vector<64x16xf32>
    %c0_83 = arith.constant 0 : index
    %c0_84 = arith.constant 0 : index
    %226 = vector.load %arg6[%c0_83, %c0_84] : memref<16x8xf32, #tpu.memory_space<vmem>>, vector<16x8xf32>
    %cst_85 = arith.constant dense<0.000000e+00> : vector<64x8xf32>
    %227 = tpu.matmul %225, %226, %cst_85 {dimension_numbers = #tpu.dot_dimension_numbers<[1], [0], [0], [1], [0, 0, 1, 1], [], []>} : vector<64x16xf32>, vector<16x8xf32>, vector<64x8xf32> -> vector<64x8xf32>
    %228 = arith.addf %1, %227 : vector<64x8xf32>
    %c0_86 = arith.constant 0 : index
    %c0_87 = arith.constant 0 : index
    %c0_88 = arith.constant 0 : index
    %229 = vector.load %arg7[%c0_86, %c0_87, %c0_88] : memref<1x64x8xf32, #tpu.memory_space<vmem>>, vector<1x64x8xf32>
    %230 = vector.shape_cast %229 : vector<1x64x8xf32> to vector<64x8xf32>
    %231 = vector.shape_cast %228 : vector<64x8xf32> to vector<1x64x8xf32>
    tpu.vector_store %arg7[%c0_86, %c0_87, %c0_88], %231 {strides = array<i32>} : memref<1x64x8xf32, #tpu.memory_space<vmem>>, vector<1x64x8xf32>,
    return
  }
  func.func @transform_0(%arg0: i32) -> (i32, i32, i32) {
    %c0_i32 = arith.constant 0 : i32
    %c0_i32_0 = arith.constant 0 : i32
    %c0_i32_1 = arith.constant 0 : i32
    return %arg0, %c0_i32, %c0_i32_0 : i32, i32, i32
  }
  func.func @transform_1(%arg0: i32) -> (i32, i32) {
    %c0_i32 = arith.constant 0 : i32
    %c0_i32_0 = arith.constant 0 : i32
    %c0_i32_1 = arith.constant 0 : i32
    return %c0_i32, %c0_i32_0 : i32, i32
  }
  func.func @transform_2(%arg0: i32) -> (i32, i32) {
    %c0_i32 = arith.constant 0 : i32
    %c0_i32_0 = arith.constant 0 : i32
    %c0_i32_1 = arith.constant 0 : i32
    return %c0_i32, %c0_i32_0 : i32, i32
  }
  func.func @transform_3(%arg0: i32) -> (i32, i32, i32) {
    %c0_i32 = arith.constant 0 : i32
    %c0_i32_0 = arith.constant 0 : i32
    %c0_i32_1 = arith.constant 0 : i32
    %c0_i32_2 = arith.constant 0 : i32
    return %c0_i32, %c0_i32_0, %c0_i32_1 : i32, i32, i32
  }
  func.func @transform_4(%arg0: i32) -> (i32, i32) {
    %c0_i32 = arith.constant 0 : i32
    %c0_i32_0 = arith.constant 0 : i32
    %c0_i32_1 = arith.constant 0 : i32
    return %c0_i32, %c0_i32_0 : i32, i32
  }
  func.func @transform_5(%arg0: i32) -> (i32, i32) {
    %c0_i32 = arith.constant 0 : i32
    %c0_i32_0 = arith.constant 0 : i32
    %c0_i32_1 = arith.constant 0 : i32
    return %c0_i32, %c0_i32_0 : i32, i32
  }
  func.func @transform_6(%arg0: i32) -> (i32, i32, i32) {
    %c0_i32 = arith.constant 0 : i32
    %c0_i32_0 = arith.constant 0 : i32
    %c0_i32_1 = arith.constant 0 : i32
    return %arg0, %c0_i32, %c0_i32_0 : i32, i32, i32
  }
}

module attributes {stable_mosaic.version = 11 : i64} {
  func.func @_matmul_kernel(%arg0: i32, %arg1: memref<1x64x8xf32, #tpu.memory_space<vmem>>, %arg2: memref<8x3xf32, #tpu.memory_space<vmem>>, %arg3: memref<1x64x3xf32, #tpu.memory_space<vmem>>) attributes {dimension_semantics = [#tpu.dimension_semantics<parallel>], iteration_bounds = array<i64: 2>, scalar_prefetch = 0 : i64, scratch_operands = 0 : i64, tpu.core_type = #tpu.core_type<tc>, window_params = [{transform_indices = @transform_0, window_bounds = array<i64: 1, 64, 8>}, {pipeline_mode = #tpu.pipeline_mode<synchronous>, transform_indices = @transform_1, window_bounds = array<i64: 8, 3>}, {transform_indices = @transform_2, window_bounds = array<i64: 1, 64, 3>}]} {
    %c0 = arith.constant 0 : index
    %c0_0 = arith.constant 0 : index
    %c0_1 = arith.constant 0 : index
    %0 = vector.load %arg1[%c0, %c0_0, %c0_1] : memref<1x64x8xf32, #tpu.memory_space<vmem>>, vector<1x64x8xf32>
    %1 = vector.shape_cast %0 : vector<1x64x8xf32> to vector<64x8xf32>
    %c0_2 = arith.constant 0 : index
    %c0_3 = arith.constant 0 : index
    %2 = vector.load %arg2[%c0_2, %c0_3] : memref<8x3xf32, #tpu.memory_space<vmem>>, vector<8x3xf32>
    %cst = arith.constant dense<0.000000e+00> : vector<64x3xf32>
    %3 = tpu.matmul %1, %2, %cst {dimension_numbers = #tpu.dot_dimension_numbers<[1], [0], [0], [1], [0, 0, 1, 1], [], []>} : vector<64x8xf32>, vector<8x3xf32>, vector<64x3xf32> -> vector<64x3xf32>
    %c0_4 = arith.constant 0 : index
    %c0_5 = arith.constant 0 : index
    %c0_6 = arith.constant 0 : index
    %4 = vector.load %arg3[%c0_4, %c0_5, %c0_6] : memref<1x64x3xf32, #tpu.memory_space<vmem>>, vector<1x64x3xf32>
    %5 = vector.shape_cast %4 : vector<1x64x3xf32> to vector<64x3xf32>
    %6 = vector.shape_cast %3 : vector<64x3xf32> to vector<1x64x3xf32>
    tpu.vector_store %arg3[%c0_4, %c0_5, %c0_6], %6 {strides = array<i32>} : memref<1x64x3xf32, #tpu.memory_space<vmem>>, vector<1x64x3xf32>,
    return
  }
  func.func @transform_0(%arg0: i32) -> (i32, i32, i32) {
    %c0_i32 = arith.constant 0 : i32
    %c0_i32_0 = arith.constant 0 : i32
    %c0_i32_1 = arith.constant 0 : i32
    return %arg0, %c0_i32, %c0_i32_0 : i32, i32, i32
  }
  func.func @transform_1(%arg0: i32) -> (i32, i32) {
    %c0_i32 = arith.constant 0 : i32
    %c0_i32_0 = arith.constant 0 : i32
    %c0_i32_1 = arith.constant 0 : i32
    return %c0_i32, %c0_i32_0 : i32, i32
  }
  func.func @transform_2(%arg0: i32) -> (i32, i32, i32) {
    %c0_i32 = arith.constant 0 : i32
    %c0_i32_0 = arith.constant 0 : i32
    %c0_i32_1 = arith.constant 0 : i32
    return %arg0, %c0_i32, %c0_i32_0 : i32, i32, i32
  }
}

</mosaic_0001>

<bundles_post_ra>
// kernel: _lambda_.6
= control target key start
LH: loop header
LB: loop body
LE: loop exit
PB: predicated region body
PF: predicated region fallthrough
CT: control target
= control target key end

     0   :  { %11 = vsyncpa [#allocation3], 0  ;;  %s1526_s0 = inlined_call_operand.vmem [shape: f32[2,16,16], index: 0, kind: input, shape index: {}]   ;;  %s1527_s1 = inlined_call_operand.hbm [shape: f32[16,32], index: 1, kind: input, shape index: {}]   ;;  %s1528_s2 = inlined_call_operand.vmem [shape: f32[1,32], index: 2, kind: input, shape index: {}, may-alias: {2,4}]   ;;  %s1529_s3 = inlined_call_operand.hbm [shape: f32[2,144,16], index: 3, kind: input, shape index: {}]   ;;  %s1530_s4 = inlined_call_operand.vmem [shape: f32[1,32], index: 4, kind: input, shape index: {}, may-alias: {2,4}]   ;;  %s1531_s5 = inlined_call_operand.hbm [shape: f32[32,16], index: 5, kind: input, shape index: {}]   ;;  %s1532_s6 = inlined_call_operand.vmem [shape: f32[2,16,16], index: 6, kind: output, shape index: {}]  }
   0x1   :  { %12 = vsyncpa [#allocation5], 0  ;;  %s1215_s21 = smov 0  }
   0x2 LB: > { %s1221_s22 = sadd.s32 4294967295, %s1165_s21   ;;  %p945_p0 = scmp.ge.s32.totalorder %s1165_s21, 1  ;;  %s1165_s21 = sphi %s1215_s21, %s18_s21  }
   0x3   : > { %p180_p1 = scmp.lt.s32.totalorder %s1165_s21, 3  ;;  %p992_p2 = scmp.eq.s32.totalorder %s1221_s22, 0 }
   0x4   : > { %s208_s25 = sshll.u32 %s1529_s3, 4  ;;  %s191_s29 = sshll.u32 %s1527_s1, 4  ;;  %s209_s25 = int_to_ptr.hbm [resolvable:$true] %s208_s25  ;;  %s192_s29 = int_to_ptr.hbm [resolvable:$true] %s191_s29 }
   0x5   : > { %p1229_p3 = pnand %p945_p0, %p180_p1  ;;  %s1167_s30 = smov [#allocation4]  }
   0x6   : > { %s210_s7 = sshll.u32 %s1167_s30, 4  ;;  %s1168_s8 = smov [#allocation2]   ;;  %s211_s7 = int_to_ptr.vmem [resolvable:$true] %s210_s7 }
   0x7   : > { %p982_p4 = pneg %p1229_p3  ;;  %s193_s9 = sshll.u32 %s1168_s8, 4  ;;  %s194_s9 = int_to_ptr.vmem [resolvable:$true] %s193_s9 }
   0x8   : > { %s225_s12 = sshll.u32 %s1531_s5, 4  ;;  %s1169_s13 = smov 128   ;;  %s226_s12 = int_to_ptr.hbm [resolvable:$true] %s225_s12 }
   0x9   : > { %p983_p5 = pnand %p992_p2, %p982_p4  ;;  %s1170_s14 = smov 8  }
   0xa   : > { %s1171_s15 = smov [#allocation6]   ;;  %251 = sbr.rel (%p1229_p3) target bundleno = 811 (0x32b), region = 44 }
   0xb   : > { %988 = dma.hbm_to_vmem [thread:$0]  (!%p983_p5), %s209_s25, 4608, %s211_s7, [#allocation5], %s1169_s13, %s1169_s13, %s1170_s14  }
   0xc   : > { %985 = dma.hbm_to_vmem [thread:$0]  (!%p983_p5), %s192_s29, 256, %s194_s9, [#allocation3], %s1169_s13, %s1169_s13, %s1170_s14  }
   0xd   : > { %s227_s16 = sshll.u32 %s1171_s15, 4  ;;  %s228_s16 = int_to_ptr.vmem [resolvable:$true] %s227_s16 }
   0xe   : > { %991 = dma.hbm_to_vmem [thread:$0]  (!%p983_p5), %s226_s12, 512, %s228_s16, [#allocation5], %s1169_s13, %s1169_s13, %s1170_s14  }
   0xf   : > { %1156 = dma.done.wait (%p992_p2), [#allocation3], 256  }
  0x10   : > { %1158 = vsyncadd (%p992_p2), [#allocation3], 4294967040 }
  0x11   : > { %1160 = dma.done.wait (%p992_p2), [#allocation5], 5120  }
  0x12   : > { %1162 = vsyncadd (%p992_p2), [#allocation5], 4294962176  ;;  %p292_p6 = scmp.lt.s32.totalorder %s1221_s22, 1  ;;  %v305_v0 = vld [vmem:[#allocation2 + $0x8] sm:$0xff]  ;;  %v304_v1 = vld [vmem:[#allocation2] sm:$0xff]  ;;  %vm310_vm0 = vcmask 130048   ;;  %v346_v7 = vlaneseq }
  0x13   : > { %331 = vmatpush.msra.mxu0 %v305_v0  ;;  %v551_v4 = vld [vmem:[#allocation4 + $0x88] sm:$0xff]  ;;  %v550_v5 = vld [vmem:[#allocation4 + $0x80] sm:$0xff]  ;;  %v1059_v6 = vld [vmem:[%s1528_s2] ss:$0 sm:$0xff]  ;;  %s1172_s25 = smov 112   ;;  %vm375_vm2 = vcmask 1044480  }
  0x14   : > { %s1535_s22 = smov (!%p292_p6, %s1221_s22), 1  ;;  %595 = vmatpush.msra.mxu2 %v551_v4  ;;  %v347_v10 = vshrl.u32 %v346_v7, 7  ;;  %vm412_vm4 = vcmask 1045504   ;;  %v1173_v26 = vmov 0.0   ;;  %vm478_vm8 = vcmask 1042432   ;;  %v745_v7 = vld [vmem:[#allocation4 + $0x118] sm:$0xff] }
  0x15   : > { %s968_s17 = sshll.u32 %s1535_s22, 4  ;;  %332 = vmatpush.msra.mxu0 %v304_v1  ;;  %v1286_v27 = vrot.slane %v1173_v26, 2  ;;  %vm450_vm9 = vcmask 1046528   ;;  %vm432_vm10 = vcmask 1041408   ;;  %vm422_vm12 = vcmask 1043456   ;;  %s1174_s26 = smov 64  }
  0x16   : > { %s296_s20 = scalar_lea.vmem %s1526_s0, %s968_s17  ;;  %596 = vmatpush.msra.mxu2 %v550_v5  ;;  %v348_v12 = vadd.s32 8, %v347_v10  ;;  %v353_v14 = vand.u32 3, %v347_v10  ;;  %v1321_v46 = vrot.slane %v1173_v26, 1  ;;  %s1175_s27 = smov 16   ;;  %vm516_vm13 = vcmask 261120  }
  0x17   : > { %v1263_v2 = vld [vmem:[%s296_s20] sm:$0xff]  ;;  %v1267_v3 = vld [vmem:[%s296_s20 + $0x8] sm:$0xff]  ;;  %789 = vmatpush.msrb.mxu0 %v745_v7  ;;  %s1176_s28 = smov 32   ;;  %s1177_s29 = smov 80   ;;  %vm519_vm14 = vcmask 392192   ;;  %vm522_vm15 = vcmask 523264  }
  0x18   : > { %958 = vmatmul.msk.f32.vlgmr.msra.gmra.mxu0 %vm310_vm0, %v1263_v2  ;;  %v360_v16 = vand.u32 3, %v348_v12  ;;  %v1275_v19 = vadd.s32 4294967295, %v353_v14  ;;  %v1277_v20 = vadd.s32 1, %v353_v14  ;;  %s1178_s30 = smov 48   ;;  %s1179_s7 = smov 96  }
  0x19   : > { %s301_s12 = scalar_lea.vmem %s1532_s6, %s968_s17 }
  0x1a   : > { %v1279_v21 = vadd.s32 1, %v360_v16  ;;  %v1281_v23 = vadd.s32 4294967295, %v360_v16  ;;  %vm386_vm5 = vcmp.ge.s32.totalorder %v1275_v19, 0  ;;  %vm402_vm6 = vcmp.lt.s32.totalorder %v1277_v20, 4  ;;  %v738_v20 = vld [vmem:[#allocation4 + $0xe0] sm:$0xff] }
  0x1c   : > { %vm403_vm7 = vcmp.lt.s32.totalorder %v1279_v21, 4  ;;  %vm387_vm11 = vcmp.ge.s32.totalorder %v1281_v23, 0  ;;  %v734_v21 = vld [vmem:[#allocation4 + $0xc0] sm:$0xff] }
  0x20   : > { %959 = vmatmul.msk.f32.gmra.mxu0 %vm310_vm0, %v1267_v3 }
  0x95   : > { %v334_v8 = vpop.f32.mrf.mxu0 }
  0x96   : > { %v335_v9 = vadd.f32 %v1059_v6, %v334_v8  ;;  %v744_v8 = vld [vmem:[#allocation4 + $0x110] sm:$0xff] }
  0x97   : > { %790 = vmatpush.msrb.mxu0 %v744_v8 }
  0x98   : > { %vm340_vm1 = vcmp.ge.f32.partialorder %v335_v9, 0.0  ;;  %v342_v11 = vmul.f32 0.2, %v335_v9 }
  0x9a   : > { %v344_v13 = vsel %vm340_vm1, %v335_v9, %v342_v11  ;;  %vm525_vm1 = vcmask 654336  }
  0x9b   : > { %v376_v15 = vrot.slane %v344_v13, 3 }
  0x9d   : > { %v337_v17 = vpop.f32.mrf.mxu0  ;;  %604 = vrot.lane.b32.xlu0 %v376_v15, %s1172_s25  ;;  %v1284_v24 = vsel %vm375_vm2, 0.0, %v376_v15 }
  0x9e   : > { %v338_v18 = vadd.f32 %v1059_v6, %v337_v17  ;;  %v451_v31 = vrot.slane %v1284_v24, 1  ;;  %v423_v32 = vrot.slane %v1284_v24, 4  ;;  %v479_v44 = vrot.slane %v1284_v24, 5 }
  0x9f   : > { %v413_v48 = vrot.slane %v1284_v24, 2  ;;  %v433_v59 = vrot.slane %v1284_v24, 6 }
  0xa0   : > { %vm341_vm3 = vcmp.ge.f32.partialorder %v338_v18, 0.0  ;;  %v343_v22 = vmul.f32 0.2, %v338_v18 }
  0xa2   : > { %v345_v25 = vsel %vm341_vm3, %v338_v18, %v343_v22  ;;  %vm531_vm3 = vcmask 916480  }
  0xa3   : > { %v377_v28 = vrot.slane %v345_v25, 3 }
  0xa5   : > { %608 = vrot.lane.b32.xlu1 %v377_v28, %s1172_s25  ;;  %v1294_v29 = vsel %vm375_vm2, %v376_v15, %v377_v28  ;;  %v1297_v30 = vsel %vm375_vm2, %v377_v28, 0.0 }
  0xa6   : > { %606 = vrot.lane.b32.xlu0 %v1294_v29, %s1172_s25  ;;  %v414_v33 = vrot.slane %v1294_v29, 2  ;;  %v416_v34 = vrot.slane %v1297_v30, 2  ;;  %v452_v35 = vrot.slane %v1294_v29, 1  ;;  %v454_v36 = vrot.slane %v1297_v30, 1 }
  0xa7   : > { %v424_v37 = vrot.slane %v1294_v29, 4  ;;  %v426_v38 = vrot.slane %v1297_v30, 4  ;;  %v480_v39 = vrot.slane %v1294_v29, 5  ;;  %v482_v40 = vrot.slane %v1297_v30, 5 }
  0xa8   : > { %v417_v41 = vsel %vm412_vm4, %v414_v33, %v416_v34  ;;  %v1313_v42 = vsel %vm450_vm9, %v451_v31, %v452_v35  ;;  %v1316_v43 = vsel %vm450_vm9, %v452_v35, %v454_v36  ;;  %v415_v58 = vsel %vm412_vm4, %v413_v48, %v414_v33 }
  0xa9   : > { %v448_v45 = vsel %vm402_vm6, %v417_v41, 0.0  ;;  %v1039_v47 = vpack.i.bf16 %v1316_v43, %v1313_v42  ;;  %v425_v49 = vsel %vm422_vm12, %v423_v32, %v424_v37  ;;  %v427_v50 = vsel %vm422_vm12, %v424_v37, %v426_v38 }
  0xaa   : > { %960 = vmatmul.msk.f32.vlgmr.msra.gmra.mxu2 %vm310_vm0, %v448_v45  ;;  %v1330_v51 = vsel %vm478_vm8, %v479_v44, %v480_v39  ;;  %v1333_v52 = vsel %vm478_vm8, %v480_v39, %v482_v40  ;;  %v1337_v53 = vsel %vm403_vm7, %v417_v41, 0.0  ;;  %v1341_v54 = vsel %vm386_vm5, %v425_v49, 0.0 }
  0xab   : > { %v1345_v55 = vsel %vm387_vm11, %v427_v50, 0.0  ;;  %v1054_v56 = vpack.i.bf16 %v1333_v52, %v1330_v51  ;;  %v434_v60 = vrot.slane %v1294_v29, 6  ;;  %v1356_v61 = vsel %vm402_vm6, %v415_v58, 0.0  ;;  %v743_v52 = vld [vmem:[#allocation4 + $0x108] sm:$0xff] }
  0xac   : > { %v1049_v57 = vpack.i.bf16 %v1345_v55, %v1341_v54  ;;  %v1360_v62 = vsel %vm450_vm9, %v454_v36, %v1321_v46  ;;  %v436_v63 = vrot.slane %v1297_v30, 6  ;;  %v446_v0 = vsel %vm412_vm4, %v416_v34, %v1286_v27  ;;  %752 = vmatpush.msra.mxu3 %v743_v52  ;;  %v739_v54 = vld [vmem:[#allocation4 + $0xe8] sm:$0xff]  ;;  %v737_v55 = vld [vmem:[#allocation4 + $0xd8] sm:$0xff] }
  0xad   : > { %v1044_v1 = vpack.i.bf16 %v1337_v53, %v1356_v61  ;;  %v1368_v4 = vsel %vm432_vm10, %v433_v59, %v434_v60  ;;  %v449_v6 = vsel %vm403_vm7, %v446_v0, 0.0  ;;  %v443_v42 = vsel %vm387_vm11, %v1297_v30, 0.0  ;;  %v742_v53 = vld [vmem:[#allocation4 + $0x100] sm:$0xff]  ;;  %v741_v30 = vld [vmem:[#allocation4 + $0xf8] sm:$0xff] }
  0xae   : > { %v1371_v5 = vsel %vm432_vm10, %v434_v60, %v436_v63  ;;  %753 = vmatpush.msra.mxu3 %v742_v53  ;;  %v733_v61 = vld [vmem:[#allocation4 + $0xb8] sm:$0xff]  ;;  %v397_v19 = vsel %vm387_vm11, %v1294_v29, 0.0 }
  0xaf   : > { %v441_v51 = vsel %vm403_vm7, %v1371_v5, 0.0  ;;  %v729_v5 = vld [vmem:[#allocation4 + $0x98] sm:$0xff] }
  0xb0   : > { %754 = vmatpush.msra.mxu3 %v741_v30 }
  0xb2   : > { %961 = vmatmul.msk.f32.gmra.mxu2 %vm310_vm0, %v449_v6 }
 0x10f   : > { %v605_v9 = vpop.permute.xlu0 %604 }
 0x110   : > { %v1377_v10 = vsel %vm375_vm2, 0.0, %v605_v9 }
 0x111   : > { %v679_v14 = vrot.slane %v1377_v10, 5  ;;  %v619_v18 = vrot.slane %v1377_v10, 2  ;;  %v652_v25 = vrot.slane %v1377_v10, 1  ;;  %v628_v45 = vrot.slane %v1377_v10, 4 }
 0x112   : > { %v637_v63 = vrot.slane %v1377_v10, 6 }
 0x117   : > { %v609_v11 = vpop.permute.xlu1 %608 }
 0x118   : > { %v614_v12 = vsel %vm375_vm2, %v609_v11, 0.0  ;;  %v1380_v13 = vpop.permute.xlu0 %606  ;;  %vm528_vm2 = vcmask 785408  }
 0x119   : > { %v620_v15 = vrot.slane %v1380_v13, 2  ;;  %v622_v16 = vrot.slane %v614_v12, 2  ;;  %v680_v17 = vrot.slane %v1380_v13, 5  ;;  %v682_v22 = vrot.slane %v614_v12, 5 }
 0x11a   : > { %v653_v26 = vrot.slane %v1380_v13, 1  ;;  %v655_v28 = vrot.slane %v614_v12, 1  ;;  %v631_v31 = vrot.slane %v614_v12, 4  ;;  %v629_v49 = vrot.slane %v1380_v13, 4 }
 0x11b   : > { %v623_v32 = vsel %vm412_vm4, %v620_v15, %v622_v16  ;;  %v681_v33 = vsel %vm478_vm8, %v679_v14, %v680_v17  ;;  %v621_v34 = vsel %vm412_vm4, %v619_v18, %v620_v15  ;;  %v683_v36 = vsel %vm478_vm8, %v680_v17, %v682_v22  ;;  %v728_v22 = vld [vmem:[#allocation4 + $0x90] sm:$0xff] }
 0x11c   : > { %v650_v35 = vsel %vm402_vm6, %v623_v32, 0.0  ;;  %v654_v37 = vsel %vm450_vm9, %v652_v25, %v653_v26  ;;  %v656_v38 = vsel %vm450_vm9, %v653_v26, %v655_v28  ;;  %v1024_v39 = vpack.i.bf16 %v683_v36, %v681_v33  ;;  %v548_v25 = vld [vmem:[#allocation4 + $0x70] sm:$0xff]  ;;  %v547_v26 = vld [vmem:[#allocation4 + $0x68] sm:$0xff]  ;;  %v542_v36 = vld [vmem:[#allocation4 + $0x40] sm:$0xff] }
 0x11d   : > { %962 = vmatmul.msk.f32.vlgmr.msrb.gmra.mxu0 %vm310_vm0, %v650_v35  ;;  %v1019_v40 = vpack.i.bf16 %v656_v38, %v654_v37  ;;  %v626_v41 = vsel %vm402_vm6, %v621_v34, 0.0  ;;  %v627_v44 = vsel %vm403_vm7, %v623_v32, 0.0  ;;  %v638_v50 = vrot.slane %v1380_v13, 6  ;;  %v545_v32 = vld [vmem:[#allocation4 + $0x58] sm:$0xff]  ;;  %v544_v33 = vld [vmem:[#allocation4 + $0x50] sm:$0xff]  ;;  %v543_v34 = vld [vmem:[#allocation4 + $0x48] sm:$0xff] }
 0x11e   : > { %v1029_v48 = vpack.i.bf16 %v627_v44, %v626_v41  ;;  %1025 = vrot.lane.b32.xlu0 %v1024_v39, %s1174_s26  ;;  %v630_v58 = vsel %vm422_vm12, %v628_v45, %v629_v49  ;;  %v632_v59 = vsel %vm422_vm12, %v629_v49, %v631_v31  ;;  %v648_v60 = vsel %vm412_vm4, %v622_v16, %v1286_v27  ;;  %v546_v31 = vld [vmem:[#allocation4 + $0x60] sm:$0xff]  ;;  %v541_v37 = vld [vmem:[#allocation4 + $0x38] sm:$0xff]  ;;  %v539_v44 = vld [vmem:[#allocation4 + $0x28] sm:$0xff] }
 0x11f   : > { %1020 = vrot.lane.b32.xlu1 %v1019_v40, %s1175_s27  ;;  %v639_v0 = vsel %vm432_vm10, %v637_v63, %v638_v50  ;;  %v635_v6 = vsel %vm386_vm5, %v630_v58, 0.0  ;;  %v636_v7 = vsel %vm387_vm11, %v632_v59, 0.0  ;;  %v651_v8 = vsel %vm403_vm7, %v648_v60, 0.0 }
 0x120   : > { %1030 = vrot.lane.b32.xlu2 %v1029_v48, %s1176_s28  ;;  %v644_v9 = vsel %vm402_vm6, %v639_v0, 0.0  ;;  %v1034_v11 = vpack.i.bf16 %v636_v7, %v635_v6  ;;  %v640_v27 = vrot.slane %v614_v12, 6  ;;  %v706_v15 = vsel %vm450_vm9, %v655_v28, %v1321_v46  ;;  %v538_v0 = vld [vmem:[#allocation4 + $0x20] sm:$0xff]  ;;  %v537_v6 = vld [vmem:[#allocation4 + $0x18] sm:$0xff] }
 0x121   : > { %v646_v17 = vsel %vm386_vm5, %v1380_v13, 0.0  ;;  %v647_v46 = vsel %vm387_vm11, %v614_v12, 0.0  ;;  %v442_v18 = vsel %vm386_vm5, %v1294_v29, 0.0  ;;  %v549_v12 = vld [vmem:[#allocation4 + $0x78] sm:$0xff]  ;;  %v615_v48 = vsel %vm386_vm5, %v1377_v10, 0.0 }
 0x122   : > { %v641_v14 = vsel %vm432_vm10, %v638_v50, %v640_v27  ;;  %558 = vmatpush.msra.mxu1 %v549_v12  ;;  %v616_v10 = vsel %vm387_vm11, %v1380_v13, 0.0 }
 0x123   : > { %v645_v16 = vsel %vm403_vm7, %v641_v14, 0.0 }
 0x124   : > { %559 = vmatpush.msra.mxu1 %v548_v25 }
 0x125   : > { %963 = vmatmul.msk.f32.gmra.mxu0 %vm310_vm0, %v651_v8 }
 0x126   : > { %707 = vrot.lane.b32.xlu0 %v656_v38, %s1172_s25  ;;  %560 = vmatpush.msra.mxu1 %v547_v26  ;;  %v540_v38 = vld [vmem:[#allocation4 + $0x30] sm:$0xff] }
 0x127   : > { %692 = vrot.lane.b32.xlu1 %v644_v9, %s1177_s29  ;;  %v536_v9 = vld [vmem:[#allocation4 + $0x10] sm:$0xff] }
 0x128   : > { %1035 = vrot.lane.b32.xlu2 %v1034_v11, %s1178_s30  ;;  %561 = vmatpush.msra.mxu1 %v546_v31 }
 0x12a   : > { %562 = vmatpush.msra.mxu1 %v545_v32 }
 0x12c   : > { %563 = vmatpush.msra.mxu1 %v544_v33 }
 0x12e   : > { %709 = vrot.lane.b32.xlu0 %v706_v15, %s1172_s25  ;;  %564 = vmatpush.msra.mxu1 %v543_v34 }
 0x12f   : > { %694 = vrot.lane.b32.xlu1 %v645_v16, %s1177_s29 }
 0x130   : > { %700 = vrot.lane.b32.xlu2 %v646_v17, %s1179_s7  ;;  %565 = vmatpush.msra.mxu1 %v542_v36  ;;  %v535_v17 = vld [vmem:[#allocation4 + $0x8] sm:$0xff] }
 0x132   : > { %566 = vmatpush.msra.mxu1 %v541_v37 }
 0x134   : > { %567 = vmatpush.msra.mxu1 %v540_v38 }
 0x136   : > { %1050 = vrot.lane.b32.xlu0 %v1049_v57, %s1178_s30  ;;  %v735_v57 = vld [vmem:[#allocation4 + $0xc8] sm:$0xff]  ;;  %568 = vmatpush.msra.mxu1 %v539_v44 }
 0x137   : > { %1040 = vrot.lane.b32.xlu1 %v1039_v47, %s1175_s27  ;;  %v440_v47 = vsel %vm402_vm6, %v1368_v4, 0.0  ;;  %v730_v4 = vld [vmem:[#allocation4 + $0xa0] sm:$0xff] }
 0x138   : > { %702 = vrot.lane.b32.xlu2 %v647_v46, %s1179_s7  ;;  %569 = vmatpush.msra.mxu1 %v538_v0 }
 0x13a   : > { %570 = vmatpush.msra.mxu1 %v537_v6  ;;  %v823_v6 = vld [vmem:[#allocation6 + $0x18] sm:$0xff] }
 0x13b   : > { %842 = vmatpush.msrb.mxu2 %v823_v6 }
 0x13c   : > { %571 = vmatpush.msra.mxu1 %v536_v9  ;;  %v822_v9 = vld [vmem:[#allocation6 + $0x10] sm:$0xff] }
 0x13d   : > { %843 = vmatpush.msrb.mxu2 %v822_v9 }
 0x13e   : > { %500 = vrot.lane.b32.xlu0 %v442_v18, %s1179_s7  ;;  %572 = vmatpush.msra.mxu1 %v535_v17 }
 0x13f   : > { %1055 = vrot.lane.b32.xlu1 %v1054_v56, %s1174_s26  ;;  %v736_v56 = vld [vmem:[#allocation4 + $0xd0] sm:$0xff] }
 0x140   : > { %1045 = vrot.lane.b32.xlu2 %v1044_v1, %s1176_s28  ;;  %v731_v1 = vld [vmem:[#allocation4 + $0xa8] sm:$0xff] }
 0x146   : > { %502 = vrot.lane.b32.xlu0 %v443_v42, %s1179_s7 }
 0x147   : > { %508 = vrot.lane.b32.xlu1 %v1316_v43, %s1172_s25  ;;  %v740_v43 = vld [vmem:[#allocation4 + $0xf0] sm:$0xff] }
 0x148   : > { %492 = vrot.lane.b32.xlu2 %v440_v47, %s1177_s29  ;;  %755 = vmatpush.msra.mxu3 %v740_v43  ;;  %v534_v47 = vld [vmem:[#allocation4] sm:$0xff] }
 0x149   : > { %573 = vmatpush.msra.mxu1 %v534_v47 }
 0x14a   : > { %756 = vmatpush.msra.mxu3 %v739_v54 }
 0x14c   : > { %757 = vmatpush.msra.mxu3 %v738_v20 }
 0x14e   : > { %758 = vmatpush.msra.mxu3 %v737_v55 }
 0x14f   : > { %510 = vrot.lane.b32.xlu1 %v1360_v62, %s1172_s25  ;;  %v732_v62 = vld [vmem:[#allocation4 + $0xb0] sm:$0xff] }
 0x150   : > { %494 = vrot.lane.b32.xlu2 %v441_v51, %s1177_s29  ;;  %759 = vmatpush.msra.mxu3 %v736_v56 }
 0x152   : > { %760 = vmatpush.msra.mxu3 %v735_v57 }
 0x154   : > { %761 = vmatpush.msra.mxu3 %v734_v21 }
 0x156   : > { %762 = vmatpush.msra.mxu3 %v733_v61 }
 0x158   : > { %763 = vmatpush.msra.mxu3 %v732_v62 }
 0x15a   : > { %764 = vmatpush.msra.mxu3 %v731_v1  ;;  %v396_v1 = vsel %vm386_vm5, %v1284_v24, 0.0 }
 0x15c   : > { %765 = vmatpush.msra.mxu3 %v730_v4 }
 0x15e   : > { %766 = vmatpush.msra.mxu3 %v729_v5 }
 0x160   : > { %767 = vmatpush.msra.mxu3 %v728_v22 }
 0x17a   : > { %v1031_v28 = vpop.permute.xlu2 %1030 }
 0x17b   : > { %v1032_v45 = vunpack.i.l.bf16 %v1031_v28  ;;  %v1033_v11 = vunpack.i.h.bf16 %v1031_v28 }
 0x182   : > { %v1036_v35 = vpop.permute.xlu2 %1035 }
 0x183   : > { %v1037_v49 = vunpack.i.l.bf16 %v1036_v35  ;;  %v1038_v18 = vunpack.i.h.bf16 %v1036_v35 }
 0x18a   : > { %v701_v60 = vpop.permute.xlu2 %700 }
 0x190   : > { %v1026_v39 = vpop.permute.xlu0 %1025 }
 0x191   : > { %v1021_v40 = vpop.permute.xlu1 %1020  ;;  %v1027_v7 = vunpack.i.l.bf16 %v1026_v39  ;;  %v1028_v52 = vunpack.i.h.bf16 %v1026_v39 }
 0x192   : > { %v1022_v41 = vunpack.i.l.bf16 %v1021_v40  ;;  %v1023_v50 = vunpack.i.h.bf16 %v1021_v40  ;;  %v703_v53 = vpop.permute.xlu2 %702 }
 0x194   : > { %v713_v58 = vsel %vm310_vm0, %v615_v48, %v1022_v41  ;;  %v714_v8 = vsel %vm310_vm0, %v616_v10, %v1023_v50 }
 0x195   : > { %v715_v59 = vsel %vm516_vm13, %v713_v58, %v1032_v45  ;;  %v716_v13 = vsel %vm516_vm13, %v714_v8, %v1033_v11  ;;  %v821_v11 = vld [vmem:[#allocation6 + $0x8] sm:$0xff] }
 0x196   : > { %v717_v63 = vsel %vm519_vm14, %v715_v59, %v1037_v49  ;;  %v718_v51 = vsel %vm519_vm14, %v716_v13, %v1038_v18  ;;  %844 = vmatpush.msrb.mxu2 %v821_v11 }
 0x197   : > { %v719_v15 = vsel %vm522_vm15, %v717_v63, %v1027_v7  ;;  %v720_v54 = vsel %vm522_vm15, %v718_v51, %v1028_v52 }
 0x198   : > { %v708_v27 = vpop.permute.xlu0 %707 }
 0x199   : > { %v693_v14 = vpop.permute.xlu1 %692 }
 0x19a   : > { %v721_v16 = vsel %vm525_vm1, %v719_v15, %v693_v14  ;;  %v1046_v62 = vpop.permute.xlu2 %1045  ;;  %v598_v15 = vpop.f32.mrf.mxu2 }
 0x19b   : > { %v723_v46 = vsel %vm528_vm2, %v721_v16, %v701_v60  ;;  %v1047_v5 = vunpack.i.l.bf16 %v1046_v62  ;;  %v1048_v36 = vunpack.i.h.bf16 %v1046_v62  ;;  %v792_v60 = vpop.f32.mrf.mxu0  ;;  %v1060_v16 = vld [vmem:[%s1530_s4] ss:$0 sm:$0xff] }
 0x19c   : > { %v725_v42 = vsel %vm531_vm3, %v723_v46, %v708_v27  ;;  %v820_v27 = vld [vmem:[#allocation6] sm:$0xff] }
 0x19d   : > { %768 = vmatmul.f32.vlgmr.msra.gmra.mxu3 %v725_v42  ;;  %845 = vmatpush.msrb.mxu2 %v820_v27 }
 0x1a0   : > { %v710_v30 = vpop.permute.xlu0 %709 }
 0x1a1   : > { %v695_v43 = vpop.permute.xlu1 %694 }
 0x1a2   : > { %v722_v20 = vsel %vm525_vm1, %v720_v54, %v695_v43  ;;  %v493_v34 = vpop.permute.xlu2 %492  ;;  %v601_v52 = vpop.f32.mrf.mxu2 }
 0x1a3   : > { %v724_v55 = vsel %vm528_vm2, %v722_v20, %v703_v53  ;;  %v795_v7 = vpop.f32.mrf.mxu0 }
 0x1a4   : > { %v726_v56 = vsel %vm531_vm3, %v724_v55, %v710_v30 }
 0x1a5   : > { %771 = vmatmul.f32.gmra.mxu3 %v726_v56 }
 0x1a8   : > { %v1051_v61 = vpop.permute.xlu0 %1050 }
 0x1a9   : > { %v1041_v57 = vpop.permute.xlu1 %1040  ;;  %v1052_v22 = vunpack.i.l.bf16 %v1051_v61  ;;  %v1053_v41 = vunpack.i.h.bf16 %v1051_v61 }
 0x1aa   : > { %v1042_v21 = vunpack.i.l.bf16 %v1041_v57  ;;  %v1043_v26 = vunpack.i.h.bf16 %v1041_v57  ;;  %v495_v48 = vpop.permute.xlu2 %494 }
 0x1ac   : > { %v514_v4 = vsel %vm310_vm0, %v396_v1, %v1042_v21  ;;  %v515_v24 = vsel %vm310_vm0, %v397_v19, %v1043_v26 }
 0x1ad   : > { %v517_v12 = vsel %vm516_vm13, %v514_v4, %v1047_v5  ;;  %v518_v37 = vsel %vm516_vm13, %v515_v24, %v1048_v36 }
 0x1ae   : > { %v520_v31 = vsel %vm519_vm14, %v517_v12, %v1052_v22  ;;  %v521_v45 = vsel %vm519_vm14, %v518_v37, %v1053_v41 }
 0x1b0   : > { %v501_v32 = vpop.permute.xlu0 %500 }
 0x1b1   : > { %v1056_v25 = vpop.permute.xlu1 %1055 }
 0x1b2   : > { %v1057_v28 = vunpack.i.l.bf16 %v1056_v25  ;;  %v1058_v38 = vunpack.i.h.bf16 %v1056_v25 }
 0x1b4   : > { %v523_v33 = vsel %vm522_vm15, %v520_v31, %v1057_v28  ;;  %v524_v23 = vsel %vm522_vm15, %v521_v45, %v1058_v38 }
 0x1b5   : > { %v526_v35 = vsel %vm525_vm1, %v523_v33, %v493_v34  ;;  %v527_v49 = vsel %vm525_vm1, %v524_v23, %v495_v48 }
 0x1b6   : > { %v529_v39 = vsel %vm528_vm2, %v526_v35, %v501_v32 }
 0x1b8   : > { %v503_v29 = vpop.permute.xlu0 %502 }
 0x1b9   : > { %v509_v40 = vpop.permute.xlu1 %508  ;;  %v530_v50 = vsel %vm528_vm2, %v527_v49, %v503_v29 }
 0x1ba   : > { %v532_v44 = vsel %vm531_vm3, %v529_v39, %v509_v40 }
 0x1bb   : > { %574 = vmatmul.f32.vlgmr.msra.gmra.mxu1 %v532_v44 }
 0x1c1   : > { %v511_v58 = vpop.permute.xlu1 %510 }
 0x1c2   : > { %v533_v59 = vsel %vm531_vm3, %v530_v50, %v511_v58 }
 0x1c3   : > { %577 = vmatmul.f32.gmra.mxu1 %v533_v59 }
 0x220   : > { %v769_v63 = vpop.f32.mrf.mxu3 }
 0x221   : > { %v793_v0 = vadd.f32 %v792_v60, %v769_v63 }
 0x223   : > { %800 = vrot.lane.b32.xlu2 %v793_v0, %s1175_s27 }
 0x228   : > { %v772_v10 = vpop.f32.mrf.mxu3 }
 0x229   : > { %v796_v8 = vadd.f32 %v795_v7, %v772_v10 }
 0x22b   : > { %802 = vrot.lane.b32.xlu0 %v796_v8, %s1175_s27 }
 0x238   : > { %v575_v14 = vpop.f32.mrf.mxu1 }
 0x239   : > { %v599_v17 = vadd.f32 %v598_v15, %v575_v14 }
 0x240   : > { %v578_v51 = vpop.f32.mrf.mxu1 }
 0x241   : > { %v602_v53 = vadd.f32 %v601_v52, %v578_v51 }
 0x27d   : > { %v801_v46 = vpop.permute.xlu2 %800 }
 0x27e   : > { %v806_v13 = vsel %vm310_vm0, %v599_v17, %v801_v46 }
 0x27f   : > { %v812_v18 = vadd.f32 %v1060_v16, %v806_v13 }
 0x281   : > { %v816_v42 = vmul.f32 0.2, %v812_v18  ;;  %vm814_vm4 = vcmp.ge.f32.partialorder %v812_v18, 0.0 }
 0x283   : > { %v818_v47 = vsel %vm814_vm4, %v812_v18, %v816_v42 }
 0x284   : > { %964 = vmatmul.msk.f32.vlgmr.msrb.gmra.mxu2 %vm516_vm13, %v818_v47 }
 0x29d   : > { %v803_v30 = vpop.permute.xlu0 %802 }
 0x29e   : > { %v807_v43 = vsel %vm310_vm0, %v602_v53, %v803_v30 }
 0x29f   : > { %v813_v54 = vadd.f32 %v1060_v16, %v807_v43 }
 0x2a1   : > { %vm815_vm5 = vcmp.ge.f32.partialorder %v813_v54, 0.0  ;;  %v817_v20 = vmul.f32 0.2, %v813_v54 }
 0x2a3   : > { %v819_v55 = vsel %vm815_vm5, %v813_v54, %v817_v20 }
 0x2a4   : > { %965 = vmatmul.msk.f32.gmra.mxu2 %vm516_vm13, %v819_v55 }
 0x307   : > { %v847_v56 = vpop.f32.mrf.mxu2 }
 0x308   : > { %v853_v57 = vadd.f32 %v847_v56, %v1263_v2 }
 0x30a   : > { %855 = vst.msk [vmem:[%s301_s12] sm:$0xff] %vm310_vm0, %v853_v57 }
 0x327   : > { %v850_v21 = vpop.f32.mrf.mxu2 }
 0x328   : > { %v854_v61 = vadd.f32 %v850_v21, %v1267_v3 }
 0x32a   : > { %856 = vst.msk [vmem:[%s301_s12 + $0x8] sm:$0xff] %vm310_vm0, %v854_v61 }
 0x32b PF: > { %s18_s21 = sadd.s32 1, %s1165_s21  }
 0x32c   : > { %p15_p7 = scmp.ge.s32.totalorder %s18_s21, 4  }
 0x32e   :  { %17 = sbr.rel (!%p15_p7) target bundleno = 2 (0x2), region = 88 }
 0x333   :  { %878 = vsyncpa [#allocation3], 1 }
 0x334   :  { %880 = vsyncpa [#allocation3 + $0x1], 1 }
 0x335   :  { %881 = vsyncpa [#allocation5], 1 }

// kernel: _lambda_.5
= control target key start
LH: loop header
LB: loop body
LE: loop exit
PB: predicated region body
PF: predicated region fallthrough
CT: control target
= control target key end

     0   :  { %s1089_s0 = inlined_call_operand.hbm [shape: f32[2,1,32], index: 0, kind: input, shape index: {}]   ;;  %s1090_s1 = inlined_call_operand.hbm [shape: f32[32,16], index: 1, kind: input, shape index: {}]   ;;  %s1091_s2 = inlined_call_operand.hbm [shape: f32[16,16], index: 2, kind: input, shape index: {}]   ;;  %s1092_s3 = inlined_call_operand.hbm [shape: f32[2,16,16], index: 3, kind: input, shape index: {}]   ;;  %s1093_s4 = inlined_call_operand.hbm [shape: f32[16,16], index: 4, kind: input, shape index: {}]   ;;  %s1094_s5 = inlined_call_operand.vmem [shape: f32[16,16], index: 5, kind: input, shape index: {}]   ;;  %s1095_s6 = inlined_call_operand.vmem [shape: f32[2,16,16], index: 6, kind: output, shape index: {}]  }
   0x1   :  { %1098 = sst [smem:[#allocation14_spill]] %s1090_s1 }
   0x2   :  { %1099 = sst [smem:[#allocation15_spill]] %s1091_s2 }
   0x3   :  { %11 = vsyncpa [#allocation3], 0 }
   0x4   :  { %13 = vsyncpa [#allocation3 + $0x1], 0 }
   0x5   :  { %14 = vsyncpa [#allocation5], 0 }
   0x6   :  { %15 = vsyncpa [#allocation8], 0 }
   0x7   :  { %17 = vsyncpa [#allocation8 + $0x1], 0  ;;  %s915_s21 = smov 0   ;;  %s917_s22 = smov 0  }
   0x8   :  { %s919_s23 = smov 0   ;;  %s921_s24 = smov 0  }
   0x9 LB: > { %s1100_s1 = sld [smem:[#allocation14_spill]]  ;;  %s939_s28 = sadd.s32 4294967295, %s873_s24   ;;  %s873_s24 = sphi %s921_s24, %s1111_s24   ;;  %s869_s23 = sphi %s919_s23, %s1110_s23   ;;  %s865_s22 = sphi %s917_s22, %s1109_s22   ;;  %s861_s21 = sphi %s915_s21, %s1108_s21  }
   0xa   : > { %p574_p0 = scmp.ge.s32.totalorder %s873_s24, 1  ;;  %p44_p1 = scmp.eq.s32.totalorder %s939_s28, 0 }
   0xb   : > { %p190_p2 = scmp.lt.s32.totalorder %s873_s24, 3  ;;  %s875_s30 = smov [#allocation4]  }
   0xc   : > { %s203_s7 = sshll.u32 %s875_s30, 4  ;;  %s229_s10 = sshll.u32 %s1093_s4, 4  ;;  %s204_s7 = int_to_ptr.vmem [resolvable:$true] %s203_s7  ;;  %s230_s10 = int_to_ptr.hbm [resolvable:$true] %s229_s10 }
   0xd   : > { %p944_p3 = pnand %p574_p0, %p190_p2  ;;  %s1103_s2 = sld [smem:[#allocation15_spill]] }
   0xe   : > { %s876_s15 = smov [#allocation9]   ;;  %s1096_s17 = smov 128  }
   0xf   : > { %s201_s27 = sshll.u32 %s1100_s1, 4  ;;  %p616_p4 = pneg %p944_p3  ;;  %s202_s27 = int_to_ptr.hbm [resolvable:$true] %s201_s27 }
  0x10   : > { %s231_s16 = sshll.u32 %s876_s15, 4  ;;  %s1097_s18 = smov 8   ;;  %s232_s16 = int_to_ptr.vmem [resolvable:$true] %s231_s16 }
  0x11   : > { %p955_p5 = pnand %p616_p4, %p44_p1  ;;  %s879_s19 = smov [#allocation6]  }
  0x12   : > { %s217_s20 = sshll.u32 %s879_s19, 4  ;;  %s978_s25 = sadd.s32 1, %s873_s24   ;;  %s218_s20 = int_to_ptr.vmem [resolvable:$true] %s217_s20 }
  0x13   : > { %s215_s14 = sshll.u32 %s1103_s2, 4  ;;  %s27_s26 = ssub.s32 %s873_s24, %s978_s25  ;;  %s216_s14 = int_to_ptr.hbm [resolvable:$true] %s215_s14 }
  0x14   : > { %619 = dma.hbm_to_vmem [thread:$0]  (!%p955_p5), %s202_s27, 512, %s204_s7, [#allocation5], %s1096_s17, %s1096_s17, %s1097_s18  }
  0x15   : > { %625 = dma.hbm_to_vmem [thread:$0]  (!%p955_p5), %s230_s10, 256, %s232_s16, [#allocation8], %s1096_s17, %s1096_s17, %s1097_s18  }
  0x16   : > { %622 = dma.hbm_to_vmem [thread:$0]  (!%p955_p5), %s216_s14, 256, %s218_s20, [#allocation5], %s1096_s17, %s1096_s17, %s1097_s18  }
  0x17   : > { %s30_s27 = sadd.s32 1, %s869_s23  ;;  %p28_p6 = scmp.eq.s32.totalorder %s27_s26, 0 }
  0x18   : > { %p37_p7 = scmp.ne.s32.totalorder %s869_s23, %s865_s22  ;;  %p38_p8 = scmp.eq.s32.totalorder %s873_s24, 0 }
  0x19   : > { %p43_p9 = scmp.ne.s32.totalorder %s865_s22, %s861_s21  ;;  %p636_p12 = scmp.lt.s32.totalorder %s873_s24, 2 }
  0x1a   : > { %s989_s30 = scalar_select %p28_p6, %s869_s23, %s30_s27  }
  0x1b   : > { %p39_p10 = por %p38_p8, %p37_p7  ;;  %p993_p11 = por %p44_p1, %p43_p9 }
  0x1c   : > { %s248_s8 = sand.u32 1, %s869_s23   ;;  %s254_s11 = scalar_lea.hbm %s1089_s0, %s873_s24 }
  0x1d   : > { %s251_s12 = scalar_lea.vmem [#allocation2], %s248_s8  ;;  %s256_s14 = sshll.u32 %s254_s11, 4  ;;  %s257_s14 = int_to_ptr.hbm [resolvable:$true] %s256_s14 }
  0x1e   : > { %s258_s13 = sshll.u32 %s251_s12, 4  ;;  %p1003_p13 = pnand %p636_p12, %p39_p10  ;;  %s259_s13 = int_to_ptr.vmem [resolvable:$true] %s258_s13 }
  0x1f   : > { %s579_s15 = sshll.u32 %s248_s8, 4  ;;  %s265_s16 = sand.u32 1, %s873_s24  }
  0x20   : > { %s249_s19 = scalar_lea.sflag [#allocation3], %s248_s8  ;;  %s767_s20 = sshra.s32 %s257_s14, 4  ;;  %s768_s20 = int_to_ptr.hbm [resolvable:$true] %s767_s20 }
  0x21   : > { %s769_s26 = scalar_lea.hbm %s768_s20, 1  ;;  %p771_p2 = pneg %p1003_p13 }
  0x22   : > { %p770_p0 = scmp.ne.s32.totalorder %s768_s20, %s769_s26  ;;  %s774_s10 = scalar_lea.hbm %s1089_s0, 2 }
  0x23   : > { %p775_p6 = scmp.lt.s32.totalorder %s768_s20, %s1089_s0  ;;  %p776_p7 = scmp.lt.s32.totalorder %s774_s10, %s769_s26 }
  0x24   : > { %p772_p4 = pnand %p771_p2, %p770_p0 }
  0x25   : > { %p777_p8 = por %p776_p7, %p775_p6 }
  0x26   : > { %p773_p5 = pneg %p772_p4 }
  0x28   : > { %p778_p9 = pnand %p777_p8, %p773_p5 }
  0x2a   : > { %781 = shalt.err (!%p778_p9)
}
  0x2b   : > { %629 = dma.hbm_to_vmem [thread:$0]  (!%p1003_p13), %s257_s14, 16, %s259_s13, %s249_s19  }
  0x2c   : > { %s269_s8 = scalar_lea.vmem [#allocation7], %s579_s15  ;;  %s596_s18 = sshll.u32 %s873_s24, 4 }
  0x2d   : > { %s277_s17 = sshll.u32 %s269_s8, 4  ;;  %s274_s9 = scalar_lea.hbm %s1092_s3, %s596_s18  ;;  %s278_s17 = int_to_ptr.vmem [resolvable:$true] %s277_s17 }
  0x2e   : > { %s275_s2 = sshll.u32 %s274_s9, 4  ;;  %s266_s20 = scalar_lea.sflag [#allocation8], %s265_s16  ;;  %s276_s2 = int_to_ptr.hbm [resolvable:$true] %s275_s2 }
  0x2f   : > { %s797_s26 = sshra.s32 %s276_s2, 4  ;;  %s804_s24 = scalar_lea.hbm %s1092_s3, 32  ;;  %s798_s26 = int_to_ptr.hbm [resolvable:$true] %s797_s26 }
  0x30   : > { %s799_s10 = scalar_lea.hbm %s798_s26, 16  ;;  %p805_p4 = scmp.lt.s32.totalorder %s798_s26, %s1092_s3 }
  0x31   : > { %p800_p10 = scmp.ne.s32.totalorder %s798_s26, %s799_s10  ;;  %p806_p5 = scmp.lt.s32.totalorder %s804_s24, %s799_s10 }
  0x33   : > { %p802_p12 = pnand %p800_p10, %p771_p2  ;;  %p807_p6 = por %p806_p5, %p805_p4 }
  0x35   : > { %p803_p0 = pneg %p802_p12 }
  0x37   : > { %p808_p7 = pnand %p807_p6, %p803_p0 }
  0x39   : > { %811 = shalt.err (!%p808_p7)
}
  0x3a   : > { %s1106_s1 = smov 8   ;;  %s1107_s18 = smov 128  }
  0x3b   : > { %632 = dma.hbm_to_vmem [thread:$0]  (!%p1003_p13), %s276_s2, 256, %s278_s17, %s266_s20, %s1107_s18, %s1107_s18, %s1106_s1  }
  0x3c   : > { %289 = sbr.rel (%p944_p3) target bundleno = 354 (0x162), region = 44  ;;  %s291_s16 = sand.u32 (!%p944_p3), 1, %s865_s22  }
  0x3d   : > { %s292_s11 = scalar_lea.sflag (!%p944_p3), [#allocation3], %s291_s16  ;;  %s294_s12 = scalar_lea.vmem (!%p944_p3), [#allocation2], %s291_s16 }
  0x41   : > { %844 = dma.done.wait (%p993_p11), %s292_s11, 16  }
  0x42   : > { %846 = vsyncadd (%p993_p11), %s292_s11, 4294967280 }
  0x43   : > { %848 = dma.done.wait (%p44_p1), [#allocation5], 768  }
  0x44   : > { %850 = vsyncadd (%p44_p1), [#allocation5], 4294966528  ;;  %s310_s2 = sand.u32 1, %s939_s28   ;;  %s585_s29 = sshll.u32 %s291_s16, 4 }
  0x45   : > { %s311_s17 = scalar_lea.sflag [#allocation8], %s310_s2  ;;  %s314_s21 = scalar_lea.vmem [#allocation7], %s585_s29 }
  0x46   : > { %852 = dma.done.wait (%p993_p11), %s311_s17, 256  }
  0x47   : > { %854 = vsyncadd (%p993_p11), %s311_s17, 4294967040 }
  0x48   : > { %856 = dma.done.wait (%p44_p1), [#allocation8], 256  }
  0x49   : > { %858 = vsyncadd (%p44_p1), [#allocation8], 4294967040  ;;  %v362_v0 = vld [vmem:[#allocation4 + $0x18] sm:$0xff]  ;;  %v361_v1 = vld [vmem:[#allocation4 + $0x10] sm:$0xff]  ;;  %vm363_vm0 = vcmask 261120   ;;  %vm398_vm1 = vcmask 130048  }
  0x4a   : > { %379 = vmatpush.msra.mxu0 %v362_v0  ;;  %v360_v2 = vld [vmem:[#allocation4 + $0x8] sm:$0xff]  ;;  %v359_v3 = vld [vmem:[#allocation4] sm:$0xff]  ;;  %v358_v4 = vld [vmem:[%s294_s12] sm:$0x1]  ;;  %p353_p1 = scmp.lt.s32.totalorder %s939_s28, 1 }
  0x4b   : > { %v393_v5 = vld [vmem:[#allocation9 + $0x8] sm:$0xff]  ;;  %v392_v6 = vld [vmem:[#allocation9] sm:$0xff]  ;;  %v397_v7 = vld [vmem:[%s1094_s5 + $0x8] sm:$0xff] }
  0x4c   : > { %380 = vmatpush.msra.mxu0 %v361_v1  ;;  %448 = vmatpush.msra.mxu2 %v393_v5  ;;  %v396_v8 = vld [vmem:[%s1094_s5] sm:$0xff]  ;;  %v388_v15 = vld [vmem:[#allocation6 + $0x8] sm:$0xff]  ;;  %s1113_s28 = smov (!%p353_p1, %s939_s28), 1 }
  0x4d   : > { %419 = vmatpush.msra.mxu1 %v397_v7  ;;  %598 = vmatpush.msra.mxu3 %v397_v7  ;;  %v394_v9 = vld [vmem:[%s314_s21] sm:$0xff]  ;;  %v395_v10 = vld [vmem:[%s314_s21 + $0x8] sm:$0xff]  ;;  %s597_s20 = sshll.u32 %s1113_s28, 4 }
  0x4e   : > { %381 = vmatpush.msra.mxu0 %v360_v2  ;;  %449 = vmatpush.msra.mxu2 %v392_v6  ;;  %v387_v12 = vld [vmem:[#allocation6] sm:$0xff]  ;;  %s357_s13 = scalar_lea.vmem %s1095_s6, %s597_s20 }
  0x4f   : > { %420 = vmatpush.msra.mxu1 %v396_v8  ;;  %599 = vmatpush.msra.mxu3 %v396_v8 }
  0x50   : > { %382 = vmatpush.msra.mxu0 %v359_v3  ;;  %590 = vmatmul.msk.f32.vlgmr.msra.gmra.mxu1 %vm398_vm1, %v394_v9 }
  0x51   : > { %589 = vmatmul.msk.f32.vlgmr.msra.gmra.mxu0 %vm363_vm0, %v358_v4  ;;  %591 = vmatmul.msk.f32.vlgmr.msra.gmra.mxu3 %vm398_vm1, %v395_v10 }
  0xcd   : > { %v422_v17 = vpop.f32.mrf.mxu1 }
  0xce   : > { %v384_v11 = vpop.f32.mrf.mxu0 }
  0xcf   : > { %v389_v13 = vperm.slane %v384_v11, 0 }
  0xd1   : > { %v390_v14 = vmul.f32 %v389_v13, %v387_v12  ;;  %v391_v16 = vmul.f32 %v389_v13, %v388_v15 }
  0xd3   : > { %592 = vmatmul.msk.f32.vlgmr.msra.gmra.mxu2 %vm398_vm1, %v390_v14 }
  0xd4   : > { %v425_v20 = vpop.f32.mrf.mxu3 }
  0xdb   : > { %593 = vmatmul.msk.f32.gmra.mxu2 %vm398_vm1, %v391_v16 }
 0x156   : > { %v451_v18 = vpop.f32.mrf.mxu2 }
 0x157   : > { %v452_v19 = vadd.f32 %v451_v18, %v422_v17 }
 0x159   : > { %457 = vst.msk [vmem:[%s357_s13] sm:$0xff] %vm398_vm1, %v452_v19 }
 0x15e   : > { %v454_v21 = vpop.f32.mrf.mxu2 }
 0x15f   : > { %v455_v22 = vadd.f32 %v454_v21, %v425_v20 }
 0x161   : > { %458 = vst.msk [vmem:[%s357_s13 + $0x8] sm:$0xff] %vm398_vm1, %v455_v22 }
 0x162 PF: > { %p20_p3 = scmp.ge.s32.totalorder %s978_s25, 4   ;;  %s1108_s21 = smov %s865_s22 }
 0x163   : > { %s1109_s22 = smov %s869_s23  ;;  %s1110_s23 = smov %s989_s30 }
 0x164   : > { %s1111_s24 = smov %s978_s25  ;;  %22 = sbr.rel (!%p20_p3) target bundleno = 9 (0x9), region = 109 }
 0x169   :  { %480 = vsyncpa [#allocation3], 1 }
 0x16a   :  { %482 = vsyncpa [#allocation3 + $0x1], 1 }
 0x16b   :  { %483 = vsyncpa [#allocation5], 1 }
 0x16c   :  { %484 = vsyncpa [#allocation8], 1 }
 0x16d   :  { %486 = vsyncpa [#allocation8 + $0x1], 1 }

// kernel: _lambda_.7
= control target key start
LH: loop header
LB: loop body
LE: loop exit
PB: predicated region body
PF: predicated region fallthrough
CT: control target
= control target key end

     0   :  { %s520_s15 = smov 0   ;;  %s598_s0 = inlined_call_operand.vmem [shape: f32[2,64,16], index: 0, kind: input, shape index: {}]   ;;  %s599_s1 = inlined_call_operand.vmem [shape: f32[16,8], index: 1, kind: input, shape index: {}]   ;;  %s600_s2 = inlined_call_operand.vmem [shape: f32[2,64,8], index: 2, kind: input, shape index: {}]   ;;  %s601_s3 = inlined_call_operand.vmem [shape: f32[8,8], index: 3, kind: input, shape index: {}]   ;;  %s602_s4 = inlined_call_operand.vmem [shape: f32[2,64,8], index: 4, kind: output, shape index: {}]  }
   0x1 LB: > { %s444_s16 = sadd.s32 4294967295, %s493_s15   ;;  %p448_p0 = scmp.ge.s32.totalorder %s493_s15, 1  ;;  %s493_s15 = sphi %s520_s15, %s14_s15  }
   0x2   : > { %p172_p1 = scmp.lt.s32.totalorder %s493_s15, 3 }
   0x4   : > { %p173_p2 = pnand %p448_p0, %p172_p1 }
   0x5   : > { %p203_p3 = scmp.lt.s32.totalorder (!%p173_p2), %s444_s16, 1 }
   0x6   : > { %176 = sbr.rel (%p173_p2) target bundleno = 177 (0xb1), region = 36 }
   0xb   : > { %v227_v0 = vld [vmem:[%s599_s1 + $0x8] sm:$0xff]  ;;  %v236_v1 = vld [vmem:[%s601_s3] sm:$0xff]  ;;  %s604_s16 = smov (!%p203_p3, %s444_s16), 1  ;;  %vm237_vm0 = vcmask 64512   ;;  %vm303_vm1 = vcmask 130048  }
   0xc   : > { %v226_v2 = vld [vmem:[%s599_s1] sm:$0xff]  ;;  %342 = vmatpush.msra.mxu1 %v227_v0  ;;  %277 = vmatpush.msra.mxu0 %v236_v1  ;;  %s537_s23 = sshll.u32 %s604_s16, 6 }
   0xd   : > { %477 = vmatpush.msra.mxu2 %v227_v0  ;;  %476 = vmatpush.msra.mxu3 %v236_v1  ;;  %s543_s26 = scalar_lea.vmem %s600_s2, %s537_s23  ;;  %s207_s29 = scalar_lea.vmem %s598_s0, %s537_s23 }
   0xe   : > { %343 = vmatpush.msra.mxu1 %v226_v2  ;;  %v228_v3 = vld [vmem:[%s543_s26] sm:$0xff]  ;;  %v233_v6 = vld [vmem:[%s543_s26 + $0x28] sm:$0xff]  ;;  %v234_v10 = vld [vmem:[%s543_s26 + $0x30] sm:$0xff]  ;;  %s577_s6 = scalar_lea.vmem %s602_s4, %s537_s23 }
   0xf   : > { %478 = vmatpush.msra.mxu2 %v226_v2  ;;  %v218_v4 = vld [vmem:[%s207_s29] sm:$0xff]  ;;  %455 = vmatmul.msk.f32.vlgmr.msra.gmra.mxu0 %vm237_vm0, %v228_v3  ;;  %v229_v7 = vld [vmem:[%s543_s26 + $0x8] sm:$0xff]  ;;  %v230_v11 = vld [vmem:[%s543_s26 + $0x10] sm:$0xff] }
  0x10   : > { %v222_v5 = vld [vmem:[%s207_s29 + $0x20] sm:$0xff]  ;;  %463 = vmatmul.msk.f32.vlgmr.msra.gmra.mxu1 %vm303_vm1, %v218_v4  ;;  %460 = vmatmul.msk.f32.vlgmr.msra.gmra.mxu3 %vm237_vm0, %v233_v6  ;;  %v219_v8 = vld [vmem:[%s207_s29 + $0x8] sm:$0xff]  ;;  %v220_v12 = vld [vmem:[%s207_s29 + $0x10] sm:$0xff] }
  0x11   : > { %467 = vmatmul.msk.f32.vlgmr.msra.gmra.mxu2 %vm303_vm1, %v222_v5  ;;  %v223_v9 = vld [vmem:[%s207_s29 + $0x28] sm:$0xff]  ;;  %v224_v13 = vld [vmem:[%s207_s29 + $0x30] sm:$0xff]  ;;  %v235_v14 = vld [vmem:[%s543_s26 + $0x38] sm:$0xff] }
  0x12   : > { %v231_v15 = vld [vmem:[%s543_s26 + $0x18] sm:$0xff]  ;;  %v232_v18 = vld [vmem:[%s543_s26 + $0x20] sm:$0xff] }
  0x13   : > { %v221_v16 = vld [vmem:[%s207_s29 + $0x18] sm:$0xff] }
  0x14   : > { %v225_v17 = vld [vmem:[%s207_s29 + $0x38] sm:$0xff] }
  0x17   : > { %456 = vmatmul.msk.f32.gmra.mxu0 %vm237_vm0, %v229_v7 }
  0x18   : > { %464 = vmatmul.msk.f32.gmra.mxu1 %vm303_vm1, %v219_v8  ;;  %461 = vmatmul.msk.f32.gmra.mxu3 %vm237_vm0, %v234_v10 }
  0x19   : > { %468 = vmatmul.msk.f32.gmra.mxu2 %vm303_vm1, %v223_v9 }
  0x1f   : > { %457 = vmatmul.msk.f32.gmra.mxu0 %vm237_vm0, %v230_v11 }
  0x20   : > { %465 = vmatmul.msk.f32.gmra.mxu1 %vm303_vm1, %v220_v12  ;;  %462 = vmatmul.msk.f32.gmra.mxu3 %vm237_vm0, %v235_v14 }
  0x21   : > { %469 = vmatmul.msk.f32.gmra.mxu2 %vm303_vm1, %v224_v13 }
  0x27   : > { %458 = vmatmul.msk.f32.gmra.mxu0 %vm237_vm0, %v231_v15 }
  0x28   : > { %466 = vmatmul.msk.f32.gmra.mxu1 %vm303_vm1, %v221_v16 }
  0x29   : > { %470 = vmatmul.msk.f32.gmra.mxu2 %vm303_vm1, %v225_v17 }
  0x2f   : > { %459 = vmatmul.msk.f32.gmra.mxu0 %vm237_vm0, %v232_v18 }
  0x8c   : > { %v279_v19 = vpop.f32.mrf.mxu0 }
  0x8d   : > { %v345_v20 = vpop.f32.mrf.mxu1 }
  0x8e   : > { %v346_v21 = vadd.f32 %v345_v20, %v279_v19 }
  0x90   : > { %369 = vst.msk [vmem:[%s577_s6] sm:$0xff] %vm237_vm0, %v346_v21 }
  0x93   : > { %v294_v26 = vpop.f32.mrf.mxu3 }
  0x94   : > { %v357_v22 = vpop.f32.mrf.mxu2  ;;  %v282_v23 = vpop.f32.mrf.mxu0 }
  0x95   : > { %v348_v24 = vpop.f32.mrf.mxu1 }
  0x96   : > { %v349_v25 = vadd.f32 %v348_v24, %v282_v23 }
  0x98   : > { %370 = vst.msk [vmem:[%s577_s6 + $0x8] sm:$0xff] %vm237_vm0, %v349_v25 }
  0x9b   : > { %v297_v32 = vpop.f32.mrf.mxu3 }
  0x9c   : > { %v360_v27 = vpop.f32.mrf.mxu2  ;;  %v285_v28 = vpop.f32.mrf.mxu0 }
  0x9d   : > { %v351_v29 = vpop.f32.mrf.mxu1  ;;  %v361_v30 = vadd.f32 %v360_v27, %v294_v26 }
  0x9e   : > { %v352_v31 = vadd.f32 %v351_v29, %v285_v28 }
  0x9f   : > { %374 = vst.msk [vmem:[%s577_s6 + $0x28] sm:$0xff] %vm237_vm0, %v361_v30 }
  0xa0   : > { %371 = vst.msk [vmem:[%s577_s6 + $0x10] sm:$0xff] %vm237_vm0, %v352_v31 }
  0xa3   : > { %v300_v38 = vpop.f32.mrf.mxu3 }
  0xa4   : > { %v363_v33 = vpop.f32.mrf.mxu2  ;;  %v288_v34 = vpop.f32.mrf.mxu0 }
  0xa5   : > { %v354_v35 = vpop.f32.mrf.mxu1  ;;  %v364_v36 = vadd.f32 %v363_v33, %v297_v32 }
  0xa6   : > { %v355_v37 = vadd.f32 %v354_v35, %v288_v34 }
  0xa7   : > { %375 = vst.msk [vmem:[%s577_s6 + $0x30] sm:$0xff] %vm237_vm0, %v364_v36 }
  0xa8   : > { %372 = vst.msk [vmem:[%s577_s6 + $0x18] sm:$0xff] %vm237_vm0, %v355_v37 }
  0xac   : > { %v366_v39 = vpop.f32.mrf.mxu2  ;;  %v291_v40 = vpop.f32.mrf.mxu0 }
  0xad   : > { %v367_v41 = vadd.f32 %v366_v39, %v300_v38  ;;  %v358_v42 = vadd.f32 %v357_v22, %v291_v40 }
  0xaf   : > { %376 = vst.msk [vmem:[%s577_s6 + $0x38] sm:$0xff] %vm237_vm0, %v367_v41 }
  0xb0   : > { %373 = vst.msk [vmem:[%s577_s6 + $0x20] sm:$0xff] %vm237_vm0, %v358_v42 }
  0xb1 PF: > { %s14_s15 = sadd.s32 1, %s493_s15  }
  0xb2   : > { %p11_p4 = scmp.ge.s32.totalorder %s14_s15, 4  }
  0xb4   :  { %13 = sbr.rel (!%p11_p4) target bundleno = 1 (0x1), region = 69 }

// kernel: _lambda_.9
= control target key start
LH: loop header
LB: loop body
LE: loop exit
PB: predicated region body
PF: predicated region fallthrough
CT: control target
= control target key end

     0   :  { %s338_s9 = smov 0   ;;  %s374_s0 = inlined_call_operand.vmem [shape: f32[2,64,8], index: 0, kind: input, shape index: {}]   ;;  %s375_s1 = inlined_call_operand.vmem [shape: f32[8,3], index: 1, kind: input, shape index: {}]   ;;  %s376_s2 = inlined_call_operand.vmem [shape: f32[2,64,3], index: 2, kind: output, shape index: {}]  }
   0x1 LB: > { %s283_s10 = sadd.s32 4294967295, %s321_s9   ;;  %p287_p0 = scmp.ge.s32.totalorder %s321_s9, 1  ;;  %s321_s9 = sphi %s338_s9, %s12_s9  }
   0x2   : > { %p112_p1 = scmp.lt.s32.totalorder %s321_s9, 3 }
   0x4   : > { %p113_p2 = pnand %p287_p0, %p112_p1 }
   0x5   : > { %p134_p3 = scmp.lt.s32.totalorder (!%p113_p2), %s283_s10, 1 }
   0x6   : > { %116 = sbr.rel (%p113_p2) target bundleno = 157 (0x9d), region = 28 }
   0xb   : > { %v152_v0 = vld [vmem:[%s375_s1] sm:$0xff]  ;;  %s378_s10 = smov (!%p134_p3, %s283_s10), 1  ;;  %vm153_vm0 = vcmask 64512   ;;  %vm219_vm1 = vcmask 23552  }
   0xc   : > { %305 = vmatpush.msra.mxu2 %v152_v0  ;;  %306 = vmatpush.msra.mxu3 %v152_v0  ;;  %s302_s13 = sshll.u32 %s378_s10, 6 }
   0xd   : > { %193 = vmatpush.msra.mxu0 %v152_v0  ;;  %304 = vmatpush.msra.mxu1 %v152_v0  ;;  %s138_s16 = scalar_lea.vmem %s374_s0, %s302_s13  ;;  %s143_s19 = scalar_lea.vmem %s376_s2, %s302_s13 }
   0xe   : > { %v148_v1 = vld [vmem:[%s138_s16 + $0x20] sm:$0xff]  ;;  %v150_v2 = vld [vmem:[%s138_s16 + $0x30] sm:$0xff]  ;;  %v149_v5 = vld [vmem:[%s138_s16 + $0x28] sm:$0xff] }
   0xf   : > { %v144_v3 = vld [vmem:[%s138_s16] sm:$0xff]  ;;  %296 = vmatmul.msk.f32.vlgmr.msra.gmra.mxu2 %vm153_vm0, %v148_v1  ;;  %298 = vmatmul.msk.f32.vlgmr.msra.gmra.mxu3 %vm153_vm0, %v150_v2  ;;  %v146_v4 = vld [vmem:[%s138_s16 + $0x10] sm:$0xff]  ;;  %v151_v6 = vld [vmem:[%s138_s16 + $0x38] sm:$0xff] }
  0x10   : > { %292 = vmatmul.msk.f32.vlgmr.msra.gmra.mxu0 %vm153_vm0, %v144_v3  ;;  %294 = vmatmul.msk.f32.vlgmr.msra.gmra.mxu1 %vm153_vm0, %v146_v4  ;;  %v145_v7 = vld [vmem:[%s138_s16 + $0x8] sm:$0xff]  ;;  %v147_v8 = vld [vmem:[%s138_s16 + $0x18] sm:$0xff] }
  0x17   : > { %297 = vmatmul.msk.f32.gmra.mxu2 %vm153_vm0, %v149_v5  ;;  %299 = vmatmul.msk.f32.gmra.mxu3 %vm153_vm0, %v151_v6 }
  0x18   : > { %293 = vmatmul.msk.f32.gmra.mxu0 %vm153_vm0, %v145_v7  ;;  %295 = vmatmul.msk.f32.gmra.mxu1 %vm153_vm0, %v147_v8 }
  0x8d   : > { %v195_v9 = vpop.f32.mrf.mxu0  ;;  %v201_v10 = vpop.f32.mrf.mxu1 }
  0x8e   : > { %220 = vst.msk [vmem:[%s143_s19] sm:$0xff] %vm219_vm1, %v195_v9 }
  0x8f   : > { %222 = vst.msk [vmem:[%s143_s19 + $0x10] sm:$0xff] %vm219_vm1, %v201_v10 }
  0x92   : > { %v207_v11 = vpop.f32.mrf.mxu2  ;;  %v213_v12 = vpop.f32.mrf.mxu3 }
  0x93   : > { %224 = vst.msk [vmem:[%s143_s19 + $0x20] sm:$0xff] %vm219_vm1, %v207_v11 }
  0x94   : > { %226 = vst.msk [vmem:[%s143_s19 + $0x30] sm:$0xff] %vm219_vm1, %v213_v12 }
  0x95   : > { %v198_v13 = vpop.f32.mrf.mxu0  ;;  %v204_v14 = vpop.f32.mrf.mxu1 }
  0x96   : > { %221 = vst.msk [vmem:[%s143_s19 + $0x8] sm:$0xff] %vm219_vm1, %v198_v13 }
  0x97   : > { %223 = vst.msk [vmem:[%s143_s19 + $0x18] sm:$0xff] %vm219_vm1, %v204_v14 }
  0x9a   : > { %v210_v15 = vpop.f32.mrf.mxu2  ;;  %v216_v16 = vpop.f32.mrf.mxu3 }
  0x9b   : > { %225 = vst.msk [vmem:[%s143_s19 + $0x28] sm:$0xff] %vm219_vm1, %v210_v15 }
  0x9c   : > { %227 = vst.msk [vmem:[%s143_s19 + $0x38] sm:$0xff] %vm219_vm1, %v216_v16 }
  0x9d PF: > { %s12_s9 = sadd.s32 1, %s321_s9  }
  0x9e   : > { %p9_p4 = scmp.ge.s32.totalorder %s12_s9, 4  }
  0xa0   :  { %11 = sbr.rel (!%p9_p4) target bundleno = 1 (0x1), region = 58 }

// kernel: _lambda_.8
= control target key start
LH: loop header
LB: loop body
LE: loop exit
PB: predicated region body
PF: predicated region fallthrough
CT: control target
= control target key end

     0   :  { %s1926_s21 = smov 0   ;;  %s3007_s0 = inlined_call_operand.vmem [shape: f32[2,64,8], index: 0, kind: input, shape index: {}]   ;;  %s3008_s1 = inlined_call_operand.vmem [shape: f32[8,16], index: 1, kind: input, shape index: {}]   ;;  %s3009_s2 = inlined_call_operand.vmem [shape: f32[1,16], index: 2, kind: input, shape index: {}, may-alias: {2,4}]   ;;  %s3010_s3 = inlined_call_operand.vmem [shape: f32[2,72,8], index: 3, kind: input, shape index: {}]   ;;  %s3011_s4 = inlined_call_operand.vmem [shape: f32[1,16], index: 4, kind: input, shape index: {}, may-alias: {2,4}]   ;;  %s3012_s5 = inlined_call_operand.vmem [shape: f32[16,8], index: 5, kind: input, shape index: {}]   ;;  %s3013_s6 = inlined_call_operand.vmem [shape: f32[2,64,8], index: 6, kind: output, shape index: {}]  }
   0x1 LB: > { %s1782_s22 = sadd.s32 4294967295, %s1879_s21   ;;  %p1786_p0 = scmp.ge.s32.totalorder %s1879_s21, 1  ;;  %s1879_s21 = sphi %s1926_s21, %s16_s21  }
   0x2   : > { %p212_p1 = scmp.lt.s32.totalorder %s1879_s21, 3 }
   0x4   : > { %p213_p2 = pnand %p1786_p0, %p212_p1 }
   0x5   : > { %p242_p3 = scmp.lt.s32.totalorder (!%p213_p2), %s1782_s22, 1  ;;  %s1882_s7 = smov (!%p213_p2), 120  }
   0x6   : > { %216 = sbr.rel (%p213_p2) target bundleno = 966 (0x3c6), region = 44  ;;  %s1883_s8 = smov (!%p213_p2), 24  }
   0x7   : > { %s1884_s9 = smov (!%p213_p2), 16   ;;  %s1885_s10 = smov (!%p213_p2), 8  }
   0x8   : > { %s1886_s11 = smov (!%p213_p2), 48   ;;  %s1887_s12 = smov (!%p213_p2), 40  }
   0x9   : > { %s1888_s13 = smov (!%p213_p2), 32   ;;  %s1889_s14 = smov (!%p213_p2), 64  }
   0xa   : > { %s1890_s15 = smov (!%p213_p2), 56  }
   0xb   : > { %v260_v0 = vld [vmem:[%s3008_s1] sm:$0xff]  ;;  %s3109_s22 = smov (!%p242_p3, %s1782_s22), 1  ;;  %vm3017_vm0 = vcmask 64512   ;;  %v355_v9 = vlaneseq  ;;  %vm3015_vm2 = vcmask 1040384   ;;  %v1881_v21 = vmov 0.0  }
   0xc   : > { %305 = vmatpush.msra.mxu0 %v260_v0  ;;  %s1834_s25 = sshll.u32 %s3109_s22, 6  ;;  %v1968_v11 = vld [vmem:[%s3009_s2] ss:$0 sm:$0xff]  ;;  %v1978_v22 = vrot.slane %v1881_v21, 2  ;;  %vm600_vm4 = vcmask 1045504   ;;  %v1991_v28 = vrot.slane %v1881_v21, 1 }
   0xd   : > { %s1945_s28 = scalar_lea.vmem %s3007_s0, %s1834_s25  ;;  %v1963_v10 = vshrl.u32 %v355_v9, 7  ;;  %vm672_vm7 = vcmask 1046528   ;;  %s2969_s17 = scalar_lea.vmem %s3013_s6, %s1834_s25 }
   0xe   : > { %v252_v1 = vld [vmem:[%s1945_s28] sm:$0xff]  ;;  %v253_v2 = vld [vmem:[%s1945_s28 + $0x8] sm:$0xff]  ;;  %v254_v3 = vld [vmem:[%s1945_s28 + $0x10] sm:$0xff] }
   0xf   : > { %1791 = vmatmul.msk.f32.vlgmr.msra.gmra.mxu0 %vm3017_vm0, %v252_v1  ;;  %v255_v4 = vld [vmem:[%s1945_s28 + $0x18] sm:$0xff]  ;;  %v256_v5 = vld [vmem:[%s1945_s28 + $0x20] sm:$0xff]  ;;  %v257_v6 = vld [vmem:[%s1945_s28 + $0x28] sm:$0xff]  ;;  %v368_v12 = vand.u32 7, %v1963_v10  ;;  %v357_v20 = vadd.s32 8, %v1963_v10  ;;  %v358_v55 = vadd.s32 16, %v1963_v10 }
  0x10   : > { %v258_v7 = vld [vmem:[%s1945_s28 + $0x30] sm:$0xff]  ;;  %v259_v8 = vld [vmem:[%s1945_s28 + $0x38] sm:$0xff] }
  0x11   : > { %v1972_v15 = vadd.s32 4294967295, %v368_v12  ;;  %v1974_v18 = vadd.s32 1, %v368_v12  ;;  %v375_v29 = vand.u32 7, %v357_v20  ;;  %v382_v59 = vand.u32 7, %v358_v55 }
  0x13   : > { %vm503_vm3 = vcmp.ge.s32.totalorder %v1972_v15, 0  ;;  %vm566_vm5 = vcmp.lt.s32.totalorder %v1974_v18, 8  ;;  %v2001_v37 = vadd.s32 4294967295, %v375_v29  ;;  %v2028_v52 = vadd.s32 1, %v375_v29 }
  0x14   : > { %v2048_v0 = vadd.s32 4294967295, %v382_v59  ;;  %v2050_v1 = vadd.s32 1, %v382_v59 }
  0x15   : > { %vm504_vm8 = vcmp.ge.s32.totalorder %v2001_v37, 0  ;;  %vm567_vm10 = vcmp.lt.s32.totalorder %v2028_v52, 8 }
  0x16   : > { %vm3021_vm12 = vcmp.ge.s32.totalorder %v2048_v0, 0  ;;  %vm568_vm13 = vcmp.lt.s32.totalorder %v2050_v1, 8 }
  0x17   : > { %1792 = vmatmul.msk.f32.gmra.mxu0 %vm3017_vm0, %v253_v2 }
  0x1f   : > { %1793 = vmatmul.msk.f32.gmra.mxu0 %vm3017_vm0, %v254_v3 }
  0x27   : > { %1794 = vmatmul.msk.f32.gmra.mxu0 %vm3017_vm0, %v255_v4 }
  0x2f   : > { %1795 = vmatmul.msk.f32.gmra.mxu0 %vm3017_vm0, %v256_v5 }
  0x37   : > { %1796 = vmatmul.msk.f32.gmra.mxu0 %vm3017_vm0, %v257_v6 }
  0x3f   : > { %1797 = vmatmul.msk.f32.gmra.mxu0 %vm3017_vm0, %v258_v7 }
  0x47   : > { %1798 = vmatmul.msk.f32.gmra.mxu0 %vm3017_vm0, %v259_v8 }
  0x8c   : > { %v307_v13 = vpop.f32.mrf.mxu0 }
  0x8d   : > { %v308_v14 = vadd.f32 %v1968_v11, %v307_v13  ;;  %v359_v13 = vadd.s32 24, %v1963_v10 }
  0x8f   : > { %vm331_vm1 = vcmp.ge.f32.partialorder %v308_v14, 0.0  ;;  %v339_v16 = vmul.f32 0.2, %v308_v14 }
  0x91   : > { %v347_v17 = vsel %vm331_vm1, %v308_v14, %v339_v16 }
  0x92   : > { %v469_v19 = vrot.slane %v347_v17, 7 }
  0x94   : > { %v310_v23 = vpop.f32.mrf.mxu0  ;;  %1071 = vrot.lane.b32.xlu0 %v469_v19, %s1882_s7  ;;  %v1982_v24 = vsel %vm3015_vm2, 0.0, %v469_v19 }
  0x95   : > { %v311_v25 = vadd.f32 %v1968_v11, %v310_v23  ;;  %v634_v26 = vsel %vm503_vm3, %v1982_v24, 0.0  ;;  %v602_v27 = vrot.slane %v1982_v24, 2  ;;  %v674_v32 = vrot.slane %v1982_v24, 1 }
  0x96   : > { %754 = vrot.lane.b32.xlu1 %v634_v26, %s1883_s8 }
  0x97   : > { %vm332_vm6 = vcmp.ge.f32.partialorder %v311_v25, 0.0  ;;  %v340_v30 = vmul.f32 0.2, %v311_v25  ;;  %v603_v31 = vsel %vm600_vm4, %v1978_v22, %v602_v27  ;;  %v675_v36 = vsel %vm672_vm7, %v1991_v28, %v674_v32 }
  0x98   : > { %v626_v33 = vsel %vm566_vm5, %v603_v31, 0.0 }
  0x99   : > { %v348_v34 = vsel %vm332_vm6, %v311_v25, %v340_v30  ;;  %722 = vrot.lane.b32.xlu2 %v626_v33, %s1884_s9 }
  0x9a   : > { %v470_v35 = vrot.slane %v348_v34, 7 }
  0x9c   : > { %v2004_v38 = vsel %vm3015_vm2, %v469_v19, %v470_v35  ;;  %v313_v39 = vpop.f32.mrf.mxu0  ;;  %690 = vrot.lane.b32.xlu0 %v675_v36, %s1885_s10  ;;  %v389_v19 = vand.u32 7, %v359_v13 }
  0x9d   : > { %v654_v40 = vsel %vm503_vm3, %v2004_v38, 0.0  ;;  %v314_v41 = vadd.f32 %v1968_v11, %v313_v39  ;;  %v635_v42 = vsel %vm504_vm8, %v2004_v38, 0.0  ;;  %v676_v43 = vrot.slane %v2004_v38, 1 }
  0x9e   : > { %844 = vrot.lane.b32.xlu1 %v654_v40, %s1886_s11  ;;  %v604_v44 = vrot.slane %v2004_v38, 2  ;;  %v2087_v29 = vadd.s32 1, %v389_v19  ;;  %v2100_v40 = vadd.s32 4294967295, %v389_v19 }
  0x9f   : > { %v341_v45 = vmul.f32 0.2, %v314_v41  ;;  %vm333_vm9 = vcmp.ge.f32.partialorder %v314_v41, 0.0  ;;  %v677_v47 = vsel %vm672_vm7, %v674_v32, %v676_v43 }
  0xa0   : > { %v605_v48 = vsel %vm600_vm4, %v602_v27, %v604_v44  ;;  %vm569_vm6 = vcmp.lt.s32.totalorder %v2087_v29, 8 }
  0xa1   : > { %756 = vrot.lane.b32.xlu2 %v635_v42, %s1883_s8  ;;  %v349_v49 = vsel %vm333_vm9, %v314_v41, %v341_v45  ;;  %v646_v50 = vsel %vm566_vm5, %v605_v48, 0.0  ;;  %v627_v60 = vsel %vm567_vm10, %v605_v48, 0.0 }
  0xa2   : > { %v472_v51 = vrot.slane %v349_v49, 7 }
  0xa4   : > { %v316_v46 = vpop.f32.mrf.mxu0  ;;  %1073 = vrot.lane.b32.xlu0 %v2004_v38, %s1882_s7  ;;  %v2031_v53 = vsel %vm3015_vm2, %v470_v35, %v472_v51 }
  0xa5   : > { %v655_v56 = vsel %vm504_vm8, %v2031_v53, 0.0  ;;  %v678_v57 = vrot.slane %v2031_v53, 1  ;;  %v317_v58 = vadd.f32 %v1968_v11, %v316_v46  ;;  %v606_v2 = vrot.slane %v2031_v53, 2 }
  0xa6   : > { %692 = vrot.lane.b32.xlu1 %v677_v47, %s1885_s10  ;;  %v636_v5 = vsel %vm3021_vm12, %v2031_v53, 0.0 }
  0xa7   : > { %v679_v61 = vsel %vm672_vm7, %v676_v43, %v678_v57  ;;  %v342_v62 = vmul.f32 0.2, %v317_v58  ;;  %vm334_vm11 = vcmp.ge.f32.partialorder %v317_v58, 0.0  ;;  %v607_v4 = vsel %vm600_vm4, %v604_v44, %v606_v2 }
  0xa8   : > { %v628_v7 = vsel %vm568_vm13, %v607_v4, 0.0  ;;  %v664_v9 = vsel %vm566_vm5, %v607_v4, 0.0  ;;  %v647_v33 = vsel %vm567_vm10, %v607_v4, 0.0 }
  0xa9   : > { %812 = vrot.lane.b32.xlu2 %v646_v50, %s1887_s12  ;;  %v2054_v3 = vsel %vm334_vm11, %v317_v58, %v342_v62  ;;  %vm3024_vm11 = vcmp.ge.s32.totalorder %v2100_v40, 0  ;;  %v360_v50 = vadd.s32 32, %v1963_v10 }
  0xaa   : > { %v474_v6 = vrot.slane %v2054_v3, 7 }
  0xab   : > { %v396_v59 = vand.u32 7, %v360_v50 }
  0xac   : > { %780 = vrot.lane.b32.xlu0 %v677_v47, %s1888_s13  ;;  %v319_v54 = vpop.f32.mrf.mxu0  ;;  %v2073_v12 = vsel %vm3015_vm2, %v472_v51, %v474_v6 }
  0xad   : > { %v680_v17 = vrot.slane %v2073_v12, 1  ;;  %v320_v25 = vadd.f32 %v1968_v11, %v319_v54  ;;  %v608_v30 = vrot.slane %v2073_v12, 2  ;;  %v656_v35 = vsel %vm3021_vm12, %v2073_v12, 0.0 }
  0xae   : > { %1075 = vrot.lane.b32.xlu1 %v2031_v53, %s1882_s7  ;;  %v637_v49 = vsel %vm3024_vm11, %v2073_v12, 0.0  ;;  %v2142_v62 = vadd.s32 4294967295, %v396_v59  ;;  %v2173_v13 = vadd.s32 1, %v396_v59  ;;  %v1002_v59 = vld [vmem:[%s3010_s3 + $0x30] sm:$0xff] }
  0xaf   : > { %v681_v27 = vsel %vm672_vm7, %v678_v57, %v680_v17  ;;  %v343_v34 = vmul.f32 0.2, %v320_v25  ;;  %vm335_vm9 = vcmp.ge.f32.partialorder %v320_v25, 0.0  ;;  %v609_v36 = vsel %vm600_vm4, %v606_v2, %v608_v30 }
  0xb0   : > { %v629_v45 = vsel %vm569_vm6, %v609_v36, 0.0  ;;  %v648_v4 = vsel %vm568_vm13, %v609_v36, 0.0 }
  0xb1   : > { %846 = vrot.lane.b32.xlu2 %v655_v56, %s1886_s11  ;;  %v351_v44 = vsel %vm335_vm9, %v320_v25, %v343_v34  ;;  %vm3018_vm9 = vcmask 195584  }
  0xb2   : > { %v476_v48 = vrot.slane %v351_v44, 7 }
  0xb4   : > { %724 = vrot.lane.b32.xlu0 %v627_v60, %s1884_s9  ;;  %v322_v63 = vpop.f32.mrf.mxu0  ;;  %v2136_v60 = vsel %vm3015_vm2, %v474_v6, %v476_v48 }
  0xb5   : > { %v323_v16 = vadd.f32 %v1968_v11, %v322_v63  ;;  %v682_v2 = vrot.slane %v2136_v60, 1  ;;  %v657_v19 = vsel %vm3024_vm11, %v2136_v60, 0.0 }
  0xb6   : > { %782 = vrot.lane.b32.xlu1 %v679_v61, %s1888_s13 }
  0xb7   : > { %v344_v26 = vmul.f32 0.2, %v323_v16  ;;  %vm336_vm15 = vcmp.ge.f32.partialorder %v323_v16, 0.0 }
  0xb9   : > { %694 = vrot.lane.b32.xlu2 %v679_v61, %s1885_s10 }
  0xbc   : > { %758 = vrot.lane.b32.xlu0 %v636_v5, %s1883_s8  ;;  %v325_v8 = vpop.f32.mrf.mxu0 }
  0xbd   : > { %v326_v14 = vadd.f32 %v1968_v11, %v325_v8 }
  0xbe   : > { %726 = vrot.lane.b32.xlu1 %v628_v7, %s1884_s9  ;;  %v683_v7 = vsel %vm672_vm7, %v680_v17, %v682_v2 }
  0xbf   : > { %v345_v20 = vmul.f32 0.2, %v326_v14  ;;  %vm337_vm14 = vcmp.ge.f32.partialorder %v326_v14, 0.0 }
  0xc1   : > { %901 = vrot.lane.b32.xlu2 %v664_v9, %s1889_s14  ;;  %v353_v31 = vsel %vm337_vm14, %v326_v14, %v345_v20  ;;  %vm3022_vm14 = vcmp.ge.s32.totalorder %v2142_v62, 0  ;;  %v610_v14 = vrot.slane %v2136_v60, 2 }
  0xc2   : > { %v480_v39 = vrot.slane %v353_v31, 7  ;;  %v638_v63 = vsel %vm3022_vm14, %v2136_v60, 0.0 }
  0xc3   : > { %v611_v17 = vsel %vm600_vm4, %v608_v30, %v610_v14 }
  0xc4   : > { %869 = vrot.lane.b32.xlu0 %v679_v61, %s1890_s15  ;;  %v328_v21 = vpop.f32.mrf.mxu0  ;;  %v665_v61 = vsel %vm567_vm10, %v609_v36, 0.0  ;;  %v666_v36 = vsel %vm568_vm13, %v611_v17, 0.0 }
  0xc5   : > { %v329_v23 = vadd.f32 %v1968_v11, %v328_v21  ;;  %v352_v11 = vsel %vm336_vm15, %v323_v16, %v344_v26  ;;  %v2177_v16 = vadd.s32 56, %v1963_v10  ;;  %vm3016_vm15 = vcmp.lt.s32.totalorder %v2173_v13, 8 }
  0xc6   : > { %1077 = vrot.lane.b32.xlu1 %v2073_v12, %s1882_s7  ;;  %v478_v42 = vrot.slane %v352_v11, 7  ;;  %v630_v21 = vsel %vm3016_vm15, %v611_v17, 0.0  ;;  %v649_v26 = vsel %vm569_vm6, %v611_v17, 0.0 }
  0xc7   : > { %v346_v32 = vmul.f32 0.2, %v329_v23  ;;  %vm338_vm1 = vcmp.ge.f32.partialorder %v329_v23, 0.0  ;;  %v417_v20 = vand.u32 7, %v2177_v16 }
  0xc8   : > { %v2108_v46 = vsel %vm3015_vm2, %v478_v42, %v480_v39 }
  0xc9   : > { %784 = vrot.lane.b32.xlu2 %v681_v27, %s1888_s13  ;;  %v354_v41 = vsel %vm338_vm1, %v329_v23, %v346_v32  ;;  %v614_v51 = vrot.slane %v2108_v46, 2  ;;  %v686_v54 = vrot.slane %v2108_v46, 1  ;;  %v2190_v23 = vsel %vm3015_vm2, %v476_v48, %v478_v42 }
  0xca   : > { %v2102_v43 = vrot.slane %v354_v41, 7  ;;  %v2195_v25 = vadd.s32 1, %v417_v20  ;;  %v612_v34 = vrot.slane %v2190_v23, 2  ;;  %v658_v41 = vsel %vm3022_vm14, %v2190_v23, 0.0 }
  0xcc   : > { %814 = vrot.lane.b32.xlu0 %v647_v33, %s1887_s12  ;;  %v2112_v47 = vsel %vm3015_vm2, %v480_v39, %v2102_v43  ;;  %v2154_v3 = vsel %vm3015_vm2, %v2102_v43, 0.0  ;;  %vm3014_vm1 = vcmp.lt.s32.totalorder %v2195_v25, 8  ;;  %v2220_v11 = vsel %vm600_vm4, %v610_v14, %v612_v34 }
  0xcd   : > { %v688_v55 = vrot.slane %v2112_v47, 1  ;;  %v616_v56 = vrot.slane %v2112_v47, 2  ;;  %v3020_v5 = vrot.slane %v2154_v3, 1  ;;  %v643_v6 = vrot.slane %v2154_v3, 2 }
  0xce   : > { %848 = vrot.lane.b32.xlu1 %v656_v35, %s1886_s11  ;;  %v650_v39 = vsel %vm3016_vm15, %v2220_v11, 0.0  ;;  %v2236_v42 = vsel %vm600_vm4, %v612_v34, %v614_v51 }
  0xcf   : > { %v2128_v57 = vsel %vm672_vm7, %v686_v54, %v688_v55  ;;  %v2131_v58 = vsel %vm600_vm4, %v614_v51, %v616_v56  ;;  %v2167_v8 = vsel %vm672_vm7, %v688_v55, %v3020_v5  ;;  %v2170_v9 = vsel %vm600_vm4, %v616_v56, %v643_v6  ;;  %v1003_v55 = vld [vmem:[%s3010_s3 + $0x38] sm:$0xff] }
  0xd0   : > { %v662_v30 = vsel %vm600_vm4, %v643_v6, %v1978_v22  ;;  %v667_v51 = vsel %vm569_vm6, %v2220_v11, 0.0 }
  0xd1   : > { %728 = vrot.lane.b32.xlu2 %v629_v45, %s1884_s9  ;;  %v2208_v32 = vsel %vm3014_vm1, %v662_v30, 0.0  ;;  %v668_v45 = vsel %vm3016_vm15, %v2236_v42, 0.0  ;;  %vm951_vm1 = vcmask 261120   ;;  %vm969_vm15 = vcmask 392192  }
  0xd4   : > { %760 = vrot.lane.b32.xlu0 %v637_v49, %s1883_s8  ;;  %v1004_v49 = vld [vmem:[%s3010_s3 + $0x40] sm:$0xff] }
  0xd5   : > { %1037 = vmatpush.msrb.mxu0 %v1004_v49  ;;  %1836 = vmatpush.msra.mxu1 %v1004_v49 }
  0xd6   : > { %871 = vrot.lane.b32.xlu1 %v681_v27, %s1890_s15 }
  0xd7   : > { %1038 = vmatpush.msrb.mxu0 %v1003_v55  ;;  %1837 = vmatpush.msra.mxu1 %v1003_v55 }
  0xd9   : > { %1079 = vrot.lane.b32.xlu2 %v2136_v60, %s1882_s7  ;;  %1039 = vmatpush.msrb.mxu0 %v1002_v59 }
  0xda   : > { %1838 = vmatpush.msra.mxu1 %v1002_v59 }
  0xdc   : > { %903 = vrot.lane.b32.xlu0 %v665_v61, %s1889_s14  ;;  %v1001_v61 = vld [vmem:[%s3010_s3 + $0x28] sm:$0xff] }
  0xdd   : > { %1040 = vmatpush.msrb.mxu0 %v1001_v61  ;;  %1839 = vmatpush.msra.mxu1 %v1001_v61 }
  0xde   : > { %696 = vrot.lane.b32.xlu1 %v681_v27, %s1885_s10  ;;  %v684_v27 = vrot.slane %v2190_v23, 1 }
  0xe0   : > { %v2212_v33 = vsel %vm672_vm7, %v682_v2, %v684_v27 }
  0xe1   : > { %762 = vrot.lane.b32.xlu2 %v638_v63, %s1883_s8 }
  0xe4   : > { %816 = vrot.lane.b32.xlu0 %v648_v4, %s1887_s12  ;;  %v1000_v4 = vld [vmem:[%s3010_s3 + $0x20] sm:$0xff] }
  0xe5   : > { %1041 = vmatpush.msrb.mxu0 %v1000_v4  ;;  %1840 = vmatpush.msra.mxu1 %v1000_v4 }
  0xe6   : > { %786 = vrot.lane.b32.xlu1 %v683_v7, %s1888_s13 }
  0xe9   : > { %873 = vrot.lane.b32.xlu2 %v683_v7, %s1890_s15 }
  0xec   : > { %850 = vrot.lane.b32.xlu0 %v657_v19, %s1886_s11  ;;  %v544_v19 = vsel %vm3021_vm12, %v2004_v38, 0.0  ;;  %v997_v38 = vld [vmem:[%s3010_s3 + $0x8] sm:$0xff] }
  0xee   : > { %730 = vrot.lane.b32.xlu1 %v630_v21, %s1884_s9  ;;  %v2293_v21 = vsel %vm672_vm7, %v684_v27, %v686_v54 }
  0xf1   : > { %818 = vrot.lane.b32.xlu2 %v649_v26, %s1887_s12  ;;  %v998_v26 = vld [vmem:[%s3010_s3 + $0x10] sm:$0xff] }
  0xf3   : > { %v2204_v31 = vpop.permute.xlu2 %722 }
  0xf4   : > { %698 = vrot.lane.b32.xlu0 %v683_v7, %s1885_s10 }
  0xf6   : > { %875 = vrot.lane.b32.xlu1 %v2212_v33, %s1890_s15 }
  0xf9   : > { %1081 = vrot.lane.b32.xlu2 %v2190_v23, %s1882_s7 }
  0xfb   : > { %v2222_v35 = vpop.permute.xlu2 %756 }
  0xfc   : > { %905 = vrot.lane.b32.xlu0 %v666_v36, %s1889_s14  ;;  %v996_v36 = vld [vmem:[%s3010_s3] sm:$0xff] }
  0xfe   : > { %820 = vrot.lane.b32.xlu1 %v650_v39, %s1887_s12 }
 0x101   : > { %852 = vrot.lane.b32.xlu2 %v658_v41, %s1886_s11 }
 0x103   : > { %v2238_v44 = vpop.permute.xlu2 %812 }
 0x104   : > { %788 = vrot.lane.b32.xlu0 %v2212_v33, %s1888_s13 }
 0x106   : > { %v1072_v48 = vpop.permute.xlu0 %1071  ;;  %909 = vrot.lane.b32.xlu1 %v668_v45, %s1889_s14 }
 0x107   : > { %v2269_v63 = vsel %vm3015_vm2, 0.0, %v1072_v48  ;;  %vm960_vm2 = vcmask 326656  }
 0x108   : > { %v2249_v50 = vpop.permute.xlu1 %754  ;;  %v1108_v7 = vrot.slane %v2269_v63, 2  ;;  %v1178_v14 = vrot.slane %v2269_v63, 1  ;;  %v1140_v49 = vsel %vm503_vm3, %v2269_v63, 0.0 }
 0x109   : > { %907 = vrot.lane.b32.xlu2 %v667_v51, %s1889_s14 }
 0x10a   : > { %v1179_v54 = vsel %vm672_vm7, %v1991_v28, %v1178_v14  ;;  %v1109_v27 = vsel %vm600_vm4, %v1978_v22, %v1108_v7 }
 0x10b   : > { %v2258_v56 = vpop.permute.xlu2 %846  ;;  %v1132_v41 = vsel %vm566_vm5, %v1109_v27, 0.0 }
 0x10c   : > { %1083 = vrot.lane.b32.xlu0 %v2108_v46, %s1882_s7 }
 0x10e   : > { %v2271_v2 = vpop.permute.xlu0 %690  ;;  %1087 = vrot.lane.b32.xlu1 %v2102_v43, %s1882_s7  ;;  %v999_v43 = vld [vmem:[%s3010_s3 + $0x18] sm:$0xff] }
 0x10f   : > { %1042 = vmatpush.msrb.mxu0 %v999_v43  ;;  %1841 = vmatpush.msra.mxu1 %v999_v43 }
 0x110   : > { %v2278_v6 = vpop.permute.xlu1 %844 }
 0x111   : > { %1085 = vrot.lane.b32.xlu2 %v2112_v47, %s1882_s7  ;;  %1043 = vmatpush.msrb.mxu0 %v998_v26 }
 0x112   : > { %1842 = vmatpush.msra.mxu1 %v998_v26 }
 0x113   : > { %v695_v17 = vpop.permute.xlu2 %694  ;;  %1044 = vmatpush.msrb.mxu0 %v997_v38 }
 0x114   : > { %v2299_v30 = vsel %vm3017_vm0, %v544_v19, %v695_v17  ;;  %877 = vrot.lane.b32.xlu0 %v2293_v21, %s1890_s15  ;;  %1843 = vmatpush.msra.mxu1 %v997_v38  ;;  %v543_v19 = vsel %vm504_vm8, %v1982_v24, 0.0  ;;  %v925_v24 = vsel %vm3017_vm0, 0.0, %v2271_v2 }
 0x115   : > { %1045 = vmatpush.msrb.mxu0 %v996_v36 }
 0x116   : > { %v2310_v34 = vpop.permute.xlu0 %1073  ;;  %1194 = vrot.lane.b32.xlu1 %v1179_v54, %s1885_s10  ;;  %1844 = vmatpush.msra.mxu1 %v996_v36 }
 0x117   : > { %v1110_v45 = vrot.slane %v2310_v34, 2  ;;  %v1160_v51 = vsel %vm503_vm3, %v2310_v34, 0.0  ;;  %v1180_v43 = vrot.slane %v2310_v34, 1  ;;  %v1141_v15 = vsel %vm504_vm8, %v2310_v34, 0.0 }
 0x118   : > { %v693_v39 = vpop.permute.xlu1 %692  ;;  %vm3019_vm3 = vcmask 130048  }
 0x119   : > { %1226 = vrot.lane.b32.xlu2 %v1132_v41, %s1884_s9  ;;  %v1111_v55 = vsel %vm600_vm4, %v1108_v7, %v1110_v45  ;;  %v1181_v26 = vsel %vm672_vm7, %v1178_v14, %v1180_v43  ;;  %v926_v38 = vsel %vm3017_vm0, %v543_v19, %v693_v39  ;;  %vm978_vm0 = vcmask 457728  }
 0x11a   : > { %v1133_v4 = vsel %vm567_vm10, %v1111_v55, 0.0  ;;  %v1152_v39 = vsel %vm566_vm5, %v1111_v55, 0.0 }
 0x11b   : > { %v902_v48 = vpop.permute.xlu2 %901 }
 0x11c   : > { %1258 = vrot.lane.b32.xlu0 %v1140_v49, %s1883_s8 }
 0x11e   : > { %v781_v59 = vpop.permute.xlu0 %780  ;;  %1348 = vrot.lane.b32.xlu1 %v1160_v51, %s1886_s11  ;;  %v934_v51 = vsel %vm3019_vm3, %v925_v24, %v2204_v31 }
 0x11f   : > { %v943_v2 = vsel %vm3018_vm9, %v934_v51, %v2249_v50 }
 0x120   : > { %v2329_v61 = vpop.permute.xlu1 %1075 }
 0x121   : > { %1228 = vrot.lane.b32.xlu2 %v1133_v4, %s1884_s9  ;;  %v1182_v7 = vrot.slane %v2329_v61, 1  ;;  %v952_v4 = vsel %vm951_vm1, %v943_v2, %v781_v59  ;;  %v1112_v55 = vrot.slane %v2329_v61, 2  ;;  %v1142_v19 = vsel %vm3021_vm12, %v2329_v61, 0.0 }
 0x122   : > { %v961_v31 = vsel %vm960_vm2, %v952_v4, %v2238_v44  ;;  %v1161_v50 = vsel %vm504_vm8, %v2329_v61, 0.0 }
 0x123   : > { %v2335_v17 = vpop.permute.xlu2 %784  ;;  %v1183_v49 = vsel %vm672_vm7, %v1180_v43, %v1182_v7  ;;  %v1113_v59 = vsel %vm600_vm4, %v1110_v45, %v1112_v55  ;;  %v970_v44 = vsel %vm969_vm15, %v961_v31, %v2278_v6 }
 0x124   : > { %1260 = vrot.lane.b32.xlu0 %v1141_v15, %s1883_s8  ;;  %v1170_v6 = vsel %vm566_vm5, %v1113_v59, 0.0  ;;  %v1153_v18 = vsel %vm567_vm10, %v1113_v59, 0.0  ;;  %vm3026_vm5 = vcmask 130048  }
 0x126   : > { %1284 = vrot.lane.b32.xlu1 %v1181_v26, %s1888_s13  ;;  %v725_v54 = vpop.permute.xlu0 %724 }
 0x127   : > { %v935_v27 = vsel %vm3019_vm3, %v926_v38, %v725_v54  ;;  %vm1005_vm3 = vcmask 588800  }
 0x128   : > { %v783_v36 = vpop.permute.xlu1 %782  ;;  %v944_v41 = vsel %vm3018_vm9, %v935_v27, %v2222_v35  ;;  %vm987_vm9 = vcmask 523264   ;;  %v1134_v27 = vsel %vm568_vm13, %v1113_v59, 0.0 }
 0x129   : > { %1373 = vrot.lane.b32.xlu2 %v1183_v49, %s1890_s15 }
 0x12b   : > { %v2355_v14 = vpop.permute.xlu2 %728 }
 0x12c   : > { %1316 = vrot.lane.b32.xlu0 %v1152_v39, %s1887_s12 }
 0x12e   : > { %1196 = vrot.lane.b32.xlu1 %v1181_v26, %s1885_s10  ;;  %v2363_v35 = vpop.permute.xlu0 %758 }
 0x130   : > { %v2368_v43 = vpop.permute.xlu1 %726 }
 0x131   : > { %1286 = vrot.lane.b32.xlu2 %v1183_v49, %s1888_s13 }
 0x133   : > { %v2374_v15 = vpop.permute.xlu2 %1079 }
 0x134   : > { %1262 = vrot.lane.b32.xlu0 %v1142_v19, %s1883_s8 }
 0x136   : > { %1350 = vrot.lane.b32.xlu1 %v1161_v50, %s1886_s11  ;;  %v870_v26 = vpop.permute.xlu0 %869 }
 0x137   : > { %v979_v38 = vsel %vm978_vm0, %v970_v44, %v870_v26  ;;  %v953_v44 = vsel %vm951_vm1, %v944_v41, %v783_v36 }
 0x138   : > { %v2388_v54 = vpop.permute.xlu1 %1077  ;;  %v988_v24 = vsel %vm987_vm9, %v979_v38, %v902_v48 }
 0x139   : > { %1230 = vrot.lane.b32.xlu2 %v1134_v27, %s1884_s9  ;;  %1799 = vmatmul.msk.f32.vlgmr.msrb.gmra.mxu0 %vm1005_vm3, %v988_v24  ;;  %v1143_v48 = vsel %vm3024_vm11, %v2388_v54, 0.0  ;;  %v1184_v2 = vrot.slane %v2388_v54, 1  ;;  %v1114_v19 = vrot.slane %v2388_v54, 2 }
 0x13b   : > { %v2395_v45 = vpop.permute.xlu2 %762  ;;  %v1115_v38 = vsel %vm600_vm4, %v1112_v55, %v1114_v19 }
 0x13c   : > { %1405 = vrot.lane.b32.xlu0 %v1170_v6, %s1889_s14  ;;  %v1135_v36 = vsel %vm569_vm6, %v1115_v38, 0.0 }
 0x13e   : > { %1198 = vrot.lane.b32.xlu1 %v1183_v49, %s1885_s10  ;;  %v815_v39 = vpop.permute.xlu0 %814  ;;  %v1185_v49 = vsel %vm672_vm7, %v1182_v7, %v1184_v2  ;;  %v1162_v7 = vsel %vm3021_vm12, %v2388_v54, 0.0  ;;  %vm3030_vm12 = vcmp.lt.s32.totalorder %v2173_v13, 8 }
 0x13f   : > { %v962_v26 = vsel %vm960_vm2, %v953_v44, %v815_v39  ;;  %v1154_v39 = vsel %vm568_vm13, %v1115_v38, 0.0  ;;  %v1163_v44 = vsel %vm3024_vm11, %v2374_v15, 0.0 }
 0x140   : > { %v2401_v51 = vpop.permute.xlu1 %848  ;;  %v971_v27 = vsel %vm969_vm15, %v962_v26, %v2258_v56  ;;  %v1144_v56 = vsel %vm3022_vm14, %v2374_v15, 0.0 }
 0x141   : > { %1264 = vrot.lane.b32.xlu2 %v1143_v48, %s1883_s8 }
 0x143   : > { %v2408_v4 = vpop.permute.xlu2 %873 }
 0x144   : > { %1318 = vrot.lane.b32.xlu0 %v1153_v18, %s1887_s12 }
 0x146   : > { %1288 = vrot.lane.b32.xlu1 %v1185_v49, %s1888_s13  ;;  %v2415_v31 = vpop.permute.xlu0 %760 }
 0x148   : > { %v872_v50 = vpop.permute.xlu1 %871 }
 0x149   : > { %1375 = vrot.lane.b32.xlu2 %v1185_v49, %s1890_s15  ;;  %v980_v41 = vsel %vm978_vm0, %v971_v27, %v872_v50 }
 0x14b   : > { %v2422_v59 = vpop.permute.xlu2 %818 }
 0x14c   : > { %1352 = vrot.lane.b32.xlu0 %v1162_v7, %s1886_s11  ;;  %v1171_v7 = vsel %vm567_vm10, %v1115_v38, 0.0  ;;  %vm3027_vm10 = vcmask 195584  }
 0x14e   : > { %1232 = vrot.lane.b32.xlu1 %v1135_v36, %s1884_s9  ;;  %v904_v24 = vpop.permute.xlu0 %903 }
 0x14f   : > { %v989_v55 = vsel %vm987_vm9, %v980_v41, %v904_v24  ;;  %v1116_v24 = vrot.slane %v2374_v15, 2 }
 0x150   : > { %v697_v6 = vpop.permute.xlu1 %696  ;;  %1800 = vmatmul.msk.f32.vlgmr.msra.gmra.mxu1 %vm1005_vm3, %v989_v55  ;;  %v936_v55 = vsel %vm3026_vm5, %v2299_v30, %v2368_v43  ;;  %v545_v30 = vsel %vm3024_vm11, %v2031_v53, 0.0  ;;  %vm3028_vm5 = vcmask 64512  }
 0x151   : > { %1320 = vrot.lane.b32.xlu2 %v1154_v39, %s1887_s12  ;;  %v1117_v52 = vsel %vm600_vm4, %v1114_v19, %v1116_v24  ;;  %v945_v39 = vsel %vm3027_vm10, %v936_v55, %v2363_v35  ;;  %v928_v19 = vsel %vm3028_vm5, %v545_v30, %v697_v6  ;;  %vm3029_vm10 = vcmask 130048  }
 0x152   : > { %v954_v43 = vsel %vm951_vm1, %v945_v39, %v2335_v17  ;;  %v1136_v17 = vsel %vm3030_vm12, %v1117_v52, 0.0 }
 0x153   : > { %v2439_v48 = vpop.permute.xlu2 %1081 }
 0x154   : > { %1200 = vrot.lane.b32.xlu0 %v1185_v49, %s1885_s10  ;;  %v1186_v49 = vrot.slane %v2374_v15, 1  ;;  %v1188_v6 = vrot.slane %v2439_v48, 1  ;;  %v1164_v1 = vsel %vm3022_vm14, %v2439_v48, 0.0 }
 0x156   : > { %1266 = vrot.lane.b32.xlu1 %v1144_v56, %s1883_s8  ;;  %v817_v18 = vpop.permute.xlu0 %816  ;;  %v1187_v27 = vsel %vm672_vm7, %v1184_v2, %v1186_v49  ;;  %v1155_v2 = vsel %vm569_vm6, %v1117_v52, 0.0 }
 0x157   : > { %v963_v35 = vsel %vm960_vm2, %v954_v43, %v817_v18  ;;  %v1189_v43 = vsel %vm672_vm7, %v1186_v49, %v1188_v6 }
 0x158   : > { %v787_v50 = vpop.permute.xlu1 %786  ;;  %v972_v53 = vsel %vm969_vm15, %v963_v35, %v2401_v51 }
 0x159   : > { %1354 = vrot.lane.b32.xlu2 %v1163_v44, %s1886_s11  ;;  %v361_v44 = vadd.s32 40, %v1963_v10  ;;  %v981_v51 = vsel %vm978_vm0, %v972_v53, %v2408_v4 }
 0x15b   : > { %v2450_v26 = vpop.permute.xlu2 %852  ;;  %v403_v55 = vand.u32 7, %v361_v44 }
 0x15c   : > { %1407 = vrot.lane.b32.xlu0 %v1171_v7, %s1889_s14 }
 0x15d   : > { %v2501_v39 = vadd.s32 4294967295, %v403_v55 }
 0x15e   : > { %1377 = vrot.lane.b32.xlu1 %v1187_v27, %s1890_s15  ;;  %v851_v36 = vpop.permute.xlu0 %850 }
 0x15f   : > { %vm508_vm12 = vcmp.ge.s32.totalorder %v2501_v39, 0 }
 0x160   : > { %v2458_v41 = vpop.permute.xlu1 %730  ;;  %v1145_v49 = vsel %vm508_vm12, %v2439_v48, 0.0 }
 0x161   : > { %1202 = vrot.lane.b32.xlu2 %v1187_v27, %s1885_s10 }
 0x163   : > { %v908_v38 = vpop.permute.xlu2 %907 }
 0x164   : > { %1290 = vrot.lane.b32.xlu0 %v1187_v27, %s1888_s13  ;;  %v1172_v27 = vsel %vm568_vm13, %v1117_v52, 0.0  ;;  %vm3031_vm13 = vcmask 195584  }
 0x166   : > { %1322 = vrot.lane.b32.xlu1 %v1155_v2, %s1887_s12  ;;  %v699_v56 = vpop.permute.xlu0 %698  ;;  %v937_v2 = vsel %vm3029_vm10, %v928_v19, %v2355_v14  ;;  %vm3032_vm10 = vcmask 64512  }
 0x167   : > { %v946_v18 = vsel %vm3031_vm13, %v937_v2, %v2415_v31  ;;  %v1118_v31 = vrot.slane %v2439_v48, 2  ;;  %vm3033_vm13 = vcmask 130048  }
 0x168   : > { %v876_v7 = vpop.permute.xlu1 %875  ;;  %v955_v52 = vsel %vm951_vm1, %v946_v18, %v787_v50  ;;  %v2515_v50 = vadd.s32 48, %v1963_v10 }
 0x169   : > { %1409 = vrot.lane.b32.xlu2 %v1172_v27, %s1889_s14  ;;  %v964_v4 = vsel %vm960_vm2, %v955_v52, %v2422_v59  ;;  %v2523_v27 = vadd.s32 1, %v403_v55  ;;  %v1119_v59 = vsel %vm600_vm4, %v1116_v24, %v1118_v31  ;;  %v546_v55 = vsel %vm3022_vm14, %v2073_v12, 0.0 }
 0x16a   : > { %v973_v19 = vsel %vm969_vm15, %v964_v4, %v851_v36  ;;  %v410_v53 = vand.u32 7, %v2515_v50  ;;  %v929_v24 = vsel %vm3032_vm10, %v546_v55, %v699_v56  ;;  %v1173_v12 = vsel %vm569_vm6, %v1119_v59, 0.0 }
 0x16b   : > { %v2487_v5 = vpop.permute.xlu2 %1085  ;;  %v982_v2 = vsel %vm978_vm0, %v973_v19, %v876_v7  ;;  %vm571_vm5 = vcmp.lt.s32.totalorder %v2523_v27, 8  ;;  %vm3034_vm14 = vcmask 195584   ;;  %vm3035_vm6 = vcmp.lt.s32.totalorder %v2173_v13, 8 }
 0x16c   : > { %1234 = vrot.lane.b32.xlu0 %v1136_v17, %s1884_s9  ;;  %v991_v36 = vsel %vm987_vm9, %v982_v2, %v908_v38  ;;  %v1137_v7 = vsel %vm571_vm5, %v1119_v59, 0.0  ;;  %v938_v38 = vsel %vm3033_vm13, %v929_v24, %v2458_v41  ;;  %v1815_v41 = vld [vmem:[%s3010_s3 + $0x88] sm:$0xff]  ;;  %v1156_v50 = vsel %vm3035_vm6, %v1119_v59, 0.0  ;;  %v1812_v2 = vld [vmem:[%s3010_s3 + $0x70] sm:$0xff] }
 0x16d   : > { %v947_v56 = vsel %vm3034_vm14, %v938_v38, %v2395_v45  ;;  %1534 = vmatpush.msra.mxu2 %v1815_v41  ;;  %v1813_v45 = vld [vmem:[%s3010_s3 + $0x78] sm:$0xff]  ;;  %vm3036_vm14 = vmmov %vm3035_vm6  ;;  %v2614_v41 = vadd.s32 1, %v410_v53 }
 0x16e   : > { %1356 = vrot.lane.b32.xlu1 %v1164_v1, %s1886_s11  ;;  %v906_v14 = vpop.permute.xlu0 %905  ;;  %v2540_v1 = vadd.s32 4294967295, %v410_v53 }
 0x16f   : > { %v990_v44 = vsel %vm987_vm9, %v981_v51, %v906_v14  ;;  %vm3025_vm13 = vcmp.lt.s32.totalorder %v2614_v41, 8 }
 0x170   : > { %v821_v30 = vpop.permute.xlu1 %820  ;;  %1801 = vmatmul.msk.f32.gmra.mxu1 %vm1005_vm3, %v990_v44  ;;  %vm3023_vm10 = vcmp.ge.s32.totalorder %v2540_v1, 0  ;;  %v1814_v44 = vld [vmem:[%s3010_s3 + $0x80] sm:$0xff] }
 0x171   : > { %1292 = vrot.lane.b32.xlu2 %v1189_v43, %s1888_s13  ;;  %1535 = vmatpush.msra.mxu2 %v1814_v44 }
 0x173   : > { %v2518_v35 = vpop.permute.xlu2 %1226  ;;  %1536 = vmatpush.msra.mxu2 %v1813_v45 }
 0x174   : > { %1268 = vrot.lane.b32.xlu0 %v1145_v49, %s1883_s8 }
 0x175   : > { %1537 = vmatpush.msra.mxu2 %v1812_v2 }
 0x176   : > { %1204 = vrot.lane.b32.xlu1 %v1189_v43, %s1885_s10  ;;  %v789_v10 = vpop.permute.xlu0 %788 }
 0x177   : > { %v956_v29 = vsel %vm951_vm1, %v947_v56, %v789_v10  ;;  %v1809_v56 = vld [vmem:[%s3010_s3 + $0x58] sm:$0xff] }
 0x178   : > { %v910_v17 = vpop.permute.xlu1 %909  ;;  %1802 = vmatmul.msk.f32.gmra.mxu1 %vm1005_vm3, %v991_v36  ;;  %v1811_v36 = vld [vmem:[%s3010_s3 + $0x68] sm:$0xff] }
 0x179   : > { %1236 = vrot.lane.b32.xlu2 %v1137_v7, %s1884_s9  ;;  %1538 = vmatpush.msra.mxu2 %v1811_v36 }
 0x17b   : > { %v2542_v18 = vpop.permute.xlu2 %1228 }
 0x17c   : > { %1379 = vrot.lane.b32.xlu0 %v1189_v43, %s1890_s15  ;;  %v965_v43 = vsel %vm960_vm2, %v956_v29, %v821_v30  ;;  %v1807_v29 = vld [vmem:[%s3010_s3 + $0x48] sm:$0xff] }
 0x17d   : > { %v974_v59 = vsel %vm969_vm15, %v965_v43, %v2450_v26  ;;  %v1810_v26 = vld [vmem:[%s3010_s3 + $0x60] sm:$0xff] }
 0x17e   : > { %1411 = vrot.lane.b32.xlu1 %v1173_v12, %s1889_s14  ;;  %v2550_v14 = vpop.permute.xlu0 %1083  ;;  %1539 = vmatpush.msra.mxu2 %v1810_v26 }
 0x17f   : > { %v1146_v51 = vsel %vm3023_vm10, %v2550_v14, 0.0  ;;  %v1190_v19 = vrot.slane %v2550_v14, 1  ;;  %v1120_v49 = vrot.slane %v2550_v14, 2  ;;  %v1165_v30 = vsel %vm508_vm12, %v2550_v14, 0.0 }
 0x180   : > { %v1088_v52 = vpop.permute.xlu1 %1087  ;;  %1540 = vmatpush.msra.mxu2 %v1809_v56 }
 0x181   : > { %1270 = vrot.lane.b32.xlu2 %v1146_v51, %s1883_s8  ;;  %v1191_v24 = vsel %vm672_vm7, %v1188_v6, %v1190_v19  ;;  %v1121_v12 = vsel %vm600_vm4, %v1118_v31, %v1120_v49  ;;  %v1808_v31 = vld [vmem:[%s3010_s3 + $0x50] sm:$0xff] }
 0x182   : > { %1541 = vmatpush.msra.mxu2 %v1808_v31  ;;  %v1157_v13 = vsel %vm571_vm5, %v1121_v12, 0.0  ;;  %v1138_v53 = vsel %vm3025_vm13, %v1121_v12, 0.0  ;;  %vm3040_vm13 = vcmask 130048  }
 0x183   : > { %v2570_v4 = vpop.permute.xlu2 %1373 }
 0x184   : > { %1324 = vrot.lane.b32.xlu0 %v1156_v50, %s1887_s12  ;;  %1542 = vmatpush.msra.mxu2 %v1807_v29  ;;  %v2633_v50 = vadd.s32 4294967295, %v417_v20 }
 0x186   : > { %1358 = vrot.lane.b32.xlu1 %v1165_v30, %s1886_s11  ;;  %v878_v10 = vpop.permute.xlu0 %877  ;;  %v1166_v30 = vsel %vm3023_vm10, %v2487_v5, 0.0  ;;  %vm510_vm6 = vcmp.ge.s32.totalorder %v2633_v50, 0  ;;  %vm3038_vm10 = vcmask 64512  }
 0x187   : > { %v983_v55 = vsel %vm978_vm0, %v974_v59, %v878_v10  ;;  %v1192_v59 = vrot.slane %v2487_v5, 1  ;;  %v1147_v36 = vsel %vm510_vm6, %v2487_v5, 0.0  ;;  %vm3039_vm11 = vmmov %vm3038_vm10 }
 0x188   : > { %v1195_v7 = vpop.permute.xlu1 %1194  ;;  %v992_v38 = vsel %vm987_vm9, %v983_v55, %v910_v17  ;;  %v1174_v17 = vsel %vm3036_vm14, %v1121_v12, 0.0  ;;  %vm3037_vm14 = vcmask 1040384  }
 0x189   : > { %1381 = vrot.lane.b32.xlu2 %v1191_v24, %s1890_s15  ;;  %1803 = vmatmul.msk.f32.gmra.mxu1 %vm1005_vm3, %v992_v38  ;;  %v1193_v16 = vsel %vm672_vm7, %v1190_v19, %v1192_v59  ;;  %v2649_v20 = vsel %vm3037_vm14, %v1088_v52, 0.0  ;;  %v1429_v56 = vsel %vm3039_vm11, 0.0, %v1195_v7  ;;  %vm3043_vm11 = vcmp.lt.s32.totalorder %v2614_v41, 8 }
 0x18a   : > { %v1282_v12 = vrot.slane %v2649_v20, 1  ;;  %vm3045_vm14 = vmmov %vm3043_vm11 }
 0x18b   : > { %v2605_v6 = vpop.permute.xlu2 %1286 }
 0x18c   : > { %1413 = vrot.lane.b32.xlu0 %v1174_v17, %s1889_s14  ;;  %v1167_v17 = vsel %vm510_vm6, %v2649_v20, 0.0 }
 0x18e   : > { %1294 = vrot.lane.b32.xlu1 %v1191_v24, %s1888_s13  ;;  %v1259_v51 = vpop.permute.xlu0 %1258 }
 0x190   : > { %v1349_v44 = vpop.permute.xlu1 %1348 }
 0x191   : > { %1326 = vrot.lane.b32.xlu2 %v1157_v13, %s1887_s12 }
 0x193   : > { %v2623_v45 = vpop.permute.xlu2 %1230 }
 0x194   : > { %1238 = vrot.lane.b32.xlu0 %v1138_v53, %s1884_s9 }
 0x196   : > { %1206 = vrot.lane.b32.xlu1 %v1191_v24, %s1885_s10  ;;  %v2629_v43 = vpop.permute.xlu0 %1260  ;;  %v1100_v24 = vsel %vm504_vm8, %v2269_v63, 0.0  ;;  %vm3041_vm8 = vmmov %vm3040_vm13  ;;  %v1283_v63 = vsel %vm672_vm7, %v1192_v59, %v1282_v12 }
 0x197   : > { %v1437_v37 = vsel %vm3041_vm8, %v1429_v56, %v2518_v35  ;;  %v639_v35 = vsel %vm508_vm12, %v2190_v23, 0.0 }
 0x198   : > { %v1285_v2 = vpop.permute.xlu1 %1284 }
 0x199   : > { %1360 = vrot.lane.b32.xlu2 %v1166_v30, %s1886_s11 }
 0x19b   : > { %v2641_v10 = vpop.permute.xlu2 %1264 }
 0x19c   : > { %1272 = vrot.lane.b32.xlu0 %v1147_v36, %s1883_s8 }
 0x19e   : > { %1296 = vrot.lane.b32.xlu1 %v1193_v16, %s1888_s13  ;;  %v1317_v55 = vpop.permute.xlu0 %1316 }
 0x1a0   : > { %v1197_v38 = vpop.permute.xlu1 %1196 }
 0x1a1   : > { %v1430_v26 = vsel %vm3038_vm10, %v1100_v24, %v1197_v38  ;;  %1208 = vrot.lane.b32.xlu2 %v1193_v16, %s1885_s10  ;;  %vm3042_vm10 = vcmask 195584   ;;  %v631_v24 = vsel %vm571_vm5, %v2220_v11, 0.0 }
 0x1a2   : > { %v1438_v52 = vsel %vm3040_vm13, %v1430_v26, %v2542_v18  ;;  %v1445_v31 = vsel %vm3042_vm10, %v1437_v37, %v1259_v51  ;;  %vm3044_vm13 = vcmp.lt.s32.totalorder %v2195_v25, 8  ;;  %vm3046_vm8 = vmmov %vm3042_vm10 }
 0x1a3   : > { %v2661_v19 = vpop.permute.xlu2 %1375  ;;  %v1453_v18 = vsel %vm951_vm1, %v1445_v31, %v1285_v2  ;;  %vm3047_vm10 = vmmov %vm3044_vm13 }
 0x1a4   : > { %1362 = vrot.lane.b32.xlu0 %v1167_v17, %s1886_s11  ;;  %v1461_v29 = vsel %vm960_vm2, %v1453_v18, %v1317_v55  ;;  %v1149_v17 = vrot.slane %v2649_v20, 2  ;;  %v1446_v20 = vsel %vm3046_vm8, %v1438_v52, %v2629_v43 }
 0x1a5   : > { %v1469_v53 = vsel %vm969_vm15, %v1461_v29, %v1349_v44  ;;  %v1372_v44 = vsel %vm672_vm7, %v1282_v12, %v1991_v28 }
 0x1a6   : > { %1385 = vrot.lane.b32.xlu1 %v1283_v63, %s1890_s15  ;;  %v2672_v7 = vpop.permute.xlu0 %1262  ;;  %v1477_v2 = vsel %vm978_vm0, %v1469_v53, %v2570_v4  ;;  %v659_v4 = vsel %vm508_vm12, %v2108_v46, 0.0 }
 0x1a8   : > { %v1351_v13 = vpop.permute.xlu1 %1350 }
 0x1a9   : > { %1298 = vrot.lane.b32.xlu2 %v1283_v63, %s1888_s13 }
 0x1ab   : > { %v2678_v30 = vpop.permute.xlu2 %1320 }
 0x1ac   : > { %1383 = vrot.lane.b32.xlu0 %v1193_v16, %s1890_s15  ;;  %v1122_v16 = vrot.slane %v2487_v5, 2 }
 0x1ae   : > { %764 = vrot.lane.b32.xlu1 %v639_v35, %s1883_s8  ;;  %v1406_v51 = vpop.permute.xlu0 %1405  ;;  %v1123_v38 = vsel %vm600_vm4, %v1120_v49, %v1122_v16  ;;  %v1150_v31 = vsel %vm600_vm4, %v1122_v16, %v1149_v17 }
 0x1af   : > { %v1485_v59 = vsel %vm987_vm9, %v1477_v2, %v1406_v51  ;;  %v1175_v26 = vsel %vm571_vm5, %v1123_v38, 0.0  ;;  %v1158_v56 = vsel %vm3043_vm11, %v1123_v38, 0.0  ;;  %v1139_v49 = vsel %vm3044_vm13, %v1123_v38, 0.0 }
 0x1b0   : > { %v1199_v36 = vpop.permute.xlu1 %1198  ;;  %1816 = vmatmul.msk.f32.vlgmr.msra.gmra.mxu2 %vm1005_vm3, %v1485_v59  ;;  %v1176_v29 = vsel %vm3045_vm14, %v1150_v31, 0.0  ;;  %v1159_v53 = vsel %vm3047_vm10, %v1150_v31, 0.0  ;;  %vm3048_vm11 = vcmp.ge.s32.totalorder %v2100_v40, 0  ;;  %vm3049_vm13 = vcmp.ge.s32.totalorder %v2048_v0, 0 }
 0x1b1   : > { %1387 = vrot.lane.b32.xlu2 %v1372_v44, %s1890_s15  ;;  %v1102_v35 = vsel %vm3048_vm11, %v2329_v61, 0.0  ;;  %v1454_v2 = vsel %vm951_vm1, %v1446_v20, %v2605_v6  ;;  %vm3050_vm14 = vcmask 64512   ;;  %vm3052_vm10 = vcmask 130048  }
 0x1b2   : > { %vm3051_vm8 = vmmov %vm3050_vm14  ;;  %vm3053_vm11 = vcmask 195584   ;;  %v1168_v40 = vsel %vm600_vm4, %v1149_v17, %v1978_v22  ;;  %vm3057_vm4 = vcmp.lt.s32.totalorder %v2614_v41, 8 }
 0x1b3   : > { %v2693_v55 = vpop.permute.xlu2 %1354 }
 0x1b4   : > { %732 = vrot.lane.b32.xlu0 %v631_v24, %s1884_s9 }
 0x1b6   : > { %854 = vrot.lane.b32.xlu1 %v659_v4, %s1886_s11  ;;  %v1319_v12 = vpop.permute.xlu0 %1318 }
 0x1b7   : > { %v1462_v59 = vsel %vm960_vm2, %v1454_v2, %v1319_v12 }
 0x1b8   : > { %v1289_v5 = vpop.permute.xlu1 %1288  ;;  %v1470_v61 = vsel %vm969_vm15, %v1462_v59, %v1351_v13 }
 0x1b9   : > { %1415 = vrot.lane.b32.xlu2 %v1175_v26, %s1889_s14 }
 0x1bb   : > { %v2709_v11 = vpop.permute.xlu2 %1202 }
 0x1bc   : > { %1328 = vrot.lane.b32.xlu0 %v1158_v56, %s1887_s12 }
 0x1be   : > { %1240 = vrot.lane.b32.xlu1 %v1139_v49, %s1884_s9  ;;  %v1353_v37 = vpop.permute.xlu0 %1352 }
 0x1c0   : > { %v1233_v63 = vpop.permute.xlu1 %1232 }
 0x1c1   : > { %700 = vrot.lane.b32.xlu2 %v2212_v33, %s1885_s10  ;;  %v1101_v33 = vsel %vm3049_vm13, %v2310_v34, 0.0  ;;  %vm3054_vm13 = vmmov %vm3052_vm10 }
 0x1c2   : > { %v1431_v52 = vsel %vm3051_vm8, %v1101_v33, %v1199_v36  ;;  %v651_v36 = vsel %vm571_vm5, %v2236_v42, 0.0  ;;  %vm3056_vm8 = vmmov %vm3053_vm11 }
 0x1c3   : > { %v1410_v18 = vpop.permute.xlu2 %1409  ;;  %v1439_v34 = vsel %vm3054_vm13, %v1431_v52, %v2623_v45  ;;  %v1478_v45 = vsel %vm978_vm0, %v1470_v61, %v2661_v19  ;;  %v669_v19 = vsel %vm571_vm5, %v2131_v58, 0.0  ;;  %vm3058_vm5 = vcmp.ge.s32.totalorder %v2540_v1, 0  ;;  %vm3061_vm13 = vmmov %vm3057_vm4 }
 0x1c4   : > { %1417 = vrot.lane.b32.xlu0 %v1176_v29, %s1889_s14 }
 0x1c6   : > { %1330 = vrot.lane.b32.xlu1 %v1159_v53, %s1887_s12  ;;  %v1201_v51 = vpop.permute.xlu0 %1200 }
 0x1c7   : > { %v1432_v43 = vsel %vm3050_vm14, %v1102_v35, %v1201_v51  ;;  %vm3055_vm14 = vcmp.lt.s32.totalorder %v2195_v25, 8  ;;  %v670_v35 = vsel %vm3061_vm13, %v2170_v9, 0.0  ;;  %vm3068_vm13 = vcmp.ge.s32.totalorder %v2540_v1, 0 }
 0x1c8   : > { %v1440_v44 = vsel %vm3052_vm10, %v1432_v43, %v1233_v63  ;;  %v2741_v16 = vpop.permute.xlu1 %1266  ;;  %v1177_v24 = vsel %vm3055_vm14, %v1168_v40, 0.0  ;;  %vm3059_vm10 = vmmov %vm3057_vm4  ;;  %v633_v2 = vsel %vm3055_vm14, %v2131_v58, 0.0 }
 0x1c9   : > { %790 = vrot.lane.b32.xlu2 %v2293_v21, %s1888_s13  ;;  %v1448_v0 = vsel %vm3053_vm11, %v1440_v44, %v2641_v10  ;;  %v1447_v10 = vsel %vm3056_vm8, %v1439_v34, %v2672_v7  ;;  %v652_v31 = vsel %vm3059_vm10, %v2131_v58, 0.0  ;;  %vm3060_vm11 = vmmov %vm3058_vm5  ;;  %vm3062_vm8 = vcmp.ge.s32.totalorder %v2142_v62, 0 }
 0x1ca   : > { %v1455_v13 = vsel %vm951_vm1, %v1447_v10, %v1289_v5  ;;  %v1103_v41 = vsel %vm3062_vm8, %v2388_v54, 0.0  ;;  %v641_v58 = vsel %vm510_vm6, %v2112_v47, 0.0  ;;  %vm3065_vm10 = vcmask 195584  }
 0x1cb   : > { %v2752_v6 = vpop.permute.xlu2 %1292  ;;  %v1463_v12 = vsel %vm960_vm2, %v1455_v13, %v2678_v30  ;;  %v632_v30 = vsel %vm3057_vm4, %v2236_v42, 0.0  ;;  %vm3063_vm4 = vcmask 64512   ;;  %vm3071_vm8 = vmmov %vm3065_vm10 }
 0x1cc   : > { %822 = vrot.lane.b32.xlu0 %v651_v36, %s1887_s12  ;;  %v1471_v7 = vsel %vm969_vm15, %v1463_v12, %v1353_v37  ;;  %v640_v37 = vsel %vm3058_vm5, %v2108_v46, 0.0  ;;  %v1433_v44 = vsel %vm3063_vm4, %v1103_v41, %v2709_v11  ;;  %vm3064_vm5 = vcmask 130048  }
 0x1ce   : > { %1419 = vrot.lane.b32.xlu1 %v1177_v24, %s1889_s14  ;;  %v1408_v22 = vpop.permute.xlu0 %1407 }
 0x1cf   : > { %v1486_v4 = vsel %vm987_vm9, %v1478_v45, %v1408_v22 }
 0x1d0   : > { %v1378_v38 = vpop.permute.xlu1 %1377  ;;  %1817 = vmatmul.msk.f32.gmra.mxu2 %vm1005_vm3, %v1486_v4 }
 0x1d1   : > { %879 = vrot.lane.b32.xlu2 %v2128_v57, %s1890_s15  ;;  %v1479_v5 = vsel %vm978_vm0, %v1471_v7, %v1378_v38  ;;  %v1104_v7 = vsel %vm508_vm12, %v2374_v15, 0.0 }
 0x1d2   : > { %v1487_v17 = vsel %vm987_vm9, %v1479_v5, %v1410_v18  ;;  %v660_v18 = vsel %vm3060_vm11, %v2112_v47, 0.0  ;;  %vm3066_vm11 = vmmov %vm3055_vm14 }
 0x1d3   : > { %v2773_v26 = vpop.permute.xlu2 %1236  ;;  %v653_v11 = vsel %vm3066_vm11, %v2170_v9, 0.0  ;;  %v3067_v9 = vrot.slane %v2154_v3, 1  ;;  %vm3070_vm14 = vmmov %vm3064_vm5 }
 0x1d4   : > { %911 = vrot.lane.b32.xlu0 %v669_v19, %s1889_s14  ;;  %vm3073_vm11 = vmmov %vm3063_vm4 }
 0x1d5   : > { %v868_v25 = vsel %vm672_vm7, %v3067_v9, %v1991_v28  ;;  %vm3069_vm7 = vmmov %vm3063_vm4 }
 0x1d6   : > { %702 = vrot.lane.b32.xlu1 %v2293_v21, %s1885_s10  ;;  %v1291_v56 = vpop.permute.xlu0 %1290 }
 0x1d7   : > { %v1456_v20 = vsel %vm951_vm1, %v1448_v0, %v1291_v56 }
 0x1d8   : > { %v1323_v49 = vpop.permute.xlu1 %1322  ;;  %1818 = vmatmul.msk.f32.gmra.mxu2 %vm1005_vm3, %v1487_v17 }
 0x1d9   : > { %734 = vrot.lane.b32.xlu2 %v632_v30, %s1884_s9  ;;  %v1464_v51 = vsel %vm960_vm2, %v1456_v20, %v1323_v49 }
 0x1da   : > { %v1472_v43 = vsel %vm969_vm15, %v1464_v51, %v2693_v55 }
 0x1db   : > { %v1271_v27 = vpop.permute.xlu2 %1270 }
 0x1dc   : > { %766 = vrot.lane.b32.xlu0 %v640_v37, %s1883_s8 }
 0x1de   : > { %792 = vrot.lane.b32.xlu1 %v2128_v57, %s1888_s13  ;;  %v1235_v21 = vpop.permute.xlu0 %1234 }
 0x1df   : > { %v1441_v0 = vsel %vm3064_vm5, %v1433_v44, %v1235_v21 }
 0x1e0   : > { %v1357_v63 = vpop.permute.xlu1 %1356  ;;  %v1449_v62 = vsel %vm3065_vm10, %v1441_v0, %v2741_v16  ;;  %v661_v16 = vsel %vm510_vm6, %v2154_v3, 0.0  ;;  %v1105_v3 = vsel %vm3068_vm13, %v2439_v48, 0.0  ;;  %vm3072_vm10 = vmmov %vm3071_vm8 }
 0x1e1   : > { %824 = vrot.lane.b32.xlu2 %v652_v31, %s1887_s12  ;;  %v1457_v40 = vsel %vm951_vm1, %v1449_v62, %v2752_v6  ;;  %vm3074_vm13 = vmmov %vm3064_vm5 }
 0x1e3   : > { %v1382_v42 = vpop.permute.xlu2 %1381 }
 0x1e4   : > { %856 = vrot.lane.b32.xlu0 %v660_v18, %s1886_s11 }
 0x1e6   : > { %881 = vrot.lane.b32.xlu1 %v2167_v8, %s1890_s15  ;;  %v1269_v29 = vpop.permute.xlu0 %1268 }
 0x1e8   : > { %v1205_v53 = vpop.permute.xlu1 %1204 }
 0x1e9   : > { %913 = vrot.lane.b32.xlu2 %v670_v35, %s1889_s14  ;;  %v1434_v5 = vsel %vm3063_vm4, %v1104_v7, %v1205_v53 }
 0x1ea   : > { %v1442_v48 = vsel %vm3064_vm5, %v1434_v5, %v2773_v26 }
 0x1eb   : > { %v1327_v33 = vpop.permute.xlu2 %1326  ;;  %v1450_v49 = vsel %vm3072_vm10, %v1442_v48, %v1269_v29 }
 0x1ec   : > { %704 = vrot.lane.b32.xlu0 %v2128_v57, %s1885_s10 }
 0x1ee   : > { %736 = vrot.lane.b32.xlu1 %v633_v2, %s1884_s9  ;;  %v1380_v52 = vpop.permute.xlu0 %1379  ;;  %v1106_v2 = vsel %vm510_vm6, %v2550_v14, 0.0 }
 0x1ef   : > { %v1480_v59 = vsel %vm978_vm0, %v1472_v43, %v1380_v52 }
 0x1f0   : > { %v1412_v57 = vpop.permute.xlu1 %1411 }
 0x1f1   : > { %768 = vrot.lane.b32.xlu2 %v641_v58, %s1883_s8  ;;  %v1488_v55 = vsel %vm987_vm9, %v1480_v59, %v1412_v57 }
 0x1f2   : > { %1819 = vmatmul.msk.f32.gmra.mxu2 %vm1005_vm3, %v1488_v55  ;;  %v547_v55 = vsel %vm508_vm12, %v2136_v60, 0.0  ;;  %vm3079_vm12 = vcmp.ge.s32.totalorder %v2540_v1, 0 }
 0x1f3   : > { %v1361_v54 = vpop.permute.xlu2 %1360 }
 0x1f4   : > { %794 = vrot.lane.b32.xlu0 %v2167_v8, %s1888_s13 }
 0x1f6   : > { %826 = vrot.lane.b32.xlu1 %v653_v11, %s1887_s12  ;;  %v1325_v47 = vpop.permute.xlu0 %1324 }
 0x1f7   : > { %v1465_v34 = vsel %vm960_vm2, %v1457_v40, %v1325_v47 }
 0x1f8   : > { %v1359_v61 = vpop.permute.xlu1 %1358  ;;  %v1473_v8 = vsel %vm969_vm15, %v1465_v34, %v1357_v63 }
 0x1f9   : > { %858 = vrot.lane.b32.xlu2 %v661_v16, %s1886_s11  ;;  %v1481_v36 = vsel %vm978_vm0, %v1473_v8, %v1382_v42 }
 0x1fb   : > { %v1209_v24 = vpop.permute.xlu2 %1208 }
 0x1fc   : > { %883 = vrot.lane.b32.xlu0 %v868_v25, %s1890_s15  ;;  %v1436_v52 = vsel %vm3073_vm11, %v1106_v2, %v1209_v24  ;;  %v1645_v2 = vld [vmem:[%s3012_s5 + $0x8] sm:$0xff] }
 0x1fd   : > { %1684 = vmatpush.msra.mxu3 %v1645_v2  ;;  %v1867_v2 = vld [vmem:[%s1945_s28 + $0x10] sm:$0xff] }
 0x1fe   : > { %915 = vrot.lane.b32.xlu1 %v2208_v32, %s1889_s14  ;;  %v1414_v6 = vpop.permute.xlu0 %1413 }
 0x1ff   : > { %v1489_v10 = vsel %vm987_vm9, %v1481_v36, %v1414_v6 }
 0x200   : > { %v1295_v22 = vpop.permute.xlu1 %1294  ;;  %1820 = vmatmul.msk.f32.gmra.mxu2 %vm1005_vm3, %v1489_v10 }
 0x201   : > { %v1458_v30 = vsel %vm951_vm1, %v1450_v49, %v1295_v22 }
 0x203   : > { %v1299_v13 = vpop.permute.xlu2 %1298 }
 0x206   : > { %v1239_v45 = vpop.permute.xlu0 %1238 }
 0x208   : > { %v1207_v28 = vpop.permute.xlu1 %1206 }
 0x209   : > { %v1435_v4 = vsel %vm3069_vm7, %v1105_v3, %v1207_v28  ;;  %vm3075_vm7 = vmmov %vm3071_vm8  ;;  %v548_v28 = vsel %vm3079_vm12, %v2190_v23, 0.0 }
 0x20a   : > { %v1443_v32 = vsel %vm3070_vm14, %v1435_v4, %v1239_v45  ;;  %vm3076_vm14 = vmmov %vm3063_vm4 }
 0x20b   : > { %v1451_v38 = vsel %vm3071_vm8, %v1443_v32, %v1271_v27  ;;  %v1388_v56 = vpop.permute.xlu2 %1387  ;;  %v1466_v27 = vsel %vm960_vm2, %v1458_v30, %v1327_v33  ;;  %vm3077_vm8 = vmmov %vm3064_vm5 }
 0x20c   : > { %v1474_v63 = vsel %vm969_vm15, %v1466_v27, %v1359_v61  ;;  %vm3078_vm4 = vmmov %vm3075_vm7 }
 0x20d   : > { %vm3080_vm5 = vmmov %vm3073_vm11 }
 0x20e   : > { %v1273_v12 = vpop.permute.xlu0 %1272  ;;  %vm3081_vm10 = vmmov %vm3077_vm8 }
 0x20f   : > { %vm3082_vm11 = vmmov %vm3078_vm4 }
 0x210   : > { %v1297_v19 = vpop.permute.xlu1 %1296 }
 0x211   : > { %v1459_v35 = vsel %vm951_vm1, %v1451_v38, %v1297_v19 }
 0x213   : > { %v1416_v21 = vpop.permute.xlu2 %1415 }
 0x216   : > { %v1363_v17 = vpop.permute.xlu0 %1362 }
 0x218   : > { %v1386_v37 = vpop.permute.xlu1 %1385 }
 0x21b   : > { %v701_v20 = vpop.permute.xlu2 %700 }
 0x21c   : > { %v930_v62 = vsel %vm3076_vm14, %v547_v55, %v701_v20  ;;  %vm3085_vm14 = vmmov %vm3078_vm4 }
 0x21e   : > { %v1384_v31 = vpop.permute.xlu0 %1383 }
 0x21f   : > { %v1482_v15 = vsel %vm978_vm0, %v1474_v63, %v1384_v31 }
 0x220   : > { %v765_v42 = vpop.permute.xlu1 %764  ;;  %v1490_v18 = vsel %vm987_vm9, %v1482_v15, %v1416_v21  ;;  %v549_v21 = vsel %vm510_vm6, %v2108_v46, 0.0 }
 0x221   : > { %1821 = vmatmul.msk.f32.gmra.mxu2 %vm1005_vm3, %v1490_v18 }
 0x223   : > { %v791_v43 = vpop.permute.xlu2 %790 }
 0x226   : > { %v733_v26 = vpop.permute.xlu0 %732 }
 0x228   : > { %v855_v53 = vpop.permute.xlu1 %854 }
 0x22b   : > { %v880_v34 = vpop.permute.xlu2 %879 }
 0x22e   : > { %v1329_v29 = vpop.permute.xlu0 %1328 }
 0x22f   : > { %v1467_v51 = vsel %vm960_vm2, %v1459_v35, %v1329_v29 }
 0x230   : > { %v1241_v33 = vpop.permute.xlu1 %1240  ;;  %v1475_v41 = vsel %vm969_vm15, %v1467_v51, %v1361_v54  ;;  %v939_v54 = vsel %vm3077_vm8, %v930_v62, %v733_v26 }
 0x231   : > { %v1444_v59 = vsel %vm3074_vm13, %v1436_v52, %v1241_v33  ;;  %v1483_v0 = vsel %vm978_vm0, %v1475_v41, %v1386_v37  ;;  %v948_v61 = vsel %vm3078_vm4, %v939_v54, %v765_v42  ;;  %vm3083_vm13 = vmmov %vm3080_vm5 }
 0x232   : > { %v1452_v57 = vsel %vm3075_vm7, %v1444_v59, %v1273_v12  ;;  %v957_v60 = vsel %vm951_vm1, %v948_v61, %v791_v43  ;;  %vm3084_vm7 = vmmov %vm3077_vm8  ;;  %v1644_v43 = vld [vmem:[%s3012_s5] sm:$0xff] }
 0x233   : > { %v1544_v44 = vpop.f32.mrf.mxu2  ;;  %v1460_v47 = vsel %vm951_vm1, %v1452_v57, %v1299_v13  ;;  %v735_v24 = vpop.permute.xlu2 %734  ;;  %1685 = vmatpush.msra.mxu3 %v1644_v43  ;;  %vm3092_vm12 = vmmov %vm3084_vm7 }
 0x234   : > { %1576 = vrot.lane.b32.xlu2 %v1544_v44, %s1885_s10  ;;  %v2944_v44 = vld [vmem:[%s3011_s4] ss:$0 sm:$0xff]  ;;  %v1047_v57 = vpop.f32.mrf.mxu0 }
 0x236   : > { %v1418_v58 = vpop.permute.xlu0 %1417 }
 0x237   : > { %v1491_v14 = vsel %vm987_vm9, %v1483_v0, %v1418_v58 }
 0x238   : > { %v1331_v11 = vpop.permute.xlu1 %1330  ;;  %1822 = vmatmul.msk.f32.gmra.mxu2 %vm1005_vm3, %v1491_v14 }
 0x239   : > { %v1468_v40 = vsel %vm960_vm2, %v1460_v47, %v1331_v11  ;;  %v1050_v47 = vpop.f32.mrf.mxu1 }
 0x23a   : > { %v1476_v16 = vsel %vm969_vm15, %v1468_v40, %v1363_v17 }
 0x23b   : > { %v1484_v25 = vsel %vm978_vm0, %v1476_v16, %v1388_v56  ;;  %v825_v32 = vpop.permute.xlu2 %824 }
 0x23e   : > { %v823_v39 = vpop.permute.xlu0 %822 }
 0x23f   : > { %v966_v8 = vsel %vm960_vm2, %v957_v60, %v823_v39 }
 0x240   : > { %v1420_v9 = vpop.permute.xlu1 %1419  ;;  %v975_v36 = vsel %vm969_vm15, %v966_v8, %v855_v53 }
 0x241   : > { %v1492_v6 = vsel %vm987_vm9, %v1484_v25, %v1420_v9  ;;  %v984_v22 = vsel %vm978_vm0, %v975_v36, %v880_v34  ;;  %v1053_v34 = vpop.f32.mrf.mxu1 }
 0x242   : > { %1823 = vmatmul.msk.f32.gmra.mxu2 %vm1005_vm3, %v1492_v6 }
 0x243   : > { %v914_v17 = vpop.permute.xlu2 %913 }
 0x246   : > { %v912_v10 = vpop.permute.xlu0 %911 }
 0x247   : > { %v993_v45 = vsel %vm987_vm9, %v984_v22, %v912_v10 }
 0x248   : > { %v703_v3 = vpop.permute.xlu1 %702  ;;  %1804 = vmatmul.msk.f32.gmra.mxu1 %vm1005_vm3, %v993_v45 }
 0x249   : > { %v931_v13 = vsel %vm3080_vm5, %v548_v28, %v703_v3  ;;  %v1056_v6 = vpop.f32.mrf.mxu1 }
 0x24a   : > { %v940_v38 = vsel %vm3081_vm10, %v931_v13, %v735_v24  ;;  %vm3093_vm10 = vmmov %vm3084_vm7 }
 0x24b   : > { %v769_v15 = vpop.permute.xlu2 %768 }
 0x24e   : > { %v767_v4 = vpop.permute.xlu0 %766 }
 0x24f   : > { %v949_v12 = vsel %vm3082_vm11, %v940_v38, %v767_v4 }
 0x250   : > { %v793_v7 = vpop.permute.xlu1 %792 }
 0x251   : > { %v958_v19 = vsel %vm951_vm1, %v949_v12, %v793_v7  ;;  %v1059_v4 = vpop.f32.mrf.mxu1 }
 0x252   : > { %v967_v56 = vsel %vm960_vm2, %v958_v19, %v825_v32 }
 0x253   : > { %v1547_v5 = vpop.f32.mrf.mxu2  ;;  %v859_v35 = vpop.permute.xlu2 %858 }
 0x254   : > { %1578 = vrot.lane.b32.xlu0 %v1547_v5, %s1885_s10 }
 0x256   : > { %v857_v48 = vpop.permute.xlu0 %856 }
 0x257   : > { %v976_v1 = vsel %vm969_vm15, %v967_v56, %v857_v48 }
 0x258   : > { %v882_v23 = vpop.permute.xlu1 %881 }
 0x259   : > { %v985_v49 = vsel %vm978_vm0, %v976_v1, %v882_v23 }
 0x25a   : > { %v994_v30 = vsel %vm987_vm9, %v985_v49, %v914_v17 }
 0x25b   : > { %1805 = vmatmul.msk.f32.gmra.mxu1 %vm1005_vm3, %v994_v30  ;;  %v1550_v37 = vpop.f32.mrf.mxu2  ;;  %v1865_v30 = vld [vmem:[%s1945_s28] sm:$0xff] }
 0x25c   : > { %1580 = vrot.lane.b32.xlu1 %v1550_v37, %s1885_s10 }
 0x25e   : > { %v705_v27 = vpop.permute.xlu0 %704 }
 0x25f   : > { %v932_v31 = vsel %vm3083_vm13, %v549_v21, %v705_v27 }
 0x260   : > { %v737_v63 = vpop.permute.xlu1 %736 }
 0x261   : > { %v941_v42 = vsel %vm3084_vm7, %v932_v31, %v737_v63 }
 0x262   : > { %v950_v26 = vsel %vm3085_vm14, %v941_v42, %v769_v15 }
 0x266   : > { %v795_v18 = vpop.permute.xlu0 %794 }
 0x267   : > { %v959_v20 = vsel %vm951_vm1, %v950_v26, %v795_v18 }
 0x268   : > { %v827_v53 = vpop.permute.xlu1 %826 }
 0x269   : > { %v968_v29 = vsel %vm960_vm2, %v959_v20, %v827_v53 }
 0x26a   : > { %v977_v51 = vsel %vm969_vm15, %v968_v29, %v859_v35  ;;  %vm3087_vm15 = vmmov %vm3084_vm7 }
 0x26e   : > { %v884_v33 = vpop.permute.xlu0 %883 }
 0x26f   : > { %v986_v46 = vsel %vm978_vm0, %v977_v51, %v884_v33  ;;  %vm3086_vm0 = vmmov %vm3080_vm5  ;;  %v1866_v33 = vld [vmem:[%s1945_s28 + $0x8] sm:$0xff] }
 0x270   : > { %v916_v50 = vpop.permute.xlu1 %915  ;;  %vm3088_vm1 = vmmov %vm3086_vm0 }
 0x271   : > { %v995_v52 = vsel %vm987_vm9, %v986_v46, %v916_v50  ;;  %vm3089_vm9 = vmmov %vm3084_vm7 }
 0x272   : > { %1806 = vmatmul.msk.f32.gmra.mxu1 %vm1005_vm3, %v995_v52  ;;  %vm3090_vm6 = vmmov %vm3086_vm0 }
 0x273   : > { %vm3091_vm8 = vmmov %vm3086_vm0 }
 0x274   : > { %vm3094_vm11 = vmmov %vm3086_vm0 }
 0x275   : > { %v1553_v41 = vpop.f32.mrf.mxu2  ;;  %vm3095_vm14 = vmmov %vm3086_vm0 }
 0x276   : > { %1582 = vrot.lane.b32.xlu2 %v1553_v41, %s1885_s10  ;;  %v1868_v41 = vld [vmem:[%s1945_s28 + $0x18] sm:$0xff] }
 0x283   : > { %v1556_v59 = vpop.f32.mrf.mxu2 }
 0x284   : > { %1584 = vrot.lane.b32.xlu0 %v1556_v59, %s1885_s10 }
 0x28e   : > { %v1577_v58 = vpop.permute.xlu2 %1576 }
 0x28f   : > { %v1600_v0 = vsel %vm3086_vm0, %v1047_v57, %v1577_v58  ;;  %v1869_v57 = vld [vmem:[%s1945_s28 + $0x20] sm:$0xff] }
 0x290   : > { %v1612_v55 = vadd.f32 %v2944_v44, %v1600_v0 }
 0x292   : > { %vm1620_vm2 = vcmp.ge.f32.partialorder %v1612_v55, 0.0  ;;  %v1628_v14 = vmul.f32 0.2, %v1612_v55 }
 0x294   : > { %v1636_v62 = vsel %vm1620_vm2, %v1612_v55, %v1628_v14  ;;  %vm3096_vm2 = vmmov %vm3086_vm0  ;;  %v1870_v55 = vld [vmem:[%s1945_s28 + $0x28] sm:$0xff] }
 0x295   : > { %1824 = vmatmul.msk.f32.vlgmr.msra.gmra.mxu3 %vm3087_vm15, %v1636_v62 }
 0x2a4   : > { %v1559_v11 = vpop.f32.mrf.mxu2 }
 0x2a5   : > { %1586 = vrot.lane.b32.xlu1 %v1559_v11, %s1885_s10  ;;  %v1871_v11 = vld [vmem:[%s1945_s28 + $0x30] sm:$0xff] }
 0x2bb   : > { %v1562_v54 = vpop.f32.mrf.mxu2 }
 0x2bc   : > { %1588 = vrot.lane.b32.xlu2 %v1562_v54, %s1885_s10 }
 0x2c5   : > { %v1565_v40 = vpop.f32.mrf.mxu2  ;;  %v1062_v5 = vpop.f32.mrf.mxu1 }
 0x2c6   : > { %1590 = vrot.lane.b32.xlu0 %v1565_v40, %s1885_s10  ;;  %v1579_v61 = vpop.permute.xlu0 %1578  ;;  %v1872_v40 = vld [vmem:[%s1945_s28 + $0x38] sm:$0xff] }
 0x2c7   : > { %v1601_v16 = vsel %vm3088_vm1, %v1050_v47, %v1579_v61  ;;  %vm3097_vm1 = vmmov %vm3084_vm7 }
 0x2c8   : > { %v1613_v39 = vadd.f32 %v2944_v44, %v1601_v16 }
 0x2ca   : > { %vm1621_vm3 = vcmp.ge.f32.partialorder %v1613_v39, 0.0  ;;  %v1629_v60 = vmul.f32 0.2, %v1613_v39 }
 0x2cc   : > { %v1637_v8 = vsel %vm1621_vm3, %v1613_v39, %v1629_v60 }
 0x2cd   : > { %1825 = vmatmul.msk.f32.gmra.mxu3 %vm3089_vm9, %v1637_v8  ;;  %vm3098_vm9 = vmmov %vm3097_vm1 }
 0x2ce   : > { %v1581_v9 = vpop.permute.xlu1 %1580 }
 0x2cf   : > { %v1602_v25 = vsel %vm3090_vm6, %v1053_v34, %v1581_v9  ;;  %vm3099_vm6 = vmmov %vm3086_vm0 }
 0x2d0   : > { %v1614_v36 = vadd.f32 %v2944_v44, %v1602_v25  ;;  %v1583_v24 = vpop.permute.xlu2 %1582 }
 0x2d1   : > { %v1603_v10 = vsel %vm3091_vm8, %v1056_v6, %v1583_v24 }
 0x2d2   : > { %vm1622_vm4 = vcmp.ge.f32.partialorder %v1614_v36, 0.0  ;;  %v1630_v22 = vmul.f32 0.2, %v1614_v36  ;;  %v1615_v45 = vadd.f32 %v2944_v44, %v1603_v10 }
 0x2d4   : > { %v1638_v3 = vsel %vm1622_vm4, %v1614_v36, %v1630_v22  ;;  %v1631_v28 = vmul.f32 0.2, %v1615_v45  ;;  %vm1623_vm5 = vcmp.ge.f32.partialorder %v1615_v45, 0.0  ;;  %vm3100_vm4 = vmmov %vm3097_vm1 }
 0x2d5   : > { %1826 = vmatmul.msk.f32.gmra.mxu3 %vm3092_vm12, %v1638_v3  ;;  %vm3101_vm12 = vmmov %vm3086_vm0 }
 0x2d6   : > { %v1639_v13 = vsel %vm1623_vm5, %v1615_v45, %v1631_v28  ;;  %vm3102_vm5 = vmmov %vm3086_vm0 }
 0x2d8   : > { %v1065_v17 = vpop.f32.mrf.mxu1 }
 0x2dd   : > { %1827 = vmatmul.msk.f32.gmra.mxu3 %vm3093_vm10, %v1639_v13  ;;  %vm3103_vm10 = vmmov %vm3086_vm0 }
 0x2ef   : > { %v1068_v18 = vpop.f32.mrf.mxu1 }
 0x2f6   : > { %v1585_v32 = vpop.permute.xlu0 %1584 }
 0x2f7   : > { %v1604_v38 = vsel %vm3094_vm11, %v1059_v4, %v1585_v32  ;;  %vm3104_vm11 = vmmov %vm3086_vm0 }
 0x2f8   : > { %v1616_v12 = vadd.f32 %v2944_v44, %v1604_v38 }
 0x2fa   : > { %vm1624_vm13 = vcmp.ge.f32.partialorder %v1616_v12, 0.0  ;;  %v1632_v7 = vmul.f32 0.2, %v1616_v12 }
 0x2fc   : > { %v1640_v19 = vsel %vm1624_vm13, %v1616_v12, %v1632_v7  ;;  %vm3105_vm13 = vmmov %vm3086_vm0 }
 0x2fd   : > { %1828 = vmatmul.msk.f32.gmra.mxu3 %vm3084_vm7, %v1640_v19  ;;  %vm3106_vm7 = vmmov %vm3086_vm0 }
 0x316   : > { %v1589_v56 = vpop.permute.xlu2 %1588 }
 0x317   : > { %v1587_v48 = vpop.permute.xlu1 %1586  ;;  %v1606_v27 = vsel %vm3086_vm0, %v1065_v17, %v1589_v56 }
 0x318   : > { %v1605_v1 = vsel %vm3095_vm14, %v1062_v5, %v1587_v48  ;;  %v1687_v23 = vpop.f32.mrf.mxu3  ;;  %v1618_v63 = vadd.f32 %v2944_v44, %v1606_v27  ;;  %vm3107_vm14 = vmmov %vm3086_vm0 }
 0x319   : > { %v1617_v49 = vadd.f32 %v2944_v44, %v1605_v1  ;;  %v1711_v37 = vadd.f32 %v1865_v30, %v1687_v23 }
 0x31a   : > { %v1634_v15 = vmul.f32 0.2, %v1618_v63  ;;  %vm1626_vm3 = vcmp.ge.f32.partialorder %v1618_v63, 0.0 }
 0x31b   : > { %1719 = vst.msk [vmem:[%s2969_s17] sm:$0xff] %vm3096_vm2, %v1711_v37  ;;  %vm1625_vm15 = vcmp.ge.f32.partialorder %v1617_v49, 0.0  ;;  %v1633_v21 = vmul.f32 0.2, %v1617_v49 }
 0x31c   : > { %v1642_v42 = vsel %vm1626_vm3, %v1618_v63, %v1634_v15 }
 0x31d   : > { %v1641_v31 = vsel %vm1625_vm15, %v1617_v49, %v1633_v21 }
 0x31e   : > { %1829 = vmatmul.msk.f32.gmra.mxu3 %vm3097_vm1, %v1641_v31 }
 0x326   : > { %1830 = vmatmul.msk.f32.gmra.mxu3 %vm3098_vm9, %v1642_v42 }
 0x338   : > { %v1591_v26 = vpop.permute.xlu0 %1590 }
 0x339   : > { %v1607_v20 = vsel %vm3099_vm6, %v1068_v18, %v1591_v26 }
 0x33a   : > { %v1619_v53 = vadd.f32 %v2944_v44, %v1607_v20 }
 0x33c   : > { %vm1627_vm8 = vcmp.ge.f32.partialorder %v1619_v53, 0.0  ;;  %v1635_v29 = vmul.f32 0.2, %v1619_v53 }
 0x33e   : > { %v1643_v35 = vsel %vm1627_vm8, %v1619_v53, %v1635_v29 }
 0x33f   : > { %1831 = vmatmul.msk.f32.gmra.mxu3 %vm3100_vm4, %v1643_v35 }
 0x350   : > { %v1690_v51 = vpop.f32.mrf.mxu3 }
 0x351   : > { %v1712_v46 = vadd.f32 %v1866_v33, %v1690_v51 }
 0x353   : > { %1720 = vst.msk [vmem:[%s2969_s17 + $0x8] sm:$0xff] %vm3101_vm12, %v1712_v46 }
 0x358   : > { %v1693_v50 = vpop.f32.mrf.mxu3 }
 0x359   : > { %v1713_v43 = vadd.f32 %v1867_v2, %v1693_v50 }
 0x35b   : > { %1721 = vst.msk [vmem:[%s2969_s17 + $0x10] sm:$0xff] %vm3102_vm5, %v1713_v43 }
 0x360   : > { %v1696_v52 = vpop.f32.mrf.mxu3 }
 0x361   : > { %v1714_v59 = vadd.f32 %v1868_v41, %v1696_v52 }
 0x363   : > { %1722 = vst.msk [vmem:[%s2969_s17 + $0x18] sm:$0xff] %vm3103_vm10, %v1714_v59 }
 0x380   : > { %v1699_v44 = vpop.f32.mrf.mxu3 }
 0x381   : > { %v1715_v58 = vadd.f32 %v1869_v57, %v1699_v44 }
 0x383   : > { %1723 = vst.msk [vmem:[%s2969_s17 + $0x20] sm:$0xff] %vm3104_vm11, %v1715_v58 }
 0x3a1   : > { %v1702_v0 = vpop.f32.mrf.mxu3 }
 0x3a2   : > { %v1716_v14 = vadd.f32 %v1870_v55, %v1702_v0 }
 0x3a4   : > { %1724 = vst.msk [vmem:[%s2969_s17 + $0x28] sm:$0xff] %vm3105_vm13, %v1716_v14 }
 0x3a9   : > { %v1705_v62 = vpop.f32.mrf.mxu3 }
 0x3aa   : > { %v1717_v54 = vadd.f32 %v1871_v11, %v1705_v62 }
 0x3ac   : > { %1725 = vst.msk [vmem:[%s2969_s17 + $0x30] sm:$0xff] %vm3106_vm7, %v1717_v54 }
 0x3c2   : > { %v1708_v47 = vpop.f32.mrf.mxu3 }
 0x3c3   : > { %v1718_v34 = vadd.f32 %v1872_v40, %v1708_v47 }
 0x3c5   : > { %1726 = vst.msk [vmem:[%s2969_s17 + $0x38] sm:$0xff] %vm3107_vm14, %v1718_v34 }
 0x3c6 PF: > { %s16_s21 = sadd.s32 1, %s1879_s21  }
 0x3c7   : > { %p13_p4 = scmp.ge.s32.totalorder %s16_s21, 4  }
 0x3c9   :  { %15 = sbr.rel (!%p13_p4) target bundleno = 1 (0x1), region = 75 }

</bundles_post_ra>
